<compile_context>
chip_gen: v7x
topology: tpu7x:2x2x1
jax: 0.10.0
libtpu: 0.0.40
codegen_flags: <defaults>
</compile_context>

<pallas_src>
import jax
import jax.numpy as jnp
from jax import lax
from jax.experimental import pallas as pl
from jax.experimental.pallas import tpu as pltpu


def _convlstm_kernel(xg_ref, wch_ref, wo_ref, bo_ref, out_ref, hp_scr, hn_scr, c_scr):
    t = pl.program_id(1)
    H, W, G = xg_ref.shape          # per-(b, t) x-gates tile, G = 4*Hid
    Hid = G // 4
    n_rb, _ = out_ref.shape         # row-blocks per image
    RH = H // n_rb                  # rows per chunk (chunk M = RH*W)

    # Recurrent-state init, once per batch element.  The padded-h halo is zeroed here
    # and never written again (each step only rewrites the interior).
    @pl.when(t == 0)
    def _():
        hp_scr[...] = jnp.zeros_like(hp_scr)
        c_scr[...] = jnp.zeros_like(c_scr)

    for m in range(n_rb):
        r0 = m * RH

        # im2col of h_{t-1}: nine shifted taps concatenated along lanes -> the whole
        # 3x3 h-conv becomes ONE MXU matmul with K = 9*Hid (lane-dense contraction).
        taps = []
        for ky in range(3):
            for kx in range(3):
                taps.append(
                    hp_scr[r0 + ky:r0 + ky + RH, kx:kx + W, :].reshape(RH * W, Hid))
        col = jnp.concatenate(taps, axis=-1)                        # (RH*W, 9*Hid)

        # gates = conv3x3(h, Wch) + precomputed (conv3x3(x, Wcx) + b).
        # NOTE: operands could be cast to bf16 for 2-3x MXU throughput on v6e/v7x;
        # kept f32 here to stay within the tight f32 reference tolerance.
        gates = jnp.dot(col, wch_ref[...], preferred_element_type=jnp.float32)
        gates = gates + xg_ref[r0:r0 + RH, :, :].reshape(RH * W, G)

        # Full-width activations (2 EUP passes) then slice i/f/g/o (torch.split order).
        sg = jax.nn.sigmoid(gates)
        th = jnp.tanh(gates)
        i_g = sg[:, 0 * Hid:1 * Hid]
        f_g = sg[:, 1 * Hid:2 * Hid]
        g_g = th[:, 2 * Hid:3 * Hid]
        o_g = sg[:, 3 * Hid:4 * Hid]

        c_prev = c_scr[r0:r0 + RH, :, :].reshape(RH * W, Hid)
        c_new = f_g * c_prev + i_g * g_g
        h_new = o_g * jnp.tanh(c_new)

        c_scr[r0:r0 + RH, :, :] = c_new.reshape(RH, W, Hid)
        hn_scr[r0:r0 + RH, :, :] = h_new.reshape(RH, W, Hid)

        # 1x1 output conv (Hid -> 1) + bias; one lane-dense (RH*W)-wide row per chunk.
        out_ref[m, :] = jnp.sum(h_new * wo_ref[...], axis=-1) + bo_ref[0, 0]

    # Publish h_t into the padded buffer for the next time step (halo stays zero).
    hp_scr[1:H + 1, 1:W + 1, :] = hn_scr[...]


def convlstm_forecast(x_nchw, wc, bc, wo, bo, hidden_dim):
    """x_nchw: (B, Cin, T, H, W) f32; wc: (3, 3, Cin+Hid, 4*Hid) HWIO; bc: (1, 4*Hid);
       wo: (1, Hid); bo: (1, 1)  ->  (B, T, H, W) f32 (torch.stack(outputs, dim=1))."""
    B, Cin, T, H, W = x_nchw.shape
    Hid = hidden_dim
    G = 4 * Hid
    RH = 8 if H % 8 == 0 else (4 if H % 4 == 0 else 1)   # rows per in-kernel chunk
    n_rb = H // RH

    wcx = wc[:, :, :Cin, :].astype(jnp.float32)                 # (3,3,Cin,4*Hid)
    wch_flat = wc[:, :, Cin:, :].astype(jnp.float32).reshape(9 * Hid, G)  # im2col layout

    # Hoist the x-side of the gate conv out of the serial recurrence: fully parallel
    # over (B, T), computed once by XLA, consumed by the kernel as an input block.
    x_bthwc = jnp.transpose(x_nchw, (0, 2, 3, 4, 1)).astype(jnp.float32)  # (B,T,H,W,Cin)
    xg = lax.conv_general_dilated(
        x_bthwc.reshape(B * T, H, W, Cin), wcx,
        window_strides=(1, 1), padding="SAME",
        dimension_numbers=("NHWC", "HWIO", "NHWC"))
    xg = (xg + bc.reshape(1, 1, 1, G)).reshape(B, T, H, W, G)

    out = pl.pallas_call(
        _convlstm_kernel,
        out_shape=jax.ShapeDtypeStruct((B, T, n_rb, RH * W), jnp.float32),
        grid_spec=pltpu.PrefetchScalarGridSpec(
            num_scalar_prefetch=0,
            grid=(B, T),  # batch parallel (v7x megacore), time serial (recurrence)
            in_specs=[
                pl.BlockSpec((None, None, H, W, G), lambda b, t: (b, t, 0, 0, 0)),
                pl.BlockSpec((9 * Hid, G), lambda b, t: (0, 0)),
                pl.BlockSpec((1, Hid), lambda b, t: (0, 0)),
                pl.BlockSpec((1, 1), lambda b, t: (0, 0)),
            ],
            out_specs=pl.BlockSpec((None, None, n_rb, RH * W),
                                   lambda b, t: (b, t, 0, 0)),
            scratch_shapes=[
                pltpu.VMEM((H + 2, W + 2, Hid), jnp.float32),   # padded h_{t-1}
                pltpu.VMEM((H, W, Hid), jnp.float32),           # h_t staging
                pltpu.VMEM((H, W, Hid), jnp.float32),           # c
            ],
        ),
        compiler_params=pltpu.CompilerParams(
            dimension_semantics=("parallel", "arbitrary"),
            vmem_limit_bytes=32 * 1024 * 1024,
        ),
    )(xg, wch_flat, wo.astype(jnp.float32), bo.astype(jnp.float32))
    return out.reshape(B, T, H, W)


def reference(x_nchw, wc, bc, wo, bo, hidden_dim):
    """Pure-JAX reference (lax.conv) matching the PyTorch forward."""
    B, Cin, T, H, W = x_nchw.shape
    Hid = hidden_dim
    x = jnp.transpose(x_nchw, (0, 2, 3, 4, 1)).astype(jnp.float32)  # (B,T,H,W,Cin)
    h = jnp.zeros((B, H, W, Hid), jnp.float32)
    c = jnp.zeros_like(h)
    outs = []
    for t in range(T):
        combined = jnp.concatenate([x[:, t], h], axis=-1)
        gates = lax.conv_general_dilated(
            combined, wc, (1, 1), "SAME",
            dimension_numbers=("NHWC", "HWIO", "NHWC")) + bc.reshape(1, 1, 1, -1)
        i = jax.nn.sigmoid(gates[..., 0 * Hid:1 * Hid])
        f = jax.nn.sigmoid(gates[..., 1 * Hid:2 * Hid])
        g = jnp.tanh(gates[..., 2 * Hid:3 * Hid])
        o = jax.nn.sigmoid(gates[..., 3 * Hid:4 * Hid])
        c = f * c + i * g
        h = o * jnp.tanh(c)
        outs.append(jnp.sum(h * wo.reshape(1, 1, 1, -1), axis=-1) + bo[0, 0])
    return jnp.stack(outs, axis=1)  # (B, T, H, W)


if __name__ == "__main__":
    B, Cin, T, H, W = 2, 3, 8, 16, 16
    Hid = 32
    Ctot = Cin + Hid

    key = jax.random.PRNGKey(0)
    kx, kwc, kbc, kwo, kbo = jax.random.split(key, 5)

    # deterministic synthetic parameters (conv weights stored HWIO)
    x = jax.random.normal(kx, (B, Cin, T, H, W), jnp.float32)
    wc = 0.1 * jax.random.normal(kwc, (3, 3, Ctot, 4 * Hid), jnp.float32)
    bc = 0.1 * jax.random.normal(kbc, (1, 4 * Hid), jnp.float32)
    wo = 0.1 * jax.random.normal(kwo, (1, Hid), jnp.float32)
    bo = 0.1 * jax.random.normal(kbo, (1, 1), jnp.float32)

    run = jax.jit(lambda *a: convlstm_forecast(*a, hidden_dim=Hid))
    out = jax.block_until_ready(run(x, wc, bc, wo, bo))

    ref = reference(x, wc, bc, wo, bo, Hid)
    assert out.shape == (B, T, H, W), out.shape
    err = float(jnp.max(jnp.abs(out - ref)))
    assert err < 2e-4, err

    print("KERNEL_OK")
</pallas_src>

<mosaic_0001>
module attributes {stable_mosaic.version = 11 : i64} {
  func.func @_convlstm_kernel(%arg0: i32, %arg1: i32, %arg2: memref<1x1x16x16x128xf32, #tpu.memory_space<vmem>>, %arg3: memref<288x128xf32, #tpu.memory_space<vmem>>, %arg4: memref<1x32xf32, #tpu.memory_space<vmem>>, %arg5: memref<1x1xf32, #tpu.memory_space<vmem>>, %arg6: memref<1x1x2x128xf32, #tpu.memory_space<vmem>>, %arg7: memref<18x18x32xf32, #tpu.memory_space<vmem>>, %arg8: memref<16x16x32xf32, #tpu.memory_space<vmem>>, %arg9: memref<16x16x32xf32, #tpu.memory_space<vmem>>) attributes {dimension_semantics = [#tpu.dimension_semantics<parallel>, #tpu.dimension_semantics<arbitrary>], iteration_bounds = array<i64: 2, 8>, scalar_prefetch = 0 : i64, scratch_operands = 3 : i64, tpu.core_type = #tpu.core_type<tc>, window_params = [{transform_indices = @transform_0, window_bounds = array<i64: 1, 1, 16, 16, 128>}, {pipeline_mode = #tpu.pipeline_mode<synchronous>, transform_indices = @transform_1, window_bounds = array<i64: 288, 128>}, {pipeline_mode = #tpu.pipeline_mode<synchronous>, transform_indices = @transform_2, window_bounds = array<i64: 1, 32>}, {pipeline_mode = #tpu.pipeline_mode<synchronous>, transform_indices = @transform_3, window_bounds = array<i64: 1, 1>}, {transform_indices = @transform_4, window_bounds = array<i64: 1, 1, 2, 128>}]} {
    %c0_i32 = arith.constant 0 : i32
    %0 = arith.cmpi eq, %arg1, %c0_i32 : i32
    %1 = arith.extui %0 : i1 to i32
    %c0_i32_0 = arith.constant 0 : i32
    %2 = arith.cmpi ne, %1, %c0_i32_0 : i32
    scf.if %2 {
      %cst_108 = arith.constant 0.000000e+00 : f32
      %119 = vector.broadcast %cst_108 : f32 to vector<18x18x32xf32>
      %c0_109 = arith.constant 0 : index
      %c0_110 = arith.constant 0 : index
      %c0_111 = arith.constant 0 : index
      %120 = vector.load %arg7[%c0_109, %c0_110, %c0_111] : memref<18x18x32xf32, #tpu.memory_space<vmem>>, vector<18x18x32xf32>
      tpu.vector_store %arg7[%c0_109, %c0_110, %c0_111], %119 {strides = array<i32>} : memref<18x18x32xf32, #tpu.memory_space<vmem>>, vector<18x18x32xf32>,
      %cst_112 = arith.constant 0.000000e+00 : f32
      %121 = vector.broadcast %cst_112 : f32 to vector<16x16x32xf32>
      %c0_113 = arith.constant 0 : index
      %c0_114 = arith.constant 0 : index
      %c0_115 = arith.constant 0 : index
      %122 = vector.load %arg9[%c0_113, %c0_114, %c0_115] : memref<16x16x32xf32, #tpu.memory_space<vmem>>, vector<16x16x32xf32>
      tpu.vector_store %arg9[%c0_113, %c0_114, %c0_115], %121 {strides = array<i32>} : memref<16x16x32xf32, #tpu.memory_space<vmem>>, vector<16x16x32xf32>,
    } else {
    }
    %c0 = arith.constant 0 : index
    %c0_1 = arith.constant 0 : index
    %c0_2 = arith.constant 0 : index
    %3 = vector.load %arg7[%c0, %c0_1, %c0_2] : memref<18x18x32xf32, #tpu.memory_space<vmem>>, vector<8x16x32xf32>
    %4 = vector.shape_cast %3 : vector<8x16x32xf32> to vector<128x32xf32>
    %c0_3 = arith.constant 0 : index
    %c1 = arith.constant 1 : index
    %c0_4 = arith.constant 0 : index
    %5 = vector.load %arg7[%c0_3, %c1, %c0_4] : memref<18x18x32xf32, #tpu.memory_space<vmem>>, vector<8x16x32xf32>
    %6 = vector.shape_cast %5 : vector<8x16x32xf32> to vector<128x32xf32>
    %c0_5 = arith.constant 0 : index
    %c2 = arith.constant 2 : index
    %c0_6 = arith.constant 0 : index
    %7 = vector.load %arg7[%c0_5, %c2, %c0_6] : memref<18x18x32xf32, #tpu.memory_space<vmem>>, vector<8x16x32xf32>
    %8 = vector.shape_cast %7 : vector<8x16x32xf32> to vector<128x32xf32>
    %c1_7 = arith.constant 1 : index
    %c0_8 = arith.constant 0 : index
    %c0_9 = arith.constant 0 : index
    %9 = vector.load %arg7[%c1_7, %c0_8, %c0_9] : memref<18x18x32xf32, #tpu.memory_space<vmem>>, vector<8x16x32xf32>
    %10 = vector.shape_cast %9 : vector<8x16x32xf32> to vector<128x32xf32>
    %c1_10 = arith.constant 1 : index
    %c1_11 = arith.constant 1 : index
    %c0_12 = arith.constant 0 : index
    %11 = vector.load %arg7[%c1_10, %c1_11, %c0_12] : memref<18x18x32xf32, #tpu.memory_space<vmem>>, vector<8x16x32xf32>
    %12 = vector.shape_cast %11 : vector<8x16x32xf32> to vector<128x32xf32>
    %c1_13 = arith.constant 1 : index
    %c2_14 = arith.constant 2 : index
    %c0_15 = arith.constant 0 : index
    %13 = vector.load %arg7[%c1_13, %c2_14, %c0_15] : memref<18x18x32xf32, #tpu.memory_space<vmem>>, vector<8x16x32xf32>
    %14 = vector.shape_cast %13 : vector<8x16x32xf32> to vector<128x32xf32>
    %c2_16 = arith.constant 2 : index
    %c0_17 = arith.constant 0 : index
    %c0_18 = arith.constant 0 : index
    %15 = vector.load %arg7[%c2_16, %c0_17, %c0_18] : memref<18x18x32xf32, #tpu.memory_space<vmem>>, vector<8x16x32xf32>
    %16 = vector.shape_cast %15 : vector<8x16x32xf32> to vector<128x32xf32>
    %c2_19 = arith.constant 2 : index
    %c1_20 = arith.constant 1 : index
    %c0_21 = arith.constant 0 : index
    %17 = vector.load %arg7[%c2_19, %c1_20, %c0_21] : memref<18x18x32xf32, #tpu.memory_space<vmem>>, vector<8x16x32xf32>
    %18 = vector.shape_cast %17 : vector<8x16x32xf32> to vector<128x32xf32>
    %c2_22 = arith.constant 2 : index
    %c2_23 = arith.constant 2 : index
    %c0_24 = arith.constant 0 : index
    %19 = vector.load %arg7[%c2_22, %c2_23, %c0_24] : memref<18x18x32xf32, #tpu.memory_space<vmem>>, vector<8x16x32xf32>
    %20 = vector.shape_cast %19 : vector<8x16x32xf32> to vector<128x32xf32>
    %21 = tpu.concatenate %4, %6, %8, %10, %12, %14, %16, %18, %20 in 1 : vector<128x32xf32>, vector<128x32xf32>, vector<128x32xf32>, vector<128x32xf32>, vector<128x32xf32>, vector<128x32xf32>, vector<128x32xf32>, vector<128x32xf32>, vector<128x32xf32> -> vector<128x288xf32>
    %c0_25 = arith.constant 0 : index
    %c0_26 = arith.constant 0 : index
    %22 = vector.load %arg3[%c0_25, %c0_26] : memref<288x128xf32, #tpu.memory_space<vmem>>, vector<288x128xf32>
    %cst = arith.constant dense<0.000000e+00> : vector<128x128xf32>
    %23 = tpu.matmul %21, %22, %cst {dimension_numbers = #tpu.dot_dimension_numbers<[1], [0], [0], [1], [0, 0, 1, 1], [], []>} : vector<128x288xf32>, vector<288x128xf32>, vector<128x128xf32> -> vector<128x128xf32>
    %c0_27 = arith.constant 0 : index
    %c0_28 = arith.constant 0 : index
    %c0_29 = arith.constant 0 : index
    %c0_30 = arith.constant 0 : index
    %c0_31 = arith.constant 0 : index
    %24 = vector.load %arg2[%c0_27, %c0_28, %c0_29, %c0_30, %c0_31] : memref<1x1x16x16x128xf32, #tpu.memory_space<vmem>>, vector<1x1x8x16x128xf32>
    %25 = vector.shape_cast %24 : vector<1x1x8x16x128xf32> to vector<8x16x128xf32>
    %26 = vector.shape_cast %25 : vector<8x16x128xf32> to vector<128x128xf32>
    %27 = arith.addf %23, %26 : vector<128x128xf32>
    %28 = arith.negf %27 : vector<128x128xf32>
    %29 = math.exp %28 : vector<128x128xf32>
    %cst_32 = arith.constant 1.000000e+00 : f32
    %30 = vector.broadcast %cst_32 : f32 to vector<128x128xf32>
    %31 = arith.addf %30, %29 : vector<128x128xf32>
    %32 = arith.divf %30, %31 : vector<128x128xf32>
    %33 = math.tanh %27 : vector<128x128xf32>
    %34 = vector.extract_strided_slice %32 {offsets = [0, 0], sizes = [128, 32], strides = [1, 1]} : vector<128x128xf32> to vector<128x32xf32>
    %35 = vector.extract_strided_slice %32 {offsets = [0, 32], sizes = [128, 32], strides = [1, 1]} : vector<128x128xf32> to vector<128x32xf32>
    %36 = vector.extract_strided_slice %33 {offsets = [0, 64], sizes = [128, 32], strides = [1, 1]} : vector<128x128xf32> to vector<128x32xf32>
    %37 = vector.extract_strided_slice %32 {offsets = [0, 96], sizes = [128, 32], strides = [1, 1]} : vector<128x128xf32> to vector<128x32xf32>
    %c0_33 = arith.constant 0 : index
    %c0_34 = arith.constant 0 : index
    %c0_35 = arith.constant 0 : index
    %38 = vector.load %arg9[%c0_33, %c0_34, %c0_35] : memref<16x16x32xf32, #tpu.memory_space<vmem>>, vector<8x16x32xf32>
    %39 = vector.shape_cast %38 : vector<8x16x32xf32> to vector<128x32xf32>
    %40 = arith.mulf %35, %39 : vector<128x32xf32>
    %41 = arith.mulf %34, %36 : vector<128x32xf32>
    %42 = arith.addf %40, %41 : vector<128x32xf32>
    %43 = math.tanh %42 : vector<128x32xf32>
    %44 = arith.mulf %37, %43 : vector<128x32xf32>
    %45 = vector.shape_cast %42 : vector<128x32xf32> to vector<8x16x32xf32>
    %c0_36 = arith.constant 0 : index
    %c0_37 = arith.constant 0 : index
    %c0_38 = arith.constant 0 : index
    %46 = vector.load %arg9[%c0_36, %c0_37, %c0_38] : memref<16x16x32xf32, #tpu.memory_space<vmem>>, vector<8x16x32xf32>
    tpu.vector_store %arg9[%c0_36, %c0_37, %c0_38], %45 {strides = array<i32>} : memref<16x16x32xf32, #tpu.memory_space<vmem>>, vector<8x16x32xf32>,
    %47 = vector.shape_cast %44 : vector<128x32xf32> to vector<8x16x32xf32>
    %c0_39 = arith.constant 0 : index
    %c0_40 = arith.constant 0 : index
    %c0_41 = arith.constant 0 : index
    %48 = vector.load %arg8[%c0_39, %c0_40, %c0_41] : memref<16x16x32xf32, #tpu.memory_space<vmem>>, vector<8x16x32xf32>
    tpu.vector_store %arg8[%c0_39, %c0_40, %c0_41], %47 {strides = array<i32>} : memref<16x16x32xf32, #tpu.memory_space<vmem>>, vector<8x16x32xf32>,
    %c0_42 = arith.constant 0 : index
    %c0_43 = arith.constant 0 : index
    %49 = vector.load %arg4[%c0_42, %c0_43] : memref<1x32xf32, #tpu.memory_space<vmem>>, vector<1x32xf32>
    %50 = vector.broadcast %49 : vector<1x32xf32> to vector<128x32xf32>
    %51 = arith.mulf %44, %50 : vector<128x32xf32>
    %cst_44 = arith.constant dense<0.000000e+00> : vector<128xf32>
    %52 = vector.multi_reduction <add>, %51, %cst_44 [1] : vector<128x32xf32> to vector<128xf32>
    %c0_45 = arith.constant 0 : index
    %c0_46 = arith.constant 0 : index
    %53 = vector.load %arg5[%c0_45, %c0_46] : memref<1x1xf32, #tpu.memory_space<vmem>>, vector<1x1xf32>
    %54 = vector.extract %53[0, 0] : f32 from vector<1x1xf32>
    %55 = vector.broadcast %54 : f32 to vector<128xf32>
    %56 = arith.addf %52, %55 : vector<128xf32>
    %c0_47 = arith.constant 0 : index
    %c0_48 = arith.constant 0 : index
    %c0_49 = arith.constant 0 : index
    %c0_50 = arith.constant 0 : index
    %57 = vector.load %arg6[%c0_47, %c0_48, %c0_49, %c0_50] : memref<1x1x2x128xf32, #tpu.memory_space<vmem>>, vector<1x1x1x128xf32>
    %58 = vector.shape_cast %57 : vector<1x1x1x128xf32> to vector<128xf32>
    %59 = vector.shape_cast %56 : vector<128xf32> to vector<1x1x1x128xf32>
    tpu.vector_store %arg6[%c0_47, %c0_48, %c0_49, %c0_50], %59 {strides = array<i32>} : memref<1x1x2x128xf32, #tpu.memory_space<vmem>>, vector<1x1x1x128xf32>,
    %c8 = arith.constant 8 : index
    %c0_51 = arith.constant 0 : index
    %c0_52 = arith.constant 0 : index
    %60 = vector.load %arg7[%c8, %c0_51, %c0_52] : memref<18x18x32xf32, #tpu.memory_space<vmem>>, vector<8x16x32xf32>
    %61 = vector.shape_cast %60 : vector<8x16x32xf32> to vector<128x32xf32>
    %c8_53 = arith.constant 8 : index
    %c1_54 = arith.constant 1 : index
    %c0_55 = arith.constant 0 : index
    %62 = vector.load %arg7[%c8_53, %c1_54, %c0_55] : memref<18x18x32xf32, #tpu.memory_space<vmem>>, vector<8x16x32xf32>
    %63 = vector.shape_cast %62 : vector<8x16x32xf32> to vector<128x32xf32>
    %c8_56 = arith.constant 8 : index
    %c2_57 = arith.constant 2 : index
    %c0_58 = arith.constant 0 : index
    %64 = vector.load %arg7[%c8_56, %c2_57, %c0_58] : memref<18x18x32xf32, #tpu.memory_space<vmem>>, vector<8x16x32xf32>
    %65 = vector.shape_cast %64 : vector<8x16x32xf32> to vector<128x32xf32>
    %c9 = arith.constant 9 : index
    %c0_59 = arith.constant 0 : index
    %c0_60 = arith.constant 0 : index
    %66 = vector.load %arg7[%c9, %c0_59, %c0_60] : memref<18x18x32xf32, #tpu.memory_space<vmem>>, vector<8x16x32xf32>
    %67 = vector.shape_cast %66 : vector<8x16x32xf32> to vector<128x32xf32>
    %c9_61 = arith.constant 9 : index
    %c1_62 = arith.constant 1 : index
    %c0_63 = arith.constant 0 : index
    %68 = vector.load %arg7[%c9_61, %c1_62, %c0_63] : memref<18x18x32xf32, #tpu.memory_space<vmem>>, vector<8x16x32xf32>
    %69 = vector.shape_cast %68 : vector<8x16x32xf32> to vector<128x32xf32>
    %c9_64 = arith.constant 9 : index
    %c2_65 = arith.constant 2 : index
    %c0_66 = arith.constant 0 : index
    %70 = vector.load %arg7[%c9_64, %c2_65, %c0_66] : memref<18x18x32xf32, #tpu.memory_space<vmem>>, vector<8x16x32xf32>
    %71 = vector.shape_cast %70 : vector<8x16x32xf32> to vector<128x32xf32>
    %c10 = arith.constant 10 : index
    %c0_67 = arith.constant 0 : index
    %c0_68 = arith.constant 0 : index
    %72 = vector.load %arg7[%c10, %c0_67, %c0_68] : memref<18x18x32xf32, #tpu.memory_space<vmem>>, vector<8x16x32xf32>
    %73 = vector.shape_cast %72 : vector<8x16x32xf32> to vector<128x32xf32>
    %c10_69 = arith.constant 10 : index
    %c1_70 = arith.constant 1 : index
    %c0_71 = arith.constant 0 : index
    %74 = vector.load %arg7[%c10_69, %c1_70, %c0_71] : memref<18x18x32xf32, #tpu.memory_space<vmem>>, vector<8x16x32xf32>
    %75 = vector.shape_cast %74 : vector<8x16x32xf32> to vector<128x32xf32>
    %c10_72 = arith.constant 10 : index
    %c2_73 = arith.constant 2 : index
    %c0_74 = arith.constant 0 : index
    %76 = vector.load %arg7[%c10_72, %c2_73, %c0_74] : memref<18x18x32xf32, #tpu.memory_space<vmem>>, vector<8x16x32xf32>
    %77 = vector.shape_cast %76 : vector<8x16x32xf32> to vector<128x32xf32>
    %78 = tpu.concatenate %61, %63, %65, %67, %69, %71, %73, %75, %77 in 1 : vector<128x32xf32>, vector<128x32xf32>, vector<128x32xf32>, vector<128x32xf32>, vector<128x32xf32>, vector<128x32xf32>, vector<128x32xf32>, vector<128x32xf32>, vector<128x32xf32> -> vector<128x288xf32>
    %c0_75 = arith.constant 0 : index
    %c0_76 = arith.constant 0 : index
    %79 = vector.load %arg3[%c0_75, %c0_76] : memref<288x128xf32, #tpu.memory_space<vmem>>, vector<288x128xf32>
    %cst_77 = arith.constant dense<0.000000e+00> : vector<128x128xf32>
    %80 = tpu.matmul %78, %79, %cst_77 {dimension_numbers = #tpu.dot_dimension_numbers<[1], [0], [0], [1], [0, 0, 1, 1], [], []>} : vector<128x288xf32>, vector<288x128xf32>, vector<128x128xf32> -> vector<128x128xf32>
    %c0_78 = arith.constant 0 : index
    %c0_79 = arith.constant 0 : index
    %c8_80 = arith.constant 8 : index
    %c0_81 = arith.constant 0 : index
    %c0_82 = arith.constant 0 : index
    %81 = vector.load %arg2[%c0_78, %c0_79, %c8_80, %c0_81, %c0_82] : memref<1x1x16x16x128xf32, #tpu.memory_space<vmem>>, vector<1x1x8x16x128xf32>
    %82 = vector.shape_cast %81 : vector<1x1x8x16x128xf32> to vector<8x16x128xf32>
    %83 = vector.shape_cast %82 : vector<8x16x128xf32> to vector<128x128xf32>
    %84 = arith.addf %80, %83 : vector<128x128xf32>
    %85 = arith.negf %84 : vector<128x128xf32>
    %86 = math.exp %85 : vector<128x128xf32>
    %cst_83 = arith.constant 1.000000e+00 : f32
    %87 = vector.broadcast %cst_83 : f32 to vector<128x128xf32>
    %88 = arith.addf %87, %86 : vector<128x128xf32>
    %89 = arith.divf %87, %88 : vector<128x128xf32>
    %90 = math.tanh %84 : vector<128x128xf32>
    %91 = vector.extract_strided_slice %89 {offsets = [0, 0], sizes = [128, 32], strides = [1, 1]} : vector<128x128xf32> to vector<128x32xf32>
    %92 = vector.extract_strided_slice %89 {offsets = [0, 32], sizes = [128, 32], strides = [1, 1]} : vector<128x128xf32> to vector<128x32xf32>
    %93 = vector.extract_strided_slice %90 {offsets = [0, 64], sizes = [128, 32], strides = [1, 1]} : vector<128x128xf32> to vector<128x32xf32>
    %94 = vector.extract_strided_slice %89 {offsets = [0, 96], sizes = [128, 32], strides = [1, 1]} : vector<128x128xf32> to vector<128x32xf32>
    %c8_84 = arith.constant 8 : index
    %c0_85 = arith.constant 0 : index
    %c0_86 = arith.constant 0 : index
    %95 = vector.load %arg9[%c8_84, %c0_85, %c0_86] : memref<16x16x32xf32, #tpu.memory_space<vmem>>, vector<8x16x32xf32>
    %96 = vector.shape_cast %95 : vector<8x16x32xf32> to vector<128x32xf32>
    %97 = arith.mulf %92, %96 : vector<128x32xf32>
    %98 = arith.mulf %91, %93 : vector<128x32xf32>
    %99 = arith.addf %97, %98 : vector<128x32xf32>
    %100 = math.tanh %99 : vector<128x32xf32>
    %101 = arith.mulf %94, %100 : vector<128x32xf32>
    %102 = vector.shape_cast %99 : vector<128x32xf32> to vector<8x16x32xf32>
    %c8_87 = arith.constant 8 : index
    %c0_88 = arith.constant 0 : index
    %c0_89 = arith.constant 0 : index
    %103 = vector.load %arg9[%c8_87, %c0_88, %c0_89] : memref<16x16x32xf32, #tpu.memory_space<vmem>>, vector<8x16x32xf32>
    tpu.vector_store %arg9[%c8_87, %c0_88, %c0_89], %102 {strides = array<i32>} : memref<16x16x32xf32, #tpu.memory_space<vmem>>, vector<8x16x32xf32>,
    %104 = vector.shape_cast %101 : vector<128x32xf32> to vector<8x16x32xf32>
    %c8_90 = arith.constant 8 : index
    %c0_91 = arith.constant 0 : index
    %c0_92 = arith.constant 0 : index
    %105 = vector.load %arg8[%c8_90, %c0_91, %c0_92] : memref<16x16x32xf32, #tpu.memory_space<vmem>>, vector<8x16x32xf32>
    tpu.vector_store %arg8[%c8_90, %c0_91, %c0_92], %104 {strides = array<i32>} : memref<16x16x32xf32, #tpu.memory_space<vmem>>, vector<8x16x32xf32>,
    %c0_93 = arith.constant 0 : index
    %c0_94 = arith.constant 0 : index
    %106 = vector.load %arg4[%c0_93, %c0_94] : memref<1x32xf32, #tpu.memory_space<vmem>>, vector<1x32xf32>
    %107 = vector.broadcast %106 : vector<1x32xf32> to vector<128x32xf32>
    %108 = arith.mulf %101, %107 : vector<128x32xf32>
    %cst_95 = arith.constant dense<0.000000e+00> : vector<128xf32>
    %109 = vector.multi_reduction <add>, %108, %cst_95 [1] : vector<128x32xf32> to vector<128xf32>
    %c0_96 = arith.constant 0 : index
    %c0_97 = arith.constant 0 : index
    %110 = vector.load %arg5[%c0_96, %c0_97] : memref<1x1xf32, #tpu.memory_space<vmem>>, vector<1x1xf32>
    %111 = vector.extract %110[0, 0] : f32 from vector<1x1xf32>
    %112 = vector.broadcast %111 : f32 to vector<128xf32>
    %113 = arith.addf %109, %112 : vector<128xf32>
    %c0_98 = arith.constant 0 : index
    %c0_99 = arith.constant 0 : index
    %c1_100 = arith.constant 1 : index
    %c0_101 = arith.constant 0 : index
    %114 = vector.load %arg6[%c0_98, %c0_99, %c1_100, %c0_101] : memref<1x1x2x128xf32, #tpu.memory_space<vmem>>, vector<1x1x1x128xf32>
    %115 = vector.shape_cast %114 : vector<1x1x1x128xf32> to vector<128xf32>
    %116 = vector.shape_cast %113 : vector<128xf32> to vector<1x1x1x128xf32>
    tpu.vector_store %arg6[%c0_98, %c0_99, %c1_100, %c0_101], %116 {strides = array<i32>} : memref<1x1x2x128xf32, #tpu.memory_space<vmem>>, vector<1x1x1x128xf32>,
    %c0_102 = arith.constant 0 : index
    %c0_103 = arith.constant 0 : index
    %c0_104 = arith.constant 0 : index
    %117 = vector.load %arg8[%c0_102, %c0_103, %c0_104] : memref<16x16x32xf32, #tpu.memory_space<vmem>>, vector<16x16x32xf32>
    %c1_105 = arith.constant 1 : index
    %c1_106 = arith.constant 1 : index
    %c0_107 = arith.constant 0 : index
    %118 = vector.load %arg7[%c1_105, %c1_106, %c0_107] : memref<18x18x32xf32, #tpu.memory_space<vmem>>, vector<16x16x32xf32>
    tpu.vector_store %arg7[%c1_105, %c1_106, %c0_107], %117 {strides = array<i32>} : memref<18x18x32xf32, #tpu.memory_space<vmem>>, vector<16x16x32xf32>,
    return
  }
  func.func @transform_0(%arg0: i32, %arg1: i32) -> (i32, i32, i32, i32, i32) {
    %c0_i32 = arith.constant 0 : i32
    %c0_i32_0 = arith.constant 0 : i32
    %c0_i32_1 = arith.constant 0 : i32
    %c0_i32_2 = arith.constant 0 : i32
    return %arg0, %arg1, %c0_i32, %c0_i32_0, %c0_i32_1 : i32, i32, i32, i32, i32
  }
  func.func @transform_1(%arg0: i32, %arg1: i32) -> (i32, i32) {
    %c0_i32 = arith.constant 0 : i32
    %c0_i32_0 = arith.constant 0 : i32
    %c0_i32_1 = arith.constant 0 : i32
    return %c0_i32, %c0_i32_0 : i32, i32
  }
  func.func @transform_2(%arg0: i32, %arg1: i32) -> (i32, i32) {
    %c0_i32 = arith.constant 0 : i32
    %c0_i32_0 = arith.constant 0 : i32
    %c0_i32_1 = arith.constant 0 : i32
    return %c0_i32, %c0_i32_0 : i32, i32
  }
  func.func @transform_3(%arg0: i32, %arg1: i32) -> (i32, i32) {
    %c0_i32 = arith.constant 0 : i32
    %c0_i32_0 = arith.constant 0 : i32
    %c0_i32_1 = arith.constant 0 : i32
    return %c0_i32, %c0_i32_0 : i32, i32
  }
  func.func @transform_4(%arg0: i32, %arg1: i32) -> (i32, i32, i32, i32) {
    %c0_i32 = arith.constant 0 : i32
    %c0_i32_0 = arith.constant 0 : i32
    %c0_i32_1 = arith.constant 0 : i32
    return %arg0, %arg1, %c0_i32, %c0_i32_0 : i32, i32, i32, i32
  }
}

</mosaic_0001>

<bundles_post_ra>
// kernel: _lambda_.1
= control target key start
LH: loop header
LB: loop body
LE: loop exit
PB: predicated region body
PF: predicated region fallthrough
CT: control target
= control target key end

     0   :  { %s5603_s17 = smov 0   ;;  %s5605_s18 = smov 0   ;;  %s7773_s0 = inlined_call_operand.vmem [shape: f32[2,8,16,16,128], index: 0, kind: input, shape index: {}]   ;;  %s7774_s1 = inlined_call_operand.vmem [shape: f32[288,128], index: 1, kind: input, shape index: {}]   ;;  %s7775_s2 = inlined_call_operand.vmem [shape: f32[1,32], index: 2, kind: input, shape index: {}]   ;;  %s7776_s3 = inlined_call_operand.<no memory space> [shape: f32[1,1], index: 3, kind: input, shape index: {}]   ;;  %s7777_s4 = inlined_call_operand.vmem [shape: f32[2,8,2,128], index: 4, kind: output, shape index: {}]  }
   0x1   :  { %v9_v0 = vstv %s7776_s3  ;;  %s5607_s19 = smov 0   ;;  %s5609_s20 = smov 0  }
   0x2   :  { %10 = vst [vmem:[#allocation5] sm:$0x1] %v9_v0  ;;  %s5611_s21 = smov 0  }
   0x3 LB: > { %s25_s3 = sadd.s32 1, %s5561_s19  ;;  %s28_s22 = sadd.s32 1, %s5565_s20  ;;  %s5569_s21 = sphi %s5611_s21, %s16_s21   ;;  %s5565_s20 = sphi %s5609_s20, %s7841_s20   ;;  %s5561_s19 = sphi %s5607_s19, %s7840_s19   ;;  %s5557_s18 = sphi %s5605_s18, %s7839_s18   ;;  %s5553_s17 = sphi %s5603_s17, %s7838_s17  }
   0x4   : > { %p26_p0 = scmp.ge.s32.totalorder %s25_s3, 8  ;;  %p4308_p1 = scmp.ge.s32.totalorder %s5569_s21, 1 }
   0x5   : > { %p184_p2 = scmp.lt.s32.totalorder %s5569_s21, 17 }
   0x6   : > { %s7843_s3 = smov (%p26_p0, %s25_s3), 0  ;;  %s7845_s22 = smov (!%p26_p0, %s28_s22), %s5565_s20 }
   0x7   : > { %p185_p3 = pnand %p4308_p1, %p184_p2  ;;  %p30_p4 = scmp.ge.s32.totalorder %s7845_s22, 2 }
   0x9   : > { %s7847_s22 = smov (%p30_p4, %s7845_s22), 0  ;;  %188 = sbr.rel (%p185_p3) target bundleno = 1370 (0x55a), region = 36 }
  0x10   : > { %p217_p5 = scmp.lt.s32.totalorder %s5557_s18, 1  ;;  %p219_p6 = scmp.lt.s32.totalorder %s5553_s17, 7 }
  0x11   : > { %p4314_p7 = scmp.ne.s32.totalorder %s5553_s17, 0 }
  0x12   : > { %s7849_s18 = smov (!%p217_p5, %s5557_s18), 1  ;;  %vm238_vm0 = vcmask (!%p4314_p7), 261120   ;;  %vm241_vm1 = vcmask (!%p4314_p7), 254976   ;;  %v5571_v1 = vmov (!%p4314_p7), 0.0  }
  0x13   : > { %s220_s23 = scalar_select %p219_p6, %s5553_s17, 7 }
  0x14   : > { %s4310_s24 = sshll.u32 %s7849_s18, 8  ;;  %s4312_s25 = sshll.u32 %s7849_s18, 3  ;;  %239 = vst.msk [vmem:[#allocation2] sm:$0xff] (!%p4314_p7), %vm238_vm0, %v5571_v1  ;;  %240 = vst.msk [vmem:[#allocation2 + $0x8] sm:$0xff] (!%p4314_p7), %vm238_vm0, %v5571_v1 }
  0x15   : > { %s4309_s26 = sshll.u32 %s220_s23, 5  ;;  %s231_s27 = sadd.s32 %s4312_s25, %s220_s23  ;;  %243 = vst.msk [vmem:[#allocation2 + $0x18] sm:$0xff] (!%p4314_p7), %vm238_vm0, %v5571_v1  ;;  %244 = vst.msk [vmem:[#allocation2 + $0x20] sm:$0xff] (!%p4314_p7), %vm238_vm0, %v5571_v1 }
  0x16   : > { %s223_s28 = sadd.s32 %s4310_s24, %s4309_s26  ;;  %s4313_s29 = sshll.u32 %s231_s27, 1  ;;  %246 = vst.msk [vmem:[#allocation2 + $0x30] sm:$0xff] (!%p4314_p7), %vm238_vm0, %v5571_v1  ;;  %247 = vst.msk [vmem:[#allocation2 + $0x38] sm:$0xff] (!%p4314_p7), %vm238_vm0, %v5571_v1 }
  0x17   : > { %s4311_s30 = sshll.u32 %s223_s28, 3  ;;  %s5640_s7 = scalar_lea.vmem %s7777_s4, %s4313_s29  ;;  %249 = vst.msk [vmem:[#allocation2 + $0x48] sm:$0xff] (!%p4314_p7), %vm238_vm0, %v5571_v1  ;;  %250 = vst.msk [vmem:[#allocation2 + $0x50] sm:$0xff] (!%p4314_p7), %vm238_vm0, %v5571_v1 }
  0x18   : > { %s5645_s10 = scalar_lea.vmem %s7773_s0, %s4311_s30  ;;  %237 = sbr.rel (%p4314_p7) target bundleno = 63 (0x3f), region = 40  ;;  %252 = vst.msk [vmem:[#allocation2 + $0x60] sm:$0xff] (!%p4314_p7), %vm238_vm0, %v5571_v1  ;;  %253 = vst.msk [vmem:[#allocation2 + $0x68] sm:$0xff] (!%p4314_p7), %vm238_vm0, %v5571_v1 }
  0x19   : > { %255 = vst.msk [vmem:[#allocation2 + $0x78] sm:$0xff] (!%p4314_p7), %vm238_vm0, %v5571_v1  ;;  %256 = vst.msk [vmem:[#allocation2 + $0x80] sm:$0xff] (!%p4314_p7), %vm238_vm0, %v5571_v1 }
  0x1a   : > { %258 = vst.msk [vmem:[#allocation2 + $0x90] sm:$0xff] (!%p4314_p7), %vm238_vm0, %v5571_v1  ;;  %259 = vst.msk [vmem:[#allocation2 + $0x98] sm:$0xff] (!%p4314_p7), %vm238_vm0, %v5571_v1 }
  0x1b   : > { %261 = vst.msk [vmem:[#allocation2 + $0xa8] sm:$0xff] (!%p4314_p7), %vm238_vm0, %v5571_v1  ;;  %262 = vst.msk [vmem:[#allocation2 + $0xb0] sm:$0xff] (!%p4314_p7), %vm238_vm0, %v5571_v1 }
  0x1c   : > { %264 = vst.msk [vmem:[#allocation2 + $0xc0] sm:$0xff] (!%p4314_p7), %vm238_vm0, %v5571_v1  ;;  %265 = vst.msk [vmem:[#allocation2 + $0xc8] sm:$0xff] (!%p4314_p7), %vm238_vm0, %v5571_v1 }
  0x1d   : > { %267 = vst.msk [vmem:[#allocation2 + $0xd8] sm:$0xff] (!%p4314_p7), %vm238_vm0, %v5571_v1  ;;  %268 = vst.msk [vmem:[#allocation2 + $0xe0] sm:$0xff] (!%p4314_p7), %vm238_vm0, %v5571_v1 }
  0x1e   : > { %270 = vst.msk [vmem:[#allocation2 + $0xf0] sm:$0xff] (!%p4314_p7), %vm238_vm0, %v5571_v1  ;;  %271 = vst.msk [vmem:[#allocation2 + $0xf8] sm:$0xff] (!%p4314_p7), %vm238_vm0, %v5571_v1 }
  0x1f   : > { %273 = vst.msk [vmem:[#allocation2 + $0x108] sm:$0xff] %vm238_vm0, %v5571_v1  ;;  %274 = vst.msk [vmem:[#allocation2 + $0x110] sm:$0xff] %vm238_vm0, %v5571_v1 }
  0x20   : > { %276 = vst.msk [vmem:[#allocation2 + $0x120] sm:$0xff] %vm238_vm0, %v5571_v1  ;;  %277 = vst.msk [vmem:[#allocation2 + $0x128] sm:$0xff] %vm238_vm0, %v5571_v1 }
  0x21   : > { %279 = vst.msk [vmem:[#allocation2 + $0x138] sm:$0xff] %vm238_vm0, %v5571_v1  ;;  %280 = vst.msk [vmem:[#allocation2 + $0x140] sm:$0xff] %vm238_vm0, %v5571_v1 }
  0x22   : > { %282 = vst.msk [vmem:[#allocation2 + $0x150] sm:$0xff] %vm238_vm0, %v5571_v1  ;;  %283 = vst.msk [vmem:[#allocation2 + $0x158] sm:$0xff] %vm238_vm0, %v5571_v1 }
  0x23   : > { %285 = vst.msk [vmem:[#allocation2 + $0x168] sm:$0xff] %vm238_vm0, %v5571_v1  ;;  %286 = vst.msk [vmem:[#allocation2 + $0x170] sm:$0xff] %vm238_vm0, %v5571_v1 }
  0x24   : > { %288 = vst.msk [vmem:[#allocation2 + $0x180] sm:$0xff] %vm238_vm0, %v5571_v1  ;;  %289 = vst.msk [vmem:[#allocation2 + $0x188] sm:$0xff] %vm238_vm0, %v5571_v1 }
  0x25   : > { %291 = vst.msk [vmem:[#allocation2 + $0x198] sm:$0xff] %vm238_vm0, %v5571_v1  ;;  %292 = vst.msk [vmem:[#allocation2 + $0x1a0] sm:$0xff] %vm238_vm0, %v5571_v1 }
  0x26   : > { %294 = vst.msk [vmem:[#allocation4] sm:$0xff] %vm238_vm0, %v5571_v1  ;;  %295 = vst.msk [vmem:[#allocation4 + $0x8] sm:$0xff] %vm238_vm0, %v5571_v1 }
  0x27   : > { %296 = vst.msk [vmem:[#allocation4 + $0x10] sm:$0xff] %vm238_vm0, %v5571_v1  ;;  %297 = vst.msk [vmem:[#allocation4 + $0x18] sm:$0xff] %vm238_vm0, %v5571_v1 }
  0x28   : > { %298 = vst.msk [vmem:[#allocation4 + $0x20] sm:$0xff] %vm238_vm0, %v5571_v1  ;;  %299 = vst.msk [vmem:[#allocation4 + $0x28] sm:$0xff] %vm238_vm0, %v5571_v1 }
  0x29   : > { %300 = vst.msk [vmem:[#allocation4 + $0x30] sm:$0xff] %vm238_vm0, %v5571_v1  ;;  %301 = vst.msk [vmem:[#allocation4 + $0x38] sm:$0xff] %vm238_vm0, %v5571_v1 }
  0x2a   : > { %302 = vst.msk [vmem:[#allocation4 + $0x40] sm:$0xff] %vm238_vm0, %v5571_v1  ;;  %303 = vst.msk [vmem:[#allocation4 + $0x48] sm:$0xff] %vm238_vm0, %v5571_v1 }
  0x2b   : > { %304 = vst.msk [vmem:[#allocation4 + $0x50] sm:$0xff] %vm238_vm0, %v5571_v1  ;;  %305 = vst.msk [vmem:[#allocation4 + $0x58] sm:$0xff] %vm238_vm0, %v5571_v1 }
  0x2c   : > { %306 = vst.msk [vmem:[#allocation4 + $0x60] sm:$0xff] %vm238_vm0, %v5571_v1  ;;  %307 = vst.msk [vmem:[#allocation4 + $0x68] sm:$0xff] %vm238_vm0, %v5571_v1 }
  0x2d   : > { %308 = vst.msk [vmem:[#allocation4 + $0x70] sm:$0xff] %vm238_vm0, %v5571_v1  ;;  %309 = vst.msk [vmem:[#allocation4 + $0x78] sm:$0xff] %vm238_vm0, %v5571_v1 }
  0x2e   : > { %310 = vst.msk [vmem:[#allocation4 + $0x80] sm:$0xff] %vm238_vm0, %v5571_v1  ;;  %311 = vst.msk [vmem:[#allocation4 + $0x88] sm:$0xff] %vm238_vm0, %v5571_v1 }
  0x2f   : > { %312 = vst.msk [vmem:[#allocation4 + $0x90] sm:$0xff] %vm238_vm0, %v5571_v1  ;;  %313 = vst.msk [vmem:[#allocation4 + $0x98] sm:$0xff] %vm238_vm0, %v5571_v1 }
  0x30   : > { %314 = vst.msk [vmem:[#allocation4 + $0xa0] sm:$0xff] %vm238_vm0, %v5571_v1  ;;  %315 = vst.msk [vmem:[#allocation4 + $0xa8] sm:$0xff] %vm238_vm0, %v5571_v1 }
  0x31   : > { %316 = vst.msk [vmem:[#allocation4 + $0xb0] sm:$0xff] %vm238_vm0, %v5571_v1  ;;  %317 = vst.msk [vmem:[#allocation4 + $0xb8] sm:$0xff] %vm238_vm0, %v5571_v1 }
  0x32   : > { %318 = vst.msk [vmem:[#allocation4 + $0xc0] sm:$0xff] %vm238_vm0, %v5571_v1  ;;  %319 = vst.msk [vmem:[#allocation4 + $0xc8] sm:$0xff] %vm238_vm0, %v5571_v1 }
  0x33   : > { %320 = vst.msk [vmem:[#allocation4 + $0xd0] sm:$0xff] %vm238_vm0, %v5571_v1  ;;  %321 = vst.msk [vmem:[#allocation4 + $0xd8] sm:$0xff] %vm238_vm0, %v5571_v1 }
  0x34   : > { %322 = vst.msk [vmem:[#allocation4 + $0xe0] sm:$0xff] %vm238_vm0, %v5571_v1  ;;  %323 = vst.msk [vmem:[#allocation4 + $0xe8] sm:$0xff] %vm238_vm0, %v5571_v1 }
  0x35   : > { %324 = vst.msk [vmem:[#allocation4 + $0xf0] sm:$0xff] %vm238_vm0, %v5571_v1  ;;  %325 = vst.msk [vmem:[#allocation4 + $0xf8] sm:$0xff] %vm238_vm0, %v5571_v1 }
  0x36   : > { %242 = vst.msk [vmem:[#allocation2 + $0x10] sm:$0x3] %vm241_vm1, %v5571_v1  ;;  %245 = vst.msk [vmem:[#allocation2 + $0x28] sm:$0x3] %vm241_vm1, %v5571_v1 }
  0x37   : > { %248 = vst.msk [vmem:[#allocation2 + $0x40] sm:$0x3] %vm241_vm1, %v5571_v1  ;;  %251 = vst.msk [vmem:[#allocation2 + $0x58] sm:$0x3] %vm241_vm1, %v5571_v1 }
  0x38   : > { %254 = vst.msk [vmem:[#allocation2 + $0x70] sm:$0x3] %vm241_vm1, %v5571_v1  ;;  %257 = vst.msk [vmem:[#allocation2 + $0x88] sm:$0x3] %vm241_vm1, %v5571_v1 }
  0x39   : > { %260 = vst.msk [vmem:[#allocation2 + $0xa0] sm:$0x3] %vm241_vm1, %v5571_v1  ;;  %263 = vst.msk [vmem:[#allocation2 + $0xb8] sm:$0x3] %vm241_vm1, %v5571_v1 }
  0x3a   : > { %266 = vst.msk [vmem:[#allocation2 + $0xd0] sm:$0x3] %vm241_vm1, %v5571_v1  ;;  %269 = vst.msk [vmem:[#allocation2 + $0xe8] sm:$0x3] %vm241_vm1, %v5571_v1 }
  0x3b   : > { %272 = vst.msk [vmem:[#allocation2 + $0x100] sm:$0x3] %vm241_vm1, %v5571_v1  ;;  %275 = vst.msk [vmem:[#allocation2 + $0x118] sm:$0x3] %vm241_vm1, %v5571_v1 }
  0x3c   : > { %278 = vst.msk [vmem:[#allocation2 + $0x130] sm:$0x3] %vm241_vm1, %v5571_v1  ;;  %281 = vst.msk [vmem:[#allocation2 + $0x148] sm:$0x3] %vm241_vm1, %v5571_v1 }
  0x3d   : > { %284 = vst.msk [vmem:[#allocation2 + $0x160] sm:$0x3] %vm241_vm1, %v5571_v1  ;;  %287 = vst.msk [vmem:[#allocation2 + $0x178] sm:$0x3] %vm241_vm1, %v5571_v1 }
  0x3e   : > { %290 = vst.msk [vmem:[#allocation2 + $0x190] sm:$0x3] %vm241_vm1, %v5571_v1  ;;  %293 = vst.msk [vmem:[#allocation2 + $0x1a8] sm:$0x3] %vm241_vm1, %v5571_v1 }
  0x3f PF: > { %v346_v2 = vld [vmem:[#allocation2 + $0x31] sm:$0xff]  ;;  %v347_v3 = vld [vmem:[#allocation2 + $0x39] sm:$0xff]  ;;  %v342_v4 = vld [vmem:[#allocation2 + $0x1] sm:$0xff]  ;;  %s5572_s11 = smov 32   ;;  %s5573_s12 = smov 64   ;;  %vm856_vm2 = vcmask 261120  }
  0x40   : > { %v5820_v5 = vpack.i.bf16 %v347_v3, %v346_v2  ;;  %v343_v6 = vld [vmem:[#allocation2 + $0x9] sm:$0xff]  ;;  %v349_v8 = vld [vmem:[#allocation2 + $0x51] sm:$0xff]  ;;  %v344_v10 = vld [vmem:[#allocation2 + $0x19] sm:$0xff]  ;;  %s5574_s13 = smov 96   ;;  %vm873_vm3 = vcmask 523264   ;;  %vm890_vm4 = vcmask 785408  }
  0x41   : > { %v348_v7 = vld [vmem:[#allocation2 + $0x49] sm:$0xff]  ;;  %v4795_v9 = vpack.i.bf16 %v343_v6, %v342_v4  ;;  %v345_v11 = vld [vmem:[#allocation2 + $0x21] sm:$0xff]  ;;  %v352_v14 = vld [vmem:[#allocation2 + $0x79] sm:$0xff]  ;;  %vm2152_vm5 = vcmask 130112   ;;  %vm2159_vm6 = vcmask 195712   ;;  %vm2166_vm7 = vcmask 261312  }
  0x42   : > { %4806 = vrot.lane.b32.xlu1 %v5820_v5, %s5572_s11  ;;  %v5824_v12 = vpack.i.bf16 %v349_v8, %v348_v7  ;;  %v4800_v13 = vpack.i.bf16 %v345_v11, %v344_v10  ;;  %v353_v15 = vld [vmem:[#allocation2 + $0x81] sm:$0xff]  ;;  %v351_v17 = vld [vmem:[#allocation2 + $0x69] sm:$0xff]  ;;  %v357_v21 = vld [vmem:[#allocation2 + $0xb1] sm:$0xff]  ;;  %vm2173_vm8 = vcmask 326912   ;;  %vm2180_vm9 = vcmask 392512  }
  0x43   : > { %4796 = vrot.lane.b32.xlu0 %v4795_v9, %s5572_s11  ;;  %v350_v16 = vld [vmem:[#allocation2 + $0x61] sm:$0xff]  ;;  %v5829_v18 = vpack.i.bf16 %v353_v15, %v352_v14  ;;  %v356_v20 = vld [vmem:[#allocation2 + $0xa9] sm:$0xff]  ;;  %v354_v22 = vld [vmem:[#allocation2 + $0x91] sm:$0xff]  ;;  %vm2187_vm10 = vcmask 458112   ;;  %vm2194_vm11 = vcmask 523712   ;;  %vm2201_vm12 = vcmask 589312  }
  0x44   : > { %v5832_v19 = vpack.i.bf16 %v351_v17, %v350_v16  ;;  %v355_v23 = vld [vmem:[#allocation2 + $0x99] sm:$0xff]  ;;  %v5836_v24 = vpack.i.bf16 %v357_v21, %v356_v20  ;;  %v361_v27 = vld [vmem:[#allocation2 + $0x22] sm:$0xff]  ;;  %v359_v29 = vld [vmem:[#allocation2 + $0xa] sm:$0xff]  ;;  %vm2208_vm13 = vcmask 654912   ;;  %vm2215_vm14 = vcmask 720512  }
  0x45   : > { %v5840_v25 = vpack.i.bf16 %v355_v23, %v354_v22  ;;  %v360_v26 = vld [vmem:[#allocation2 + $0x1a] sm:$0xff]  ;;  %v358_v28 = vld [vmem:[#allocation2 + $0x2] sm:$0xff]  ;;  %v364_v32 = vld [vmem:[#allocation2 + $0x4a] sm:$0xff]  ;;  %vm2222_vm15 = vcmask 786112   ;;  %vm2229_vm0 = vcmask 851712   ;;  %vm2236_vm1 = vcmask 917312  }
  0x46   : > { %4811 = vrot.lane.b32.xlu1 %v5824_v12, %s5572_s11  ;;  %v5844_v30 = vpack.i.bf16 %v361_v27, %v360_v26  ;;  %v4835_v31 = vpack.i.bf16 %v359_v29, %v358_v28  ;;  %v365_v33 = vld [vmem:[#allocation2 + $0x52] sm:$0xff]  ;;  %v363_v35 = vld [vmem:[#allocation2 + $0x3a] sm:$0xff]  ;;  %v369_v39 = vld [vmem:[#allocation2 + $0x82] sm:$0xff] }
  0x47   : > { %4801 = vrot.lane.b32.xlu0 %v4800_v13, %s5572_s11  ;;  %v362_v34 = vld [vmem:[#allocation2 + $0x32] sm:$0xff]  ;;  %v5850_v36 = vpack.i.bf16 %v365_v33, %v364_v32  ;;  %v368_v38 = vld [vmem:[#allocation2 + $0x7a] sm:$0xff]  ;;  %v366_v40 = vld [vmem:[#allocation2 + $0x62] sm:$0xff] }
  0x48   : > { %v5853_v37 = vpack.i.bf16 %v363_v35, %v362_v34  ;;  %v367_v41 = vld [vmem:[#allocation2 + $0x6a] sm:$0xff]  ;;  %v5857_v42 = vpack.i.bf16 %v369_v39, %v368_v38  ;;  %v373_v45 = vld [vmem:[#allocation2 + $0xb2] sm:$0xff]  ;;  %v371_v47 = vld [vmem:[#allocation2 + $0x9a] sm:$0xff] }
  0x49   : > { %v5861_v43 = vpack.i.bf16 %v367_v41, %v366_v40  ;;  %v372_v44 = vld [vmem:[#allocation2 + $0xaa] sm:$0xff]  ;;  %v370_v46 = vld [vmem:[#allocation2 + $0x92] sm:$0xff]  ;;  %v376_v53 = vld [vmem:[#allocation2 + $0x20] sm:$0xff] }
  0x4a   : > { %4821 = vrot.lane.b32.xlu1 %v5829_v18, %s5572_s11  ;;  %v5865_v48 = vpack.i.bf16 %v373_v45, %v372_v44  ;;  %v5869_v49 = vpack.i.bf16 %v371_v47, %v370_v46  ;;  %v377_v50 = vld [vmem:[#allocation2 + $0x30] sm:$0xff]  ;;  %v378_v51 = vld [vmem:[#allocation2 + $0x38] sm:$0xff]  ;;  %v381_v56 = vld [vmem:[#allocation2 + $0x60] sm:$0xff] }
  0x4b   : > { %4816 = vrot.lane.b32.xlu0 %v5832_v19, %s5572_s11  ;;  %v375_v52 = vld [vmem:[#allocation2 + $0x18] sm:$0xff]  ;;  %v5873_v54 = vpack.i.bf16 %v378_v51, %v377_v50  ;;  %v382_v57 = vld [vmem:[#allocation2 + $0x68] sm:$0xff]  ;;  %v380_v59 = vld [vmem:[#allocation2 + $0x50] sm:$0xff] }
  0x4c   : > { %v4875_v55 = vpack.i.bf16 %v376_v53, %v375_v52  ;;  %v379_v58 = vld [vmem:[#allocation2 + $0x48] sm:$0xff]  ;;  %v5879_v60 = vpack.i.bf16 %v382_v57, %v381_v56  ;;  %v385_v62 = vld [vmem:[#allocation2 + $0x90] sm:$0xff]  ;;  %v386_v63 = vld [vmem:[#allocation2 + $0x98] sm:$0xff] }
  0x4d   : > { %v5882_v61 = vpack.i.bf16 %v380_v59, %v379_v58  ;;  %v383_v0 = vld [vmem:[#allocation2 + $0x78] sm:$0xff]  ;;  %v384_v1 = vld [vmem:[#allocation2 + $0x80] sm:$0xff]  ;;  %v5886_v2 = vpack.i.bf16 %v386_v63, %v385_v62  ;;  %v390_v4 = vld [vmem:[#allocation2 + $0xc8] sm:$0xff] }
  0x4e   : > { %4831 = vrot.lane.b32.xlu1 %v5836_v24, %s5572_s11  ;;  %v389_v3 = vld [vmem:[#allocation2 + $0xc0] sm:$0xff]  ;;  %v5890_v6 = vpack.i.bf16 %v384_v1, %v383_v0  ;;  %v387_v7 = vld [vmem:[#allocation2 + $0xa8] sm:$0xff]  ;;  %v388_v10 = vld [vmem:[#allocation2 + $0xb0] sm:$0xff] }
  0x4f   : > { %4826 = vrot.lane.b32.xlu0 %v5840_v25, %s5572_s11  ;;  %v971_v8 = vld [vmem:[%s7774_s1 + $0x80] sm:$0xff]  ;;  %v972_v9 = vld [vmem:[%s7774_s1 + $0x88] sm:$0xff]  ;;  %v5910_v16 = vpack.i.bf16 %v390_v4, %v389_v3  ;;  %v5915_v17 = vpack.i.bf16 %v388_v10, %v387_v7  ;;  %v973_v20 = vld [vmem:[%s7774_s1 + $0x90] sm:$0xff] }
  0x50   : > { %v5898_v11 = vpack.c.bf16 %v972_v9, %v971_v8  ;;  %v955_v13 = vld [vmem:[%s7774_s1] sm:$0xff]  ;;  %v956_v14 = vld [vmem:[%s7774_s1 + $0x8] sm:$0xff]  ;;  %v974_v21 = vld [vmem:[%s7774_s1 + $0x98] sm:$0xff] }
  0x51   : > { %v5906_v15 = vpack.c.bf16 %v956_v14, %v955_v13  ;;  %v5924_v22 = vpack.c.bf16 %v974_v21, %v973_v20  ;;  %v957_v23 = vld [vmem:[%s7774_s1 + $0x10] sm:$0xff]  ;;  %v958_v26 = vld [vmem:[%s7774_s1 + $0x18] sm:$0xff]  ;;  %v975_v28 = vld [vmem:[%s7774_s1 + $0xa0] sm:$0xff] }
  0x52   : > { %4841 = vrot.lane.b32.xlu1 %v5844_v30, %s5573_s12  ;;  %4664 = vmatprep.subr.bf16.mxu0 %v5898_v11  ;;  %v5932_v27 = vpack.c.bf16 %v958_v26, %v957_v23  ;;  %v976_v29 = vld [vmem:[%s7774_s1 + $0xa8] sm:$0xff]  ;;  %v959_v32 = vld [vmem:[%s7774_s1 + $0x20] sm:$0xff]  ;;  %v977_v35 = vld [vmem:[%s7774_s1 + $0xb0] sm:$0xff] }
  0x53   : > { %4836 = vrot.lane.b32.xlu0 %v4835_v31, %s5573_s12  ;;  %4666 = vmatpush3.bf16.msra.mxu0 %v5906_v15  ;;  %v5946_v31 = vpack.c.bf16 %v976_v29, %v975_v28  ;;  %v960_v33 = vld [vmem:[%s7774_s1 + $0x28] sm:$0xff]  ;;  %v978_v38 = vld [vmem:[%s7774_s1 + $0xb8] sm:$0xff]  ;;  %v979_v45 = vld [vmem:[%s7774_s1 + $0xc0] sm:$0xff] }
  0x54   : > { %4668 = vmatprep.subr.bf16.mxu0 %v5924_v22  ;;  %v5954_v34 = vpack.c.bf16 %v960_v33, %v959_v32  ;;  %v5968_v39 = vpack.c.bf16 %v978_v38, %v977_v35  ;;  %v5980_v41 = vld [vmem:[#allocation2 + $0xc2] sm:$0xff]  ;;  %v5985_v44 = vld [vmem:[#allocation2 + $0xca] sm:$0xff]  ;;  %v982_v53 = vld [vmem:[%s7774_s1 + $0xd8] sm:$0xff] }
  0x55   : > { %v980_v46 = vld [vmem:[%s7774_s1 + $0xc8] sm:$0xff]  ;;  %v963_v47 = vld [vmem:[%s7774_s1 + $0x40] sm:$0xff]  ;;  %v4950_v51 = vpack.i.bf16 %v5985_v44, %v5980_v41  ;;  %v981_v52 = vld [vmem:[%s7774_s1 + $0xd0] sm:$0xff] }
  0x56   : > { %4851 = vrot.lane.b32.xlu1 %v5850_v36, %s5573_s12  ;;  %v983_v57 = vld [vmem:[%s7774_s1 + $0xe0] sm:$0xff]  ;;  %v984_v58 = vld [vmem:[%s7774_s1 + $0xe8] sm:$0xff]  ;;  %v985_v0 = vld [vmem:[%s7774_s1 + $0xf0] sm:$0xff] }
  0x57   : > { %4846 = vrot.lane.b32.xlu0 %v5853_v37, %s5573_s12  ;;  %4670 = vmatpush3.bf16.msra.mxu0 %v5932_v27  ;;  %v6039_v59 = vpack.c.bf16 %v984_v58, %v983_v57  ;;  %v967_v62 = vld [vmem:[%s7774_s1 + $0x60] sm:$0xff]  ;;  %v986_v1 = vld [vmem:[%s7774_s1 + $0xf8] sm:$0xff]  ;;  %v969_v4 = vld [vmem:[%s7774_s1 + $0x70] sm:$0xff] }
  0x58   : > { %4672 = vmatprep.subr.bf16.mxu0 %v5946_v31  ;;  %v987_v3 = vld [vmem:[%s7774_s1 + $0x100] sm:$0xff]  ;;  %v970_v7 = vld [vmem:[%s7774_s1 + $0x78] sm:$0xff]  ;;  %v989_v14 = vld [vmem:[%s7774_s1 + $0x110] sm:$0xff] }
  0x59   : > { %v6077_v9 = vpack.c.bf16 %v970_v7, %v969_v4  ;;  %v6081_v10 = vld [vmem:[#allocation2 + $0xd8] sm:$0xff]  ;;  %v6086_v13 = vld [vmem:[#allocation2 + $0xe0] sm:$0xff]  ;;  %v1457_v26 = vld [vmem:[#allocation4] sm:$0xff] }
  0x5a   : > { %4861 = vrot.lane.b32.xlu1 %v5857_v42, %s5573_s12  ;;  %v990_v20 = vld [vmem:[%s7774_s1 + $0x118] sm:$0xff]  ;;  %v1459_v28 = vld [vmem:[#allocation4 + $0x10] sm:$0xff]  ;;  %v1461_v32 = vld [vmem:[#allocation4 + $0x20] sm:$0xff] }
  0x5b   : > { %4856 = vrot.lane.b32.xlu0 %v5861_v43, %s5573_s12  ;;  %4674 = vmatpush3.bf16.msra.mxu0 %v5954_v34  ;;  %v456_v21 = vld [vmem:[#allocation2 + $0x32] sm:$0xff]  ;;  %v457_v23 = vld [vmem:[#allocation2 + $0x3a] sm:$0xff]  ;;  %v463_v29 = vld [vmem:[#allocation2 + $0x82] sm:$0xff] }
  0x5c   : > { %4676 = vmatprep.subr.bf16.mxu0 %v5968_v39  ;;  %4607 = vmatprep.mubr.msk.f32.mxu1 %vm856_vm2, %v456_v21  ;;  %v1464_v33 = vld [vmem:[#allocation4 + $0x38] sm:$0xff]  ;;  %v1463_v35 = vld [vmem:[#allocation4 + $0x30] sm:$0xff]  ;;  %v2353_v57 = vld [vmem:[#allocation2 + $0xf0] sm:$0xff] }
  0x5d   : > { %v465_v38 = vld [vmem:[#allocation2 + $0x9a] sm:$0xff] }
  0x5e   : > { %4871 = vrot.lane.b32.xlu1 %v5865_v48, %s5573_s12 }
  0x5f   : > { %4866 = vrot.lane.b32.xlu0 %v5869_v49, %s5573_s12 }
  0x62   : > { %4881 = vrot.lane.b32.xlu1 %v5873_v54, %s5574_s13 }
  0x63   : > { %4876 = vrot.lane.b32.xlu0 %v4875_v55, %s5574_s13  ;;  %v6018_v55 = vpack.c.bf16 %v982_v53, %v981_v52  ;;  %v1469_v53 = vld [vmem:[#allocation4 + $0x60] sm:$0xff] }
  0x66   : > { %4891 = vrot.lane.b32.xlu1 %v5879_v60, %s5574_s13 }
  0x67   : > { %4886 = vrot.lane.b32.xlu0 %v5882_v61, %s5574_s13 }
  0x6a   : > { %4901 = vrot.lane.b32.xlu1 %v5886_v2, %s5574_s13 }
  0x6b   : > { %4896 = vrot.lane.b32.xlu0 %v5890_v6, %s5574_s13 }
  0x6e   : > { %4911 = vrot.lane.b32.xlu1 %v5910_v16, %s5574_s13 }
  0x6f   : > { %4906 = vrot.lane.b32.xlu0 %v5915_v17, %s5574_s13 }
  0x72   : > { %4921 = vrot.lane.b32.xlu1 %v5853_v37, %s5572_s11  ;;  %v961_v37 = vld [vmem:[%s7774_s1 + $0x30] sm:$0xff] }
  0x73   : > { %4916 = vrot.lane.b32.xlu0 %v5844_v30, %s5572_s11  ;;  %v962_v30 = vld [vmem:[%s7774_s1 + $0x38] sm:$0xff] }
  0x74   : > { %v5976_v40 = vpack.c.bf16 %v962_v30, %v961_v37  ;;  %v466_v37 = vld [vmem:[#allocation2 + $0xaa] sm:$0xff] }
  0x75   : > { %v1465_v30 = vld [vmem:[#allocation4 + $0x40] sm:$0xff] }
  0x76   : > { %4931 = vrot.lane.b32.xlu1 %v5861_v43, %s5572_s11  ;;  %4678 = vmatpush3.bf16.msra.mxu0 %v5976_v40  ;;  %v5994_v43 = vpack.c.bf16 %v980_v46, %v979_v45  ;;  %v1468_v45 = vld [vmem:[#allocation4 + $0x58] sm:$0xff] }
  0x77   : > { %4926 = vrot.lane.b32.xlu0 %v5850_v36, %s5572_s11  ;;  %v964_v36 = vld [vmem:[%s7774_s1 + $0x48] sm:$0xff] }
  0x78   : > { %v6002_v50 = vpack.c.bf16 %v964_v36, %v963_v47  ;;  %4680 = vmatprep.subr.bf16.mxu0 %v5994_v43  ;;  %v468_v46 = vld [vmem:[#allocation2 + $0xc2] sm:$0xff] }
  0x79   : > { %v1467_v47 = vld [vmem:[#allocation4 + $0x50] sm:$0xff] }
  0x7a   : > { %4941 = vrot.lane.b32.xlu1 %v5869_v49, %s5572_s11  ;;  %4682 = vmatpush3.bf16.msra.mxu0 %v6002_v50  ;;  %v965_v49 = vld [vmem:[%s7774_s1 + $0x50] sm:$0xff] }
  0x7b   : > { %4936 = vrot.lane.b32.xlu0 %v5857_v42, %s5572_s11  ;;  %v966_v42 = vld [vmem:[%s7774_s1 + $0x58] sm:$0xff]  ;;  %4684 = vmatprep.subr.bf16.mxu0 %v6018_v55 }
  0x7c   : > { %v6026_v56 = vpack.c.bf16 %v966_v42, %v965_v49  ;;  %v471_v42 = vld [vmem:[#allocation2 + $0xe2] sm:$0xff] }
  0x7e   : > { %4951 = vrot.lane.b32.xlu1 %v4950_v51, %s5572_s11  ;;  %4686 = vmatpush3.bf16.msra.mxu0 %v6026_v56  ;;  %v1470_v51 = vld [vmem:[#allocation4 + $0x68] sm:$0xff] }
  0x7f   : > { %4946 = vrot.lane.b32.xlu0 %v5865_v48, %s5572_s11  ;;  %v968_v48 = vld [vmem:[%s7774_s1 + $0x68] sm:$0xff]  ;;  %4688 = vmatprep.subr.bf16.mxu0 %v6039_v59 }
  0x80   : > { %v6047_v63 = vpack.c.bf16 %v968_v48, %v967_v62  ;;  %v2336_v62 = vld [vmem:[#allocation2 + $0xda] sm:$0xff] }
  0x82   : > { %4961 = vrot.lane.b32.xlu1 %v5882_v61, %s5573_s12  ;;  %4690 = vmatpush3.bf16.msra.mxu0 %v6047_v63  ;;  %v6064_v61 = vpack.c.bf16 %v986_v1, %v985_v0  ;;  %v2337_v1 = vld [vmem:[#allocation2 + $0xe2] sm:$0xff] }
  0x83   : > { %4956 = vrot.lane.b32.xlu0 %v5873_v54, %s5573_s12  ;;  %v988_v54 = vld [vmem:[%s7774_s1 + $0x108] sm:$0xff] }
  0x84   : > { %v6075_v8 = vpack.c.bf16 %v988_v54, %v987_v3  ;;  %4692 = vmatprep.subr.bf16.mxu0 %v6064_v61 }
  0x86   : > { %4971 = vrot.lane.b32.xlu1 %v5890_v6, %s5573_s12  ;;  %4696 = vmatprep.subr.bf16.mxu1 %v6075_v8  ;;  %v6097_v6 = vpack.c.bf16 %v990_v20, %v989_v14  ;;  %v2354_v14 = vld [vmem:[#allocation2 + $0xf8] sm:$0xff] }
  0x87   : > { %4966 = vrot.lane.b32.xlu0 %v5879_v60, %s5573_s12  ;;  %4694 = vmatpush3.bf16.msra.mxu0 %v6077_v9  ;;  %v4990_v60 = vpack.i.bf16 %v6086_v13, %v6081_v10  ;;  %v5055_v21 = vpack.i.bf16 %v5985_v44, %v2354_v14 }
  0x88   : > { %4698 = vmatpush3.bf16.msra.mxu1 %v6075_v8  ;;  %4736 = vmatprep.subr.bf16.mxu0 %v6075_v8 }
  0x89   : > { %4700 = vmatprep.subr.bf16.mxu1 %v6097_v6 }
  0x8a   : > { %4981 = vrot.lane.b32.xlu1 %v5915_v17, %s5573_s12  ;;  %v460_v17 = vld [vmem:[#allocation2 + $0x62] sm:$0xff] }
  0x8b   : > { %4976 = vrot.lane.b32.xlu0 %v5886_v2, %s5573_s12  ;;  %v458_v2 = vld [vmem:[#allocation2 + $0x4a] sm:$0xff] }
  0x8c   : > { %4702 = vmatpush3.bf16.msra.mxu1 %v6097_v6 }
  0x8d   : > { %4704 = vmatprep.subr.bf16.mxu1 %v5898_v11  ;;  %v459_v11 = vld [vmem:[#allocation2 + $0x52] sm:$0xff] }
  0x8e   : > { %4991 = vrot.lane.b32.xlu1 %v4990_v60, %s5573_s12 }
  0x8f   : > { %4986 = vrot.lane.b32.xlu0 %v5910_v16, %s5573_s12  ;;  %4608 = vmatmul.mubr.msk.f32.vlgmr.msra.gmra.mrb[0].mxu1 %vm856_vm2, %v457_v23  ;;  %v6134_v16 = vld [vmem:[#allocation2 + $0xc9] sm:$0xff] }
  0x90   : > { %4706 = vmatpush3.bf16.msra.mxu1 %v5906_v15  ;;  %4610 = vmatprep.mubr.msk.f32.mxu1 %vm856_vm2, %v458_v2  ;;  %v6130_v15 = vld [vmem:[#allocation2 + $0xe1] sm:$0xff]  ;;  %v5050_v4 = vpack.i.bf16 %v6134_v16, %v2337_v1 }
  0x91   : > { %4708 = vmatprep.subr.bf16.mxu1 %v5924_v22  ;;  %v461_v22 = vld [vmem:[#allocation2 + $0x6a] sm:$0xff] }
  0x92   : > { %5001 = vrot.lane.b32.xlu1 %v5824_v12, %s5574_s13  ;;  %v6128_v12 = vld [vmem:[#allocation2 + $0xd9] sm:$0xff]  ;;  %v2355_v23 = vld [vmem:[#allocation2 + $0x108] sm:$0xff] }
  0x93   : > { %4996 = vrot.lane.b32.xlu0 %v5820_v5, %s5574_s13  ;;  %4611 = vmatmul.mubr.msk.f32.gmra.mrb[2].mxu1 %vm856_vm2, %v459_v11  ;;  %v6132_v5 = vld [vmem:[#allocation2 + $0xc1] sm:$0xff]  ;;  %v2338_v11 = vld [vmem:[#allocation2 + $0xf2] sm:$0xff] }
  0x94   : > { %4710 = vmatpush3.bf16.msra.mxu1 %v5932_v27  ;;  %4613 = vmatprep.mubr.msk.f32.mxu1 %vm856_vm2, %v460_v17  ;;  %v462_v27 = vld [vmem:[#allocation2 + $0x7a] sm:$0xff]  ;;  %v5035_v0 = vpack.i.bf16 %v6132_v5, %v2336_v62 }
  0x95   : > { %4712 = vmatprep.subr.bf16.mxu1 %v5946_v31  ;;  %v1462_v31 = vld [vmem:[#allocation4 + $0x28] sm:$0xff] }
  0x96   : > { %5011 = vrot.lane.b32.xlu1 %v5829_v18, %s5574_s13  ;;  %v5030_v18 = vpack.i.bf16 %v6130_v15, %v6128_v12 }
  0x97   : > { %5006 = vrot.lane.b32.xlu0 %v5832_v19, %s5574_s13  ;;  %v5025_v19 = vpack.i.bf16 %v6134_v16, %v6132_v5  ;;  %4614 = vmatmul.mubr.msk.f32.gmra.mrb[4].mxu1 %vm856_vm2, %v461_v22  ;;  %v5065_v16 = vpack.i.bf16 %v6128_v12, %v2338_v11 }
  0x98   : > { %4714 = vmatpush3.bf16.msra.mxu1 %v5954_v34  ;;  %4616 = vmatprep.mubr.msk.f32.mxu1 %vm856_vm2, %v462_v27  ;;  %v464_v34 = vld [vmem:[#allocation2 + $0x92] sm:$0xff] }
  0x99   : > { %4716 = vmatprep.subr.bf16.mxu1 %v5968_v39  ;;  %v1466_v39 = vld [vmem:[#allocation4 + $0x48] sm:$0xff] }
  0x9a   : > { %5021 = vrot.lane.b32.xlu1 %v5836_v24, %s5574_s13  ;;  %v1458_v24 = vld [vmem:[#allocation4 + $0x8] sm:$0xff] }
  0x9b   : > { %5016 = vrot.lane.b32.xlu0 %v5840_v25, %s5574_s13  ;;  %v1460_v25 = vld [vmem:[#allocation4 + $0x18] sm:$0xff]  ;;  %4617 = vmatmul.mubr.msk.f32.gmra.mrb[6].mxu1 %vm856_vm2, %v463_v29  ;;  %v2357_v29 = vld [vmem:[#allocation2 + $0x120] sm:$0xff] }
  0x9c   : > { %4718 = vmatpush3.bf16.msra.mxu1 %v5976_v40  ;;  %4619 = vmatprep.mubr.msk.f32.mxu1 %vm856_vm2, %v464_v34  ;;  %v467_v40 = vld [vmem:[#allocation2 + $0xb2] sm:$0xff] }
  0x9d   : > { %4720 = vmatprep.subr.bf16.mxu1 %v5994_v43 }
  0x9e   : > { %5031 = vrot.lane.b32.xlu1 %v5030_v18, %s5574_s13  ;;  %v2339_v18 = vld [vmem:[#allocation2 + $0xfa] sm:$0xff] }
  0x9f   : > { %5026 = vrot.lane.b32.xlu0 %v5025_v19, %s5574_s13  ;;  %4620 = vmatmul.mubr.msk.f32.gmra.mrb[8].mxu1 %vm856_vm2, %v465_v38  ;;  %v5080_v44 = vpack.i.bf16 %v6130_v15, %v2339_v18 }
  0xa0   : > { %4722 = vmatpush3.bf16.msra.mxu1 %v6002_v50  ;;  %4622 = vmatprep.mubr.msk.f32.mxu1 %vm856_vm2, %v466_v37  ;;  %v469_v50 = vld [vmem:[#allocation2 + $0xca] sm:$0xff] }
  0xa1   : > { %4724 = vmatprep.subr.bf16.mxu1 %v6018_v55  ;;  %v470_v55 = vld [vmem:[#allocation2 + $0xda] sm:$0xff] }
  0xa2   : > { %1491 = vrot.lane.b32.xlu1 %v1458_v24, %s5572_s11  ;;  %v2372_v24 = vld [vmem:[#allocation2 + $0x111] sm:$0xff] }
  0xa3   : > { %1489 = vrot.lane.b32.xlu0 %v1457_v26, %s5572_s11  ;;  %4623 = vmatmul.mubr.msk.f32.gmra.mrb[10].mxu1 %vm856_vm2, %v467_v40  ;;  %v5090_v12 = vpack.i.bf16 %v2354_v14, %v2372_v24 }
  0xa4   : > { %4726 = vmatpush3.bf16.msra.mxu1 %v6026_v56  ;;  %4625 = vmatprep.mubr.msk.f32.mxu1 %vm856_vm2, %v468_v46  ;;  %v1472_v56 = vld [vmem:[#allocation4 + $0x78] sm:$0xff] }
  0xa5   : > { %4728 = vmatprep.subr.bf16.mxu1 %v6039_v59  ;;  %v1471_v59 = vld [vmem:[#allocation4 + $0x70] sm:$0xff] }
  0xa6   : > { %1495 = vrot.lane.b32.xlu1 %v1460_v25, %s5572_s11  ;;  %v2356_v25 = vld [vmem:[#allocation2 + $0x110] sm:$0xff] }
  0xa7   : > { %1493 = vrot.lane.b32.xlu0 %v1459_v28, %s5572_s11  ;;  %4626 = vmatmul.mubr.msk.f32.gmra.mrb[12].mxu1 %vm856_vm2, %v469_v50  ;;  %v5085_v28 = vpack.i.bf16 %v2337_v1, %v2356_v25  ;;  %v2375_v1 = vld [vmem:[#allocation2 + $0x139] sm:$0xff] }
  0xa8   : > { %4730 = vmatpush3.bf16.msra.mxu1 %v6047_v63  ;;  %4628 = vmatprep.mubr.msk.f32.mxu1 %vm856_vm2, %v470_v55  ;;  %v5040_v63 = vpack.i.bf16 %v5980_v41, %v2353_v57  ;;  %v2359_v55 = vld [vmem:[#allocation2 + $0x138] sm:$0xff] }
  0xa9   : > { %4732 = vmatprep.subr.bf16.mxu1 %v6064_v61  ;;  %v2369_v61 = vld [vmem:[#allocation2 + $0xf1] sm:$0xff] }
  0xaa   : > { %1499 = vrot.lane.b32.xlu1 %v1462_v31, %s5572_s11  ;;  %v5045_v7 = vpack.i.bf16 %v6081_v10, %v2369_v61  ;;  %v5070_v10 = vpack.i.bf16 %v2336_v62, %v2355_v23 }
  0xab   : > { %1497 = vrot.lane.b32.xlu0 %v1461_v32, %s5572_s11  ;;  %4629 = vmatmul.mubr.msk.f32.gmra.mrb[14].mxu1 %vm856_vm2, %v471_v42  ;;  %v2340_v32 = vld [vmem:[#allocation2 + $0x10a] sm:$0xff] }
  0xac   : > { %4734 = vmatpush3.bf16.msra.mxu1 %v6077_v9  ;;  %v2370_v9 = vld [vmem:[#allocation2 + $0xf9] sm:$0xff]  ;;  %v5095_v34 = vpack.i.bf16 %v2369_v61, %v2340_v32 }
  0xad   : > { %4743 = vmatprep.subr.bf16.mxu1 %v6075_v8  ;;  %v5060_v60 = vpack.i.bf16 %v6086_v13, %v2370_v9  ;;  %v2371_v13 = vld [vmem:[#allocation2 + $0x109] sm:$0xff] }
  0xae   : > { %1503 = vrot.lane.b32.xlu1 %v1464_v33, %s5572_s11  ;;  %v5075_v22 = vpack.i.bf16 %v2353_v57, %v2371_v13  ;;  %v5100_v33 = vpack.i.bf16 %v2338_v11, %v2357_v29 }
  0xaf   : > { %1501 = vrot.lane.b32.xlu0 %v1463_v35, %s5572_s11  ;;  %v2341_v35 = vld [vmem:[#allocation2 + $0x112] sm:$0xff] }
  0xb2   : > { %1507 = vrot.lane.b32.xlu1 %v1466_v39, %s5572_s11  ;;  %v2373_v39 = vld [vmem:[#allocation2 + $0x121] sm:$0xff] }
  0xb3   : > { %1505 = vrot.lane.b32.xlu0 %v1465_v30, %s5572_s11  ;;  %v5110_v30 = vpack.i.bf16 %v2370_v9, %v2341_v35  ;;  %v5105_v40 = vpack.i.bf16 %v2355_v23, %v2373_v39  ;;  %v2376_v9 = vld [vmem:[#allocation2 + $0x141] sm:$0xff] }
  0xb4   : > { %v6176_v43 = vpop.permute.xlu1 %4806 }
  0xb5   : > { %v6179_v36 = vpop.permute.xlu0 %4796 }
  0xb6   : > { %1511 = vrot.lane.b32.xlu1 %v1468_v45, %s5572_s11  ;;  %v2374_v45 = vld [vmem:[#allocation2 + $0x129] sm:$0xff] }
  0xb7   : > { %1509 = vrot.lane.b32.xlu0 %v1467_v47, %s5572_s11  ;;  %v2358_v47 = vld [vmem:[#allocation2 + $0x128] sm:$0xff] }
  0xb8   : > { %v6184_v52 = vpop.permute.xlu1 %4811  ;;  %v5150_v23 = vpack.i.bf16 %v2358_v47, %v2376_v9 }
  0xb9   : > { %v6186_v49 = vpop.permute.xlu0 %4801 }
  0xba   : > { %1515 = vrot.lane.b32.xlu1 %v1470_v51, %s5572_s11  ;;  %v5120_v51 = vpack.i.bf16 %v2356_v25, %v2374_v45 }
  0xbb   : > { %1513 = vrot.lane.b32.xlu0 %v1469_v53, %s5572_s11  ;;  %v5115_v53 = vpack.i.bf16 %v2339_v18, %v2358_v47  ;;  %v2344_v18 = vld [vmem:[#allocation2 + $0x13a] sm:$0xff]  ;;  %v6299_v47 = vld [vmem:[#allocation2 + $0x168] sm:$0xff] }
  0xbc   : > { %v6192_v58 = vpop.permute.xlu1 %4821 }
  0xbd   : > { %v6194_v48 = vpop.permute.xlu0 %4816 }
  0xbe   : > { %1519 = vrot.lane.b32.xlu1 %v1472_v56, %s5572_s11  ;;  %v2342_v56 = vld [vmem:[#allocation2 + $0x122] sm:$0xff] }
  0xbf   : > { %1517 = vrot.lane.b32.xlu0 %v1471_v59, %s5572_s11  ;;  %v5130_v59 = vpack.i.bf16 %v2340_v32, %v2359_v55  ;;  %v5125_v62 = vpack.i.bf16 %v2371_v13, %v2342_v56 }
  0xc0   : > { %v6200_v3 = vpop.permute.xlu1 %4831 }
  0xc1   : > { %7792 = vst [vmem:[#allocation6_spill] sm:$0xff] %v6200_v3  ;;  %v6202_v54 = vpop.permute.xlu0 %4826  ;;  %v393_v3 = vld [vmem:[#allocation2 + $0x31] sm:$0xff] }
  0xc2   : > { %7793 = vst [vmem:[#allocation7_spill] sm:$0xff] %v6202_v54  ;;  %5041 = vrot.lane.b32.xlu1 %v5040_v63, %s5573_s12  ;;  %v2343_v63 = vld [vmem:[#allocation2 + $0x12a] sm:$0xff]  ;;  %v6360_v54 = vld [vmem:[#allocation2 + $0x172] sm:$0xff] }
  0xc3   : > { %5036 = vrot.lane.b32.xlu0 %v5035_v0, %s5572_s11 }
  0xc4   : > { %v6208_v41 = vpop.permute.xlu1 %4841 }
  0xc5   : > { %v6210_v20 = vpop.permute.xlu0 %4836 }
  0xc6   : > { %5051 = vrot.lane.b32.xlu1 %v5050_v4, %s5572_s11  ;;  %v5140_v4 = vpack.i.bf16 %v2372_v24, %v2343_v63  ;;  %v6278_v24 = vld [vmem:[#allocation2 + $0x142] sm:$0xff] }
  0xc7   : > { %5046 = vrot.lane.b32.xlu0 %v5045_v7, %s5574_s13  ;;  %v5135_v7 = vpack.i.bf16 %v2357_v29, %v2375_v1  ;;  %v5170_v29 = vpack.i.bf16 %v2374_v45, %v6278_v24 }
  0xc8   : > { %v6216_v2 = vpop.permute.xlu1 %4851 }
  0xc9   : > { %v6218_v5 = vpop.permute.xlu0 %4846 }
  0xca   : > { %5061 = vrot.lane.b32.xlu1 %v5060_v60, %s5574_s13  ;;  %v2360_v60 = vld [vmem:[#allocation2 + $0x140] sm:$0xff] }
  0xcb   : > { %5056 = vrot.lane.b32.xlu0 %v5055_v21, %s5573_s12  ;;  %v5145_v11 = vpack.i.bf16 %v2341_v35, %v2360_v60  ;;  %v2362_v35 = vld [vmem:[#allocation2 + $0x158] sm:$0xff] }
  0xcc   : > { %v6223_v19 = vpop.permute.xlu1 %4861 }
  0xcd   : > { %v6225_v17 = vpop.permute.xlu0 %4856 }
  0xce   : > { %5071 = vrot.lane.b32.xlu1 %v5070_v10, %s5573_s12  ;;  %v2361_v10 = vld [vmem:[#allocation2 + $0x150] sm:$0xff] }
  0xcf   : > { %5066 = vrot.lane.b32.xlu0 %v5065_v16, %s5572_s11 }
  0xd0   : > { %v6230_v26 = vpop.permute.xlu1 %4871 }
  0xd1   : > { %7794 = vst [vmem:[#allocation8_spill] sm:$0xff] %v6230_v26  ;;  %v6232_v27 = vpop.permute.xlu0 %4866 }
  0xd2   : > { %7795 = vst [vmem:[#allocation9_spill] sm:$0xff] %v6232_v27  ;;  %5081 = vrot.lane.b32.xlu1 %v5080_v44, %s5572_s11  ;;  %v5160_v44 = vpack.i.bf16 %v2342_v56, %v2361_v10  ;;  %v4839_v27 = vunpack.i.h.bf16 %v6210_v20 }
  0xd3   : > { %5076 = vrot.lane.b32.xlu0 %v5075_v22, %s5574_s13  ;;  %v5155_v22 = vpack.i.bf16 %v2373_v39, %v2344_v18 }
  0xd4   : > { %v6236_v31 = vpop.permute.xlu1 %4881 }
  0xd5   : > { %v6238_v15 = vpop.permute.xlu0 %4876 }
  0xd6   : > { %5091 = vrot.lane.b32.xlu1 %v5090_v12, %s5574_s13  ;;  %v6282_v12 = vld [vmem:[#allocation2 + $0x151] sm:$0xff] }
  0xd7   : > { %5086 = vrot.lane.b32.xlu0 %v5085_v28, %s5573_s12  ;;  %v5165_v32 = vpack.i.bf16 %v2359_v55, %v6282_v12  ;;  %v5190_v55 = vpack.i.bf16 %v2344_v18, %v6299_v47 }
  0xd8   : > { %v6242_v38 = vpop.permute.xlu1 %4891 }
  0xd9   : > { %v6244_v37 = vpop.permute.xlu0 %4886 }
  0xda   : > { %5101 = vrot.lane.b32.xlu1 %v5100_v33, %s5573_s12  ;;  %v6290_v33 = vld [vmem:[#allocation2 + $0x159] sm:$0xff] }
  0xdb   : > { %5096 = vrot.lane.b32.xlu0 %v5095_v34, %s5572_s11 }
  0xdc   : > { %v6248_v46 = vpop.permute.xlu1 %4901 }
  0xdd   : > { %v6250_v50 = vpop.permute.xlu0 %4896 }
  0xde   : > { %5111 = vrot.lane.b32.xlu1 %v5110_v30, %s5572_s11  ;;  %v5180_v30 = vpack.i.bf16 %v2360_v60, %v6290_v33 }
  0xdf   : > { %5106 = vrot.lane.b32.xlu0 %v5105_v40, %s5574_s13  ;;  %v5175_v40 = vpack.i.bf16 %v2343_v63, %v2362_v35  ;;  %v6315_v63 = vld [vmem:[#allocation2 + $0x169] sm:$0xff] }
  0xe0   : > { %v6254_v42 = vpop.permute.xlu1 %4911  ;;  %v5195_v60 = vpack.i.bf16 %v2361_v10, %v6315_v63 }
  0xe1   : > { %7796 = vst [vmem:[#allocation10_spill] sm:$0xff] %v6254_v42  ;;  %v6256_v57 = vpop.permute.xlu0 %4906 }
  0xe2   : > { %7797 = vst [vmem:[#allocation11_spill] sm:$0xff] %v6256_v57  ;;  %5121 = vrot.lane.b32.xlu1 %v5120_v51, %s5574_s13  ;;  %v6303_v51 = vld [vmem:[#allocation2 + $0x152] sm:$0xff] }
  0xe3   : > { %5116 = vrot.lane.b32.xlu0 %v5115_v53, %s5573_s12  ;;  %v5185_v56 = vpack.i.bf16 %v2375_v1, %v6303_v51  ;;  %v6327_v1 = vld [vmem:[#allocation2 + $0x170] sm:$0xff] }
  0xe4   : > { %v6260_v0 = vpop.permute.xlu1 %4921 }
  0xe5   : > { %v6262_v61 = vpop.permute.xlu0 %4916 }
  0xe6   : > { %5131 = vrot.lane.b32.xlu1 %v5130_v59, %s5573_s12  ;;  %v6311_v59 = vld [vmem:[#allocation2 + $0x15a] sm:$0xff] }
  0xe7   : > { %5126 = vrot.lane.b32.xlu0 %v5125_v62, %s5572_s11 }
  0xe8   : > { %v6266_v14 = vpop.permute.xlu1 %4931 }
  0xe9   : > { %v6268_v21 = vpop.permute.xlu0 %4926 }
  0xea   : > { %5141 = vrot.lane.b32.xlu1 %v5140_v4, %s5572_s11 }
  0xeb   : > { %5136 = vrot.lane.b32.xlu0 %v5135_v7, %s5574_s13  ;;  %v5200_v7 = vpack.i.bf16 %v2376_v9, %v6311_v59  ;;  %v4798_v9 = vunpack.i.l.bf16 %v6179_v36 }
  0xec   : > { %v6272_v16 = vpop.permute.xlu1 %4941 }
  0xed   : > { %v6274_v13 = vpop.permute.xlu0 %4936 }
  0xee   : > { %5151 = vrot.lane.b32.xlu1 %v5150_v23, %s5574_s13  ;;  %v6323_v23 = vld [vmem:[#allocation2 + $0x171] sm:$0xff] }
  0xef   : > { %5146 = vrot.lane.b32.xlu0 %v5145_v11, %s5573_s12 }
  0xf0   : > { %v6280_v25 = vpop.permute.xlu1 %4951 }
  0xf1   : > { %7798 = vst [vmem:[#allocation12_spill] sm:$0xff] %v6280_v25  ;;  %v6284_v28 = vpop.permute.xlu0 %4946 }
  0xf2   : > { %7799 = vst [vmem:[#allocation13_spill] sm:$0xff] %v6284_v28  ;;  %5161 = vrot.lane.b32.xlu1 %v5160_v44, %s5573_s12  ;;  %v4918_v44 = vunpack.i.l.bf16 %v6262_v61  ;;  %v4799_v28 = vunpack.i.h.bf16 %v6179_v36 }
  0xf3   : > { %5156 = vrot.lane.b32.xlu0 %v5155_v22, %s5572_s11  ;;  %v5210_v22 = vpack.i.bf16 %v2362_v35, %v6323_v23  ;;  %v326_v35 = vld [vmem:[#allocation2] sm:$0xff] }
  0xf4   : > { %v6292_v34 = vpop.permute.xlu1 %4961 }
  0xf5   : > { %v6294_v39 = vpop.permute.xlu0 %4956 }
  0xf6   : > { %5171 = vrot.lane.b32.xlu1 %v5170_v29, %s5572_s11  ;;  %v6334_v29 = vld [vmem:[#allocation2 + $0x16a] sm:$0xff]  ;;  %v4958_v10 = vunpack.i.l.bf16 %v6294_v39  ;;  %v4959_v25 = vunpack.i.h.bf16 %v6294_v39 }
  0xf7   : > { %5166 = vrot.lane.b32.xlu0 %v5165_v32, %s5574_s13  ;;  %v5205_v32 = vpack.i.bf16 %v6278_v24, %v6327_v1  ;;  %v5215_v24 = vpack.i.bf16 %v6282_v12, %v6334_v29  ;;  %v857_v12 = vsel %vm856_vm2, %v326_v35, %v4798_v9 }
  0xf8   : > { %v6301_v45 = vpop.permute.xlu1 %4971 }
  0xf9   : > { %v6305_v53 = vpop.permute.xlu0 %4966 }
  0xfa   : > { %5181 = vrot.lane.b32.xlu1 %v5180_v30, %s5574_s13  ;;  %v391_v30 = vld [vmem:[#allocation2 + $0x19] sm:$0xff] }
  0xfb   : > { %5176 = vrot.lane.b32.xlu0 %v5175_v40, %s5573_s12  ;;  %v6341_v40 = vld [vmem:[#allocation2 + $0x180] sm:$0xff] }
  0xfc   : > { %v6313_v62 = vpop.permute.xlu1 %4981 }
  0xfd   : > { %v6317_v4 = vpop.permute.xlu0 %4976 }
  0xfe   : > { %5191 = vrot.lane.b32.xlu1 %v5190_v55, %s5573_s12  ;;  %v4838_v55 = vunpack.i.l.bf16 %v6210_v20  ;;  %v2381_v20 = vld [vmem:[#allocation2 + $0x181] sm:$0xff] }
  0xff   : > { %5186 = vrot.lane.b32.xlu0 %v5185_v56, %s5572_s11  ;;  %v4919_v56 = vunpack.i.h.bf16 %v6262_v61  ;;  %v907_v61 = vsel %vm856_vm2, %v391_v30, %v4918_v44  ;;  %v327_v30 = vld [vmem:[#allocation2 + $0x8] sm:$0xff] }
 0x100   : > { %v6325_v11 = vpop.permute.xlu1 %4991  ;;  %v923_v39 = vsel %vm873_vm3, %v907_v61, %v4958_v10  ;;  %v4963_v10 = vunpack.i.l.bf16 %v6292_v34 }
 0x101   : > { %7800 = vst [vmem:[#allocation14_spill] sm:$0xff] %v6325_v11  ;;  %v6329_v18 = vpop.permute.xlu0 %4986  ;;  %v4878_v11 = vunpack.i.l.bf16 %v6238_v15 }
 0x102   : > { %7801 = vst [vmem:[#allocation15_spill] sm:$0xff] %v6329_v18  ;;  %5201 = vrot.lane.b32.xlu1 %v5200_v7, %s5572_s11  ;;  %v5220_v18 = vpack.i.bf16 %v6303_v51, %v6341_v40  ;;  %v874_v51 = vsel %vm873_vm3, %v857_v12, %v4838_v55  ;;  %v4924_v12 = vunpack.i.h.bf16 %v6260_v0 }
 0x103   : > { %5196 = vrot.lane.b32.xlu0 %v5195_v60, %s5574_s13  ;;  %v392_v60 = vld [vmem:[#allocation2 + $0x21] sm:$0xff]  ;;  %v891_v9 = vsel %vm890_vm4, %v874_v51, %v4878_v11  ;;  %v858_v11 = vsel %vm856_vm2, %v327_v30, %v4799_v28  ;;  %v4883_v28 = vunpack.i.l.bf16 %v6236_v31  ;;  %v394_v30 = vld [vmem:[#allocation2 + $0x39] sm:$0xff] }
 0x104   : > { %v6345_v7 = vpop.permute.xlu1 %5001  ;;  %v908_v36 = vsel %vm856_vm2, %v392_v60, %v4919_v56  ;;  %v4803_v56 = vunpack.i.l.bf16 %v6186_v49  ;;  %v2382_v60 = vld [vmem:[#allocation2 + $0x189] sm:$0xff] }
 0x105   : > { %v4997_v42 = vpop.permute.xlu0 %4996  ;;  %v924_v35 = vsel %vm873_vm3, %v908_v36, %v4959_v25  ;;  %v5225_v25 = vpack.i.bf16 %v6299_v47, %v2381_v20  ;;  %v6389_v51 = vld [vmem:[#allocation2 + $0x188] sm:$0xff]  ;;  %v4964_v47 = vunpack.i.h.bf16 %v6292_v34  ;;  %v4804_v34 = vunpack.i.h.bf16 %v6186_v49  ;;  %v329_v49 = vld [vmem:[#allocation2 + $0x20] sm:$0xff] }
 0x106   : > { %v4999_v57 = vunpack.i.h.bf16 %v4997_v42  ;;  %v4998_v26 = vunpack.i.l.bf16 %v4997_v42  ;;  %5211 = vrot.lane.b32.xlu1 %v5210_v22, %s5574_s13  ;;  %v4923_v42 = vunpack.i.l.bf16 %v6260_v0 }
 0x107   : > { %5206 = vrot.lane.b32.xlu0 %v5205_v32, %s5573_s12  ;;  %v4879_v32 = vunpack.i.h.bf16 %v6238_v15  ;;  %v5230_v15 = vpack.i.bf16 %v6290_v33, %v6360_v54 }
 0x108   : > { %v6363_v22 = vpop.permute.xlu1 %5011  ;;  %v939_v44 = vsel %vm890_vm4, %v923_v39, %v4998_v26  ;;  %v5003_v26 = vunpack.i.l.bf16 %v6345_v7  ;;  %v940_v55 = vsel %vm890_vm4, %v924_v35, %v4999_v57  ;;  %v4843_v39 = vunpack.i.l.bf16 %v6208_v41 }
 0x109   : > { %v6370_v61 = vpop.permute.xlu0 %5006  ;;  %1119 = vmatprep.mubr.f32.mxu0 %v939_v44  ;;  %v909_v33 = vsel %vm856_vm2, %v393_v3, %v4923_v42  ;;  %v328_v44 = vld [vmem:[#allocation2 + $0x18] sm:$0xff]  ;;  %v5004_v3 = vunpack.i.h.bf16 %v6345_v7  ;;  %v5240_v42 = vpack.i.bf16 %v6327_v1, %v2382_v60  ;;  %v4844_v7 = vunpack.i.h.bf16 %v6208_v41 }
 0x10a   : > { %1120 = vmatmul.mubr.f32.vlgmr.msra.gmra.mrb[0].mxu0 %v891_v9  ;;  %5221 = vrot.lane.b32.xlu1 %v5220_v18, %s5573_s12  ;;  %v875_v18 = vsel %vm873_vm3, %v858_v11, %v4839_v27  ;;  %v925_v0 = vsel %vm873_vm3, %v909_v33, %v4963_v10  ;;  %v859_v20 = vsel %vm856_vm2, %v328_v44, %v4803_v56  ;;  %v2367_v10 = vld [vmem:[#allocation2 + $0x198] sm:$0xff]  ;;  %v4928_v9 = vunpack.i.l.bf16 %v6268_v21  ;;  %v2351_v44 = vld [vmem:[#allocation2 + $0x18a] sm:$0xff] }
 0x10b   : > { %5216 = vrot.lane.b32.xlu0 %v5215_v24, %s5572_s11  ;;  %1124 = vmatprep.mubr.f32.mxu0 %v940_v55  ;;  %v892_v36 = vsel %vm890_vm4, %v875_v18, %v4879_v32  ;;  %v941_v27 = vsel %vm890_vm4, %v925_v0, %v5003_v26  ;;  %v5235_v32 = vpack.i.bf16 %v6311_v59, %v6389_v51  ;;  %v2350_v55 = vld [vmem:[#allocation2 + $0x182] sm:$0xff]  ;;  %v4968_v56 = vunpack.i.l.bf16 %v6305_v53 }
 0x10c   : > { %v6385_v57 = vpop.permute.xlu1 %5021  ;;  %4738 = vmatpush3.bf16.msra.mxu0 %v6075_v8  ;;  %v876_v26 = vsel %vm873_vm3, %v859_v20, %v4843_v39  ;;  %v910_v1 = vsel %vm856_vm2, %v394_v30, %v4924_v12  ;;  %v5008_v60 = vunpack.i.l.bf16 %v6370_v61  ;;  %v5250_v12 = vpack.i.bf16 %v6334_v29, %v2367_v10  ;;  %v330_v30 = vld [vmem:[#allocation2 + $0x30] sm:$0xff] }
 0x10d   : > { %v6394_v24 = vpop.permute.xlu0 %5016  ;;  %4740 = vmatprep.subr.bf16.mxu0 %v6097_v6  ;;  %v893_v41 = vsel %vm890_vm4, %v876_v26, %v4883_v28  ;;  %v926_v11 = vsel %vm873_vm3, %v910_v1, %v4964_v47  ;;  %v860_v18 = vsel %vm856_vm2, %v329_v49, %v4804_v34  ;;  %v5245_v33 = vpack.i.bf16 %v6315_v63, %v2350_v55  ;;  %v2384_v1 = vld [vmem:[#allocation2 + $0x1a1] sm:$0xff] }
 0x10e   : > { %1125 = vmatmul.mubr.f32.gmra.mrb[2].mxu0 %v892_v36  ;;  %5231 = vrot.lane.b32.xlu1 %v5230_v15, %s5572_s11  ;;  %v4884_v15 = vunpack.i.h.bf16 %v6236_v31  ;;  %v942_v39 = vsel %vm890_vm4, %v926_v11, %v5004_v3  ;;  %v4808_v31 = vunpack.i.l.bf16 %v6176_v43  ;;  %v4848_v28 = vunpack.i.l.bf16 %v6218_v5  ;;  %v2383_v3 = vld [vmem:[#allocation2 + $0x199] sm:$0xff] }
 0x10f   : > { %5226 = vrot.lane.b32.xlu0 %v5225_v25, %s5574_s13  ;;  %1129 = vmatprep.mubr.f32.mxu0 %v941_v27  ;;  %v395_v25 = vld [vmem:[#allocation2 + $0x49] sm:$0xff]  ;;  %v4929_v47 = vunpack.i.h.bf16 %v6268_v21  ;;  %v877_v0 = vsel %vm873_vm3, %v860_v18, %v4844_v7  ;;  %v4888_v27 = vunpack.i.l.bf16 %v6244_v37  ;;  %v5009_v21 = vunpack.i.h.bf16 %v6370_v61 }
 0x110   : > { %v6410_v35 = vpop.permute.xlu1 %5031  ;;  %4742 = vmatpush3.bf16.msra.mxu0 %v6097_v6  ;;  %v911_v29 = vsel %vm856_vm2, %v395_v25, %v4928_v9  ;;  %v894_v63 = vsel %vm890_vm4, %v877_v0, %v4884_v15  ;;  %v5260_v7 = vpack.i.bf16 %v6323_v23, %v2351_v44  ;;  %v4809_v9 = vunpack.i.h.bf16 %v6176_v43  ;;  %v2368_v43 = vld [vmem:[#allocation2 + $0x1a0] sm:$0xff] }
 0x111   : > { %v6417_v59 = vpop.permute.xlu0 %5026  ;;  %v927_v20 = vsel %vm873_vm3, %v911_v29, %v4968_v56  ;;  %v5255_v26 = vpack.i.bf16 %v6341_v40, %v2383_v3  ;;  %v4849_v49 = vunpack.i.h.bf16 %v6218_v5  ;;  %v4933_v61 = vunpack.i.l.bf16 %v6266_v14  ;;  %v331_v56 = vld [vmem:[#allocation2 + $0x38] sm:$0xff] }
 0x112   : > { %1130 = vmatmul.mubr.f32.gmra.mrb[4].mxu0 %v893_v41  ;;  %5241 = vrot.lane.b32.xlu1 %v5240_v42, %s5574_s13  ;;  %v4969_v42 = vunpack.i.h.bf16 %v6305_v53  ;;  %v943_v10 = vsel %vm890_vm4, %v927_v20, %v5008_v60  ;;  %v861_v53 = vsel %vm856_vm2, %v330_v30, %v4808_v31  ;;  %v4889_v41 = vunpack.i.h.bf16 %v6244_v37  ;;  %v397_v60 = vld [vmem:[#allocation2 + $0x61] sm:$0xff] }
 0x113   : > { %5236 = vrot.lane.b32.xlu0 %v5235_v32, %s5573_s12  ;;  %1134 = vmatprep.mubr.f32.mxu0 %v942_v39  ;;  %v396_v32 = vld [vmem:[#allocation2 + $0x51] sm:$0xff]  ;;  %v878_v15 = vsel %vm873_vm3, %v861_v53, %v4848_v28  ;;  %v4973_v11 = vunpack.i.l.bf16 %v6301_v45  ;;  %v5013_v39 = vunpack.i.l.bf16 %v6363_v22  ;;  %v5270_v31 = vpack.i.bf16 %v6389_v51, %v2384_v1  ;;  %v332_v51 = vld [vmem:[#allocation2 + $0x48] sm:$0xff] }
 0x114   : > { %v6431_v36 = vpop.permute.xlu1 %1491  ;;  %v912_v23 = vsel %vm856_vm2, %v396_v32, %v4929_v47  ;;  %v895_v40 = vsel %vm890_vm4, %v878_v15, %v4888_v27  ;;  %v4813_v37 = vunpack.i.l.bf16 %v6184_v52  ;;  %v862_v18 = vsel %vm856_vm2, %v331_v56, %v4809_v9  ;;  %v333_v53 = vld [vmem:[#allocation2 + $0x50] sm:$0xff] }
 0x115   : > { %v6437_v34 = vpop.permute.xlu0 %1489  ;;  %v928_v5 = vsel %vm873_vm3, %v912_v23, %v4969_v42  ;;  %v4853_v44 = vunpack.i.l.bf16 %v6216_v2  ;;  %v4934_v28 = vunpack.i.h.bf16 %v6266_v14  ;;  %v879_v0 = vsel %vm873_vm3, %v862_v18, %v4849_v49 }
 0x116   : > { %1135 = vmatmul.mubr.f32.gmra.mrb[6].mxu0 %v894_v63  ;;  %5251 = vrot.lane.b32.xlu1 %v5250_v12, %s5573_s12  ;;  %v944_v12 = vsel %vm890_vm4, %v928_v5, %v5009_v21  ;;  %v913_v29 = vsel %vm856_vm2, %v397_v60, %v4933_v61  ;;  %v4893_v30 = vunpack.i.l.bf16 %v6242_v38  ;;  %v4974_v3 = vunpack.i.h.bf16 %v6301_v45  ;;  %v398_v63 = vld [vmem:[#allocation2 + $0x69] sm:$0xff] }
 0x117   : > { %5246 = vrot.lane.b32.xlu0 %v5245_v33, %s5572_s11  ;;  %1139 = vmatprep.mubr.f32.mxu0 %v943_v10  ;;  %v5265_v33 = vpack.i.bf16 %v6360_v54, %v2368_v43  ;;  %v896_v42 = vsel %vm890_vm4, %v879_v0, %v4889_v41  ;;  %v929_v54 = vsel %vm873_vm3, %v913_v29, %v4973_v11  ;;  %v5014_v14 = vunpack.i.h.bf16 %v6363_v22 }
 0x118   : > { %v6451_v55 = vpop.permute.xlu1 %1495  ;;  %v945_v20 = vsel %vm890_vm4, %v929_v54, %v5013_v39  ;;  %v4814_v32 = vunpack.i.h.bf16 %v6184_v52  ;;  %v863_v45 = vsel %vm856_vm2, %v332_v51, %v4813_v37  ;;  %v4854_v21 = vunpack.i.h.bf16 %v6216_v2  ;;  %v399_v2 = vld [vmem:[#allocation2 + $0x79] sm:$0xff] }
 0x119   : > { %v6457_v25 = vpop.permute.xlu0 %1493  ;;  %v4938_v10 = vunpack.i.l.bf16 %v6274_v13  ;;  %v880_v22 = vsel %vm873_vm3, %v863_v45, %v4853_v44  ;;  %v914_v9 = vsel %vm856_vm2, %v398_v63, %v4934_v28  ;;  %v4978_v52 = vunpack.i.l.bf16 %v6317_v4  ;;  %v334_v39 = vld [vmem:[#allocation2 + $0x60] sm:$0xff]  ;;  %v3385_v28 = vld [vmem:[#allocation4 + $0x80] sm:$0xff]  ;;  %v3394_v51 = vld [vmem:[#allocation4 + $0xc8] sm:$0xff] }
 0x11a   : > { %1140 = vmatmul.mubr.f32.gmra.mrb[8].mxu0 %v895_v40  ;;  %5261 = vrot.lane.b32.xlu1 %v5260_v7, %s5572_s11  ;;  %v897_v49 = vsel %vm890_vm4, %v880_v22, %v4893_v30  ;;  %v930_v61 = vsel %vm873_vm3, %v914_v9, %v4974_v3  ;;  %v5018_v15 = vunpack.i.l.bf16 %v6394_v24  ;;  %v4818_v56 = vunpack.i.l.bf16 %v6194_v48  ;;  %v400_v44 = vld [vmem:[#allocation2 + $0x81] sm:$0xff]  ;;  %v336_v22 = vld [vmem:[#allocation2 + $0x78] sm:$0xff] }
 0x11b   : > { %5256 = vrot.lane.b32.xlu0 %v5255_v26, %s5574_s13  ;;  %1144 = vmatprep.mubr.f32.mxu0 %v944_v12  ;;  %v4894_v26 = vunpack.i.h.bf16 %v6242_v38  ;;  %v946_v23 = vsel %vm890_vm4, %v930_v61, %v5014_v14  ;;  %v864_v43 = vsel %vm856_vm2, %v333_v53, %v4814_v32  ;;  %v6506_v38 = vld [vmem:[%s7775_s2] ss:$0 sm:$0xff]  ;;  %v4858_v41 = vunpack.i.l.bf16 %v6225_v17  ;;  %v3393_v12 = vld [vmem:[#allocation4 + $0xc0] sm:$0xff]  ;;  %v3386_v9 = vld [vmem:[#allocation4 + $0x88] sm:$0xff] }
 0x11c   : > { %v6471_v47 = vpop.permute.xlu1 %1499  ;;  %v4939_v11 = vunpack.i.h.bf16 %v6274_v13  ;;  %v881_v5 = vsel %vm873_vm3, %v864_v43, %v4854_v21  ;;  %v915_v60 = vsel %vm856_vm2, %v399_v2, %v4938_v10  ;;  %v4979_v37 = vunpack.i.h.bf16 %v6317_v4  ;;  %v401_v10 = vld [vmem:[#allocation2 + $0x91] sm:$0xff] }
 0x11d   : > { %v6477_v27 = vpop.permute.xlu0 %1497  ;;  %v931_v13 = vsel %vm873_vm3, %v915_v60, %v4978_v52  ;;  %v5019_v0 = vunpack.i.h.bf16 %v6394_v24  ;;  %v4823_v30 = vunpack.i.l.bf16 %v6192_v58  ;;  %v4819_v4 = vunpack.i.h.bf16 %v6194_v48  ;;  %v3395_v52 = vld [vmem:[#allocation4 + $0xd0] sm:$0xff] }
 0x11e   : > { %1145 = vmatmul.mubr.f32.gmra.mrb[10].mxu0 %v896_v42  ;;  %5271 = vrot.lane.b32.xlu1 %v5270_v31, %s5574_s13  ;;  %v4898_v31 = vunpack.i.l.bf16 %v6250_v50  ;;  %v947_v29 = vsel %vm890_vm4, %v931_v13, %v5018_v15  ;;  %v865_v3 = vsel %vm856_vm2, %v334_v39, %v4818_v56  ;;  %v4859_v42 = vunpack.i.h.bf16 %v6225_v17  ;;  %v402_v39 = vld [vmem:[#allocation2 + $0x99] sm:$0xff] }
 0x11f   : > { %5266 = vrot.lane.b32.xlu0 %v5265_v33, %s5573_s12  ;;  %1149 = vmatprep.mubr.f32.mxu0 %v945_v20  ;;  %v898_v33 = vsel %vm890_vm4, %v881_v5, %v4894_v26  ;;  %v4943_v54 = vunpack.i.l.bf16 %v6272_v16  ;;  %v882_v14 = vsel %vm873_vm3, %v865_v3, %v4858_v41  ;;  %v916_v24 = vsel %vm856_vm2, %v400_v44, %v4939_v11  ;;  %v335_v20 = vld [vmem:[#allocation2 + $0x68] sm:$0xff]  ;;  %v337_v41 = vld [vmem:[#allocation2 + $0x80] sm:$0xff] }
 0x120   : > { %v6489_v7 = vpop.permute.xlu1 %1503  ;;  %v4899_v32 = vunpack.i.h.bf16 %v6250_v50  ;;  %v4983_v48 = vunpack.i.l.bf16 %v6313_v62  ;;  %v899_v21 = vsel %vm890_vm4, %v882_v14, %v4898_v31  ;;  %v932_v17 = vsel %vm873_vm3, %v916_v24, %v4979_v37  ;;  %v7802_v31 = vld [vmem:[#allocation6_spill] sm:$0xff]  ;;  %v340_v3 = vld [vmem:[#allocation2 + $0xa8] sm:$0xff] }
 0x121   : > { %v6495_v1 = vpop.permute.xlu0 %1501  ;;  %v5023_v53 = vunpack.i.l.bf16 %v6385_v57  ;;  %v948_v26 = vsel %vm890_vm4, %v932_v17, %v5019_v0  ;;  %v4824_v50 = vunpack.i.h.bf16 %v6192_v58  ;;  %v866_v61 = vsel %vm856_vm2, %v335_v20, %v4819_v4  ;;  %v338_v4 = vld [vmem:[#allocation2 + $0x90] sm:$0xff] }
 0x122   : > { %1150 = vmatmul.mubr.f32.gmra.mrb[12].mxu0 %v897_v49  ;;  %3433 = vrot.lane.b32.xlu1 %v3393_v12, %s5572_s11  ;;  %v4863_v49 = vunpack.i.l.bf16 %v6223_v19  ;;  %v4944_v2 = vunpack.i.h.bf16 %v6272_v16  ;;  %v917_v56 = vsel %vm856_vm2, %v401_v10, %v4943_v54  ;;  %v867_v43 = vsel %vm856_vm2, %v336_v22, %v4823_v30  ;;  %v3387_v12 = vld [vmem:[#allocation4 + $0x90] sm:$0xff] }
 0x123   : > { %1154 = vmatprep.mubr.f32.mxu0 %v946_v23  ;;  %1975 = vrot.lane.b32.xlu0 %v6506_v38, %s5574_s13  ;;  %v883_v23 = vsel %vm873_vm3, %v866_v61, %v4859_v42  ;;  %v4903_v58 = vunpack.i.l.bf16 %v6248_v46  ;;  %v4984_v11 = vunpack.i.h.bf16 %v6313_v62  ;;  %v933_v16 = vsel %vm873_vm3, %v917_v56, %v4983_v48  ;;  %v3396_v62 = vld [vmem:[#allocation4 + $0xd8] sm:$0xff]  ;;  %v339_v48 = vld [vmem:[#allocation2 + $0x98] sm:$0xff] }
 0x124   : > { %v6510_v40 = vpop.permute.xlu1 %1507  ;;  %v900_v60 = vsel %vm890_vm4, %v883_v23, %v4899_v32  ;;  %v4833_v37 = vunpack.i.l.bf16 %v7802_v31  ;;  %v5024_v44 = vunpack.i.h.bf16 %v6385_v57  ;;  %v868_v30 = vsel %vm856_vm2, %v337_v41, %v4824_v50  ;;  %v7804_v42 = vld [vmem:[#allocation9_spill] sm:$0xff]  ;;  %v7807_v61 = vld [vmem:[#allocation8_spill] sm:$0xff] }
 0x125   : > { %v6518_v18 = vpop.permute.xlu0 %1505  ;;  %v4868_v54 = vunpack.i.l.bf16 %v7804_v42  ;;  %v4904_v14 = vunpack.i.h.bf16 %v6248_v46  ;;  %v7805_v57 = vld [vmem:[#allocation13_spill] sm:$0xff]  ;;  %v918_v32 = vsel %vm856_vm2, %v402_v39, %v4944_v2  ;;  %v4873_v2 = vunpack.i.l.bf16 %v7807_v61  ;;  %v404_v39 = vld [vmem:[#allocation2 + $0xb1] sm:$0xff] }
 0x126   : > { %1155 = vmatmul.mubr.f32.gmra.mrb[14].mxu0 %v898_v33  ;;  %3435 = vrot.lane.b32.xlu1 %v3394_v51, %s5572_s11  ;;  %v7803_v33 = vld [vmem:[#allocation7_spill] sm:$0xff]  ;;  %v884_v51 = vsel %vm873_vm3, %v867_v43, %v4863_v49  ;;  %v4948_v24 = vunpack.i.l.bf16 %v7805_v57  ;;  %v403_v46 = vld [vmem:[#allocation2 + $0xa9] sm:$0xff]  ;;  %v6587_v49 = vsel %vm856_vm2, %v340_v3, %v4833_v37  ;;  %v4869_v23 = vunpack.i.h.bf16 %v7804_v42  ;;  %v7809_v42 = vld [vmem:[#allocation10_spill] sm:$0xff] }
 0x127   : > { %1159 = vmatprep.mubr.f32.mxu0 %v947_v29  ;;  %3417 = vrot.lane.b32.xlu0 %v3385_v28, %s5572_s11  ;;  %v4828_v13 = vunpack.i.l.bf16 %v7803_v33  ;;  %v949_v28 = vsel %vm890_vm4, %v933_v16, %v5023_v53  ;;  %v4829_v0 = vunpack.i.h.bf16 %v7803_v33  ;;  %v4864_v29 = vunpack.i.h.bf16 %v6223_v19  ;;  %v3388_v53 = vld [vmem:[#allocation4 + $0x98] sm:$0xff] }
 0x128   : > { %v6530_v63 = vpop.permute.xlu1 %1511  ;;  %v4834_v19 = vunpack.i.h.bf16 %v7802_v31  ;;  %v901_v22 = vsel %vm890_vm4, %v884_v51, %v4903_v58  ;;  %v4949_v41 = vunpack.i.h.bf16 %v7805_v57  ;;  %v5029_v51 = vunpack.i.h.bf16 %v6417_v59 }
 0x129   : > { %v6537_v45 = vpop.permute.xlu0 %1509  ;;  %v869_v50 = vsel %vm856_vm2, %v338_v4, %v4828_v13  ;;  %v885_v56 = vsel %vm873_vm3, %v868_v30, %v4864_v29  ;;  %v870_v43 = vsel %vm856_vm2, %v339_v48, %v4829_v0  ;;  %v2320_v0 = vld [vmem:[#allocation2 + $0xd9] sm:$0xff]  ;;  %v3389_v29 = vld [vmem:[#allocation4 + $0xa0] sm:$0xff] }
 0x12a   : > { %1160 = vmatmul.mubr.f32.gmra.mrb[16].mxu0 %v899_v21  ;;  %3437 = vrot.lane.b32.xlu1 %v3395_v52, %s5572_s11  ;;  %v7806_v21 = vld [vmem:[#allocation15_spill] sm:$0xff]  ;;  %v886_v16 = vsel %vm873_vm3, %v869_v50, %v4868_v54  ;;  %v4913_v54 = vunpack.i.l.bf16 %v7809_v42 }
 0x12b   : > { %1164 = vmatprep.mubr.f32.mxu0 %v948_v26  ;;  %3419 = vrot.lane.b32.xlu0 %v3386_v9, %s5572_s11  ;;  %v4988_v17 = vunpack.i.l.bf16 %v7806_v21  ;;  %v934_v9 = vsel %vm873_vm3, %v918_v32, %v4984_v11  ;;  %v5028_v26 = vunpack.i.l.bf16 %v6417_v59  ;;  %v902_v11 = vsel %vm890_vm4, %v885_v56, %v4904_v14  ;;  %v7810_v32 = vld [vmem:[#allocation12_spill] sm:$0xff]  ;;  %v3390_v56 = vld [vmem:[#allocation4 + $0xa8] sm:$0xff] }
 0x12c   : > { %v6548_v15 = vpop.permute.xlu1 %1515  ;;  %v950_v52 = vsel %vm890_vm4, %v934_v9, %v5024_v44  ;;  %v4989_v13 = vunpack.i.h.bf16 %v7806_v21  ;;  %v2255_v44 = vld [vmem:[#allocation2 + $0xc0] sm:$0xff]  ;;  %v4953_v48 = vunpack.i.l.bf16 %v7810_v32  ;;  %v7811_v9 = vld [vmem:[#allocation14_spill] sm:$0xff] }
 0x12d   : > { %v6556_v5 = vpop.permute.xlu0 %1513 }
 0x12e   : > { %1165 = vmatmul.mubr.f32.gmra.mrb[18].mxu0 %v900_v60  ;;  %3439 = vrot.lane.b32.xlu1 %v3396_v62, %s5572_s11  ;;  %v919_v60 = vsel %vm856_vm2, %v403_v46, %v4948_v24  ;;  %v887_v24 = vsel %vm873_vm3, %v870_v43, %v4869_v23  ;;  %v4993_v46 = vunpack.i.l.bf16 %v7811_v9  ;;  %v405_v23 = vld [vmem:[#allocation2 + $0xc1] sm:$0xff]  ;;  %v5033_v43 = vunpack.i.l.bf16 %v6410_v35 }
 0x12f   : > { %1169 = vmatprep.mubr.f32.mxu0 %v949_v28  ;;  %3421 = vrot.lane.b32.xlu0 %v3387_v12, %s5572_s11  ;;  %v7808_v12 = vld [vmem:[#allocation11_spill] sm:$0xff]  ;;  %v935_v62 = vsel %vm873_vm3, %v919_v60, %v4988_v17 }
 0x130   : > { %v6572_v20 = vpop.permute.xlu1 %1519  ;;  %v4909_v37 = vunpack.i.h.bf16 %v7808_v12  ;;  %v4908_v33 = vunpack.i.l.bf16 %v7808_v12  ;;  %v951_v3 = vsel %vm890_vm4, %v935_v62, %v5028_v26  ;;  %v2321_v62 = vld [vmem:[#allocation2 + $0xe1] sm:$0xff] }
 0x131   : > { %v6578_v10 = vpop.permute.xlu0 %1517 }
 0x132   : > { %1170 = vmatmul.mubr.f32.gmra.mrb[20].mxu0 %v901_v22  ;;  %v920_v22 = vsel %vm856_vm2, %v404_v39, %v4949_v41  ;;  %v903_v26 = vsel %vm890_vm4, %v886_v16, %v4908_v33  ;;  %v904_v50 = vsel %vm890_vm4, %v887_v24, %v4909_v37  ;;  %v4954_v33 = vunpack.i.h.bf16 %v7810_v32 }
 0x133   : > { %1174 = vmatprep.mubr.f32.mxu0 %v950_v52  ;;  %3423 = vrot.lane.b32.xlu0 %v3388_v53, %s5572_s11  ;;  %v936_v52 = vsel %vm873_vm3, %v920_v22, %v4989_v13 }
 0x134   : > { %v5042_v58 = vpop.permute.xlu1 %5041  ;;  %v952_v41 = vsel %vm890_vm4, %v936_v52, %v5029_v51  ;;  %v341_v52 = vld [vmem:[#allocation2 + $0xb0] sm:$0xff] }
 0x135   : > { %v5037_v28 = vpop.permute.xlu0 %5036  ;;  %v5044_v14 = vunpack.i.h.bf16 %v5042_v58  ;;  %v5043_v57 = vunpack.i.l.bf16 %v5042_v58 }
 0x136   : > { %v5039_v30 = vunpack.i.h.bf16 %v5037_v28  ;;  %v5038_v4 = vunpack.i.l.bf16 %v5037_v28  ;;  %1175 = vmatmul.mubr.f32.gmra.mrb[22].mxu0 %v902_v11  ;;  %v921_v28 = vsel %vm856_vm2, %v405_v23, %v4953_v48  ;;  %v2322_v23 = vld [vmem:[#allocation2 + $0xf1] sm:$0xff] }
 0x137   : > { %1179 = vmatprep.mubr.f32.mxu0 %v951_v3  ;;  %3425 = vrot.lane.b32.xlu0 %v3389_v29, %s5572_s11  ;;  %v4994_v29 = vunpack.i.h.bf16 %v7811_v9  ;;  %v937_v3 = vsel %vm873_vm3, %v921_v28, %v4993_v46 }
 0x138   : > { %v2785_v21 = vsel %vm856_vm2, %v2255_v44, %v5039_v30  ;;  %v5052_v17 = vpop.permute.xlu1 %5051  ;;  %v2833_v59 = vsel %vm856_vm2, %v2320_v0, %v5038_v4  ;;  %v2256_v0 = vld [vmem:[#allocation2 + $0xc8] sm:$0xff]  ;;  %v953_v48 = vsel %vm890_vm4, %v937_v3, %v5033_v43  ;;  %v2323_v3 = vld [vmem:[#allocation2 + $0xf9] sm:$0xff] }
 0x139   : > { %v5047_v53 = vpop.permute.xlu0 %5046  ;;  %v5054_v60 = vunpack.i.h.bf16 %v5052_v17  ;;  %v5053_v39 = vunpack.i.l.bf16 %v5052_v17  ;;  %v2849_v12 = vsel %vm873_vm3, %v2833_v59, %v5043_v57  ;;  %v2801_v16 = vsel %vm873_vm3, %v2785_v21, %v5044_v14  ;;  %v406_v14 = vld [vmem:[#allocation2 + $0xc9] sm:$0xff] }
 0x13a   : > { %v5049_v58 = vunpack.i.h.bf16 %v5047_v53  ;;  %v5048_v11 = vunpack.i.l.bf16 %v5047_v53  ;;  %1180 = vmatmul.mubr.f32.gmra.mrb[24].mxu0 %v903_v26  ;;  %v5034_v57 = vunpack.i.h.bf16 %v6410_v35  ;;  %v4874_v21 = vunpack.i.h.bf16 %v7807_v61 }
 0x13b   : > { %1184 = vmatprep.mubr.f32.mxu0 %v952_v41  ;;  %3427 = vrot.lane.b32.xlu0 %v3390_v56, %s5572_s11  ;;  %v888_v17 = vsel %vm873_vm3, %v6587_v49, %v4873_v2  ;;  %v2834_v22 = vsel %vm856_vm2, %v2321_v62, %v5053_v39  ;;  %v2786_v59 = vsel %vm856_vm2, %v2256_v0, %v5054_v60  ;;  %v4914_v35 = vunpack.i.h.bf16 %v7809_v42  ;;  %v2257_v56 = vld [vmem:[#allocation2 + $0xd8] sm:$0xff] }
 0x13c   : > { %v2865_v37 = vsel %vm890_vm4, %v2849_v12, %v5048_v11  ;;  %v5062_v13 = vpop.permute.xlu1 %5061  ;;  %v2817_v44 = vsel %vm890_vm4, %v2801_v16, %v5049_v58  ;;  %v922_v53 = vsel %vm856_vm2, %v406_v14, %v4954_v33  ;;  %v905_v49 = vsel %vm890_vm4, %v888_v17, %v4913_v54  ;;  %v2385_v16 = vld [vmem:[#allocation2 + $0xf2] sm:$0xff]  ;;  %v2258_v14 = vld [vmem:[#allocation2 + $0xe0] sm:$0xff] }
 0x13d   : > { %v5057_v51 = vpop.permute.xlu0 %5056  ;;  %3046 = vmatprep.mubr.f32.mxu1 %v2865_v37  ;;  %v5064_v30 = vunpack.i.h.bf16 %v5062_v13  ;;  %v5063_v4 = vunpack.i.l.bf16 %v5062_v13  ;;  %v872_v42 = vsel %vm856_vm2, %v341_v52, %v4834_v19 }
 0x13e   : > { %v5059_v24 = vunpack.i.h.bf16 %v5057_v51  ;;  %v5058_v32 = vunpack.i.l.bf16 %v5057_v51  ;;  %1185 = vmatmul.mubr.f32.gmra.mrb[26].mxu0 %v904_v50  ;;  %3047 = vmatmul.mubr.f32.vlgmr.msra.gmra.mrb[16].mxu1 %v2817_v44  ;;  %v889_v39 = vsel %vm873_vm3, %v872_v42, %v4874_v21 }
 0x13f   : > { %1189 = vmatprep.mubr.f32.mxu0 %v953_v48  ;;  %4745 = vmatpush3.bf16.msra.mxu1 %v6075_v8  ;;  %v938_v8 = vsel %vm873_vm3, %v922_v53, %v4994_v29  ;;  %v906_v13 = vsel %vm890_vm4, %v889_v39, %v4914_v35  ;;  %v2386_v29 = vld [vmem:[#allocation2 + $0xfa] sm:$0xff]  ;;  %v2389_v53 = vld [vmem:[#allocation2 + $0x122] sm:$0xff] }
 0x140   : > { %v5072_v9 = vpop.permute.xlu1 %5071  ;;  %v2850_v46 = vsel %vm873_vm3, %v2834_v22, %v5058_v32  ;;  %v2802_v26 = vsel %vm873_vm3, %v2786_v59, %v5059_v24  ;;  %4744 = vmatprep.subr.bf16.mxu1 %v6097_v6  ;;  %v954_v11 = vsel %vm890_vm4, %v938_v8, %v5034_v57  ;;  %v2388_v22 = vld [vmem:[#allocation2 + $0x112] sm:$0xff] }
 0x141   : > { %v5067_v61 = vpop.permute.xlu0 %5066  ;;  %v2866_v2 = vsel %vm890_vm4, %v2850_v46, %v5063_v4  ;;  %v2818_v50 = vsel %vm890_vm4, %v2802_v26, %v5064_v30  ;;  %v5074_v41 = vunpack.i.h.bf16 %v5072_v9  ;;  %v5073_v60 = vunpack.i.l.bf16 %v5072_v9  ;;  %v2387_v4 = vld [vmem:[#allocation2 + $0x10a] sm:$0xff] }
 0x142   : > { %v5069_v43 = vunpack.i.h.bf16 %v5067_v61  ;;  %v5068_v58 = vunpack.i.l.bf16 %v5067_v61  ;;  %1190 = vmatmul.mubr.f32.gmra.mrb[28].mxu0 %v905_v49  ;;  %3051 = vmatprep.mubr.f32.mxu1 %v2866_v2  ;;  %v2324_v49 = vld [vmem:[#allocation2 + $0x109] sm:$0xff] }
 0x143   : > { %1194 = vmatprep.mubr.f32.mxu0 %v954_v11  ;;  %3052 = vmatmul.mubr.f32.gmra.mrb[18].mxu1 %v2818_v50  ;;  %v2259_v2 = vld [vmem:[#allocation2 + $0xf0] sm:$0xff] }
 0x144   : > { %v5082_v54 = vpop.permute.xlu1 %5081  ;;  %v2835_v12 = vsel %vm856_vm2, %v2322_v23, %v5068_v58  ;;  %v2787_v33 = vsel %vm856_vm2, %v2257_v56, %v5069_v43  ;;  %4746 = vmatpush3.bf16.msra.mxu1 %v6097_v6  ;;  %v2390_v43 = vld [vmem:[#allocation2 + $0x12a] sm:$0xff] }
 0x145   : > { %v5077_v37 = vpop.permute.xlu0 %5076  ;;  %v5084_v62 = vunpack.i.h.bf16 %v5082_v54  ;;  %v5083_v31 = vunpack.i.l.bf16 %v5082_v54  ;;  %v2851_v19 = vsel %vm873_vm3, %v2835_v12, %v5073_v60  ;;  %v2803_v0 = vsel %vm873_vm3, %v2787_v33, %v5074_v41  ;;  %v2391_v60 = vld [vmem:[#allocation2 + $0x13a] sm:$0xff] }
 0x146   : > { %v5079_v44 = vunpack.i.h.bf16 %v5077_v37  ;;  %v5078_v28 = vunpack.i.l.bf16 %v5077_v37  ;;  %1195 = vmatmul.mubr.f32.gmra.mrb[30].mxu0 %v906_v13  ;;  %v2392_v13 = vld [vmem:[#allocation2 + $0x142] sm:$0xff] }
 0x147   : > { %4639 = vmatprep.mubr.msk.f32.mxu0 %vm856_vm2, %v2385_v16  ;;  %v2836_v17 = vsel %vm856_vm2, %v2323_v3, %v5083_v31  ;;  %v2788_v59 = vsel %vm856_vm2, %v2258_v14, %v5084_v62  ;;  %v2325_v31 = vld [vmem:[#allocation2 + $0x111] sm:$0xff] }
 0x148   : > { %v2867_v51 = vsel %vm890_vm4, %v2851_v19, %v5078_v28  ;;  %v5092_v30 = vpop.permute.xlu1 %5091  ;;  %v2819_v6 = vsel %vm890_vm4, %v2803_v0, %v5079_v44  ;;  %v2260_v19 = vld [vmem:[#allocation2 + $0xf8] sm:$0xff] }
 0x149   : > { %v5087_v57 = vpop.permute.xlu0 %5086  ;;  %3056 = vmatprep.mubr.f32.mxu1 %v2867_v51  ;;  %v5094_v24 = vunpack.i.h.bf16 %v5092_v30  ;;  %v5093_v32 = vunpack.i.l.bf16 %v5092_v30  ;;  %v2393_v0 = vld [vmem:[#allocation2 + $0x152] sm:$0xff] }
 0x14a   : > { %v5089_v48 = vunpack.i.h.bf16 %v5087_v57  ;;  %v5088_v21 = vunpack.i.l.bf16 %v5087_v57  ;;  %3057 = vmatmul.mubr.f32.gmra.mrb[20].mxu1 %v2819_v6  ;;  %4640 = vmatmul.mubr.msk.f32.vlgmr.msra.gmra.mrb[32].mxu0 %vm856_vm2, %v2386_v29  ;;  %v2394_v57 = vld [vmem:[#allocation2 + $0x15a] sm:$0xff] }
 0x14b   : > { %4642 = vmatprep.mubr.msk.f32.mxu0 %vm856_vm2, %v2387_v4 }
 0x14c   : > { %v5102_v35 = vpop.permute.xlu1 %5101  ;;  %v2852_v9 = vsel %vm873_vm3, %v2836_v17, %v5088_v21  ;;  %v2804_v46 = vsel %vm873_vm3, %v2788_v59, %v5089_v48  ;;  %v2326_v59 = vld [vmem:[#allocation2 + $0x121] sm:$0xff] }
 0x14d   : > { %v5097_v26 = vpop.permute.xlu0 %5096  ;;  %v2868_v52 = vsel %vm890_vm4, %v2852_v9, %v5093_v32  ;;  %v2820_v61 = vsel %vm890_vm4, %v2804_v46, %v5094_v24  ;;  %v5104_v23 = vunpack.i.h.bf16 %v5102_v35  ;;  %v5103_v56 = vunpack.i.l.bf16 %v5102_v35  ;;  %v2261_v35 = vld [vmem:[#allocation2 + $0x108] sm:$0xff] }
 0x14e   : > { %v5099_v8 = vunpack.i.h.bf16 %v5097_v26  ;;  %v5098_v50 = vunpack.i.l.bf16 %v5097_v26  ;;  %3061 = vmatprep.mubr.f32.mxu1 %v2868_v52  ;;  %4643 = vmatmul.mubr.msk.f32.gmra.mrb[34].mxu0 %vm856_vm2, %v2388_v22 }
 0x14f   : > { %3062 = vmatmul.mubr.f32.gmra.mrb[22].mxu1 %v2820_v61  ;;  %4645 = vmatprep.mubr.msk.f32.mxu0 %vm856_vm2, %v2389_v53 }
 0x150   : > { %v5112_v58 = vpop.permute.xlu1 %5111  ;;  %v2837_v11 = vsel %vm856_vm2, %v2324_v49, %v5098_v50  ;;  %v2789_v41 = vsel %vm856_vm2, %v2259_v2, %v5099_v8 }
 0x151   : > { %v5107_v42 = vpop.permute.xlu0 %5106  ;;  %v5114_v12 = vunpack.i.h.bf16 %v5112_v58  ;;  %v5113_v16 = vunpack.i.l.bf16 %v5112_v58  ;;  %v2853_v33 = vsel %vm873_vm3, %v2837_v11, %v5103_v56  ;;  %v2805_v37 = vsel %vm873_vm3, %v2789_v41, %v5104_v23  ;;  %v3397_v11 = vld [vmem:[#allocation4 + $0xe0] sm:$0xff] }
 0x152   : > { %v5109_v54 = vunpack.i.h.bf16 %v5107_v42  ;;  %v5108_v39 = vunpack.i.l.bf16 %v5107_v42  ;;  %4646 = vmatmul.mubr.msk.f32.gmra.mrb[36].mxu0 %vm856_vm2, %v2390_v43  ;;  %3441 = vrot.lane.b32.xlu1 %v3397_v11, %s5572_s11  ;;  %v2329_v11 = vld [vmem:[#allocation2 + $0x141] sm:$0xff] }
 0x153   : > { %4648 = vmatprep.mubr.msk.f32.mxu0 %vm856_vm2, %v2391_v60  ;;  %v2838_v3 = vsel %vm856_vm2, %v2325_v31, %v5113_v16  ;;  %v2790_v14 = vsel %vm856_vm2, %v2260_v19, %v5114_v12  ;;  %v3398_v19 = vld [vmem:[#allocation4 + $0xe8] sm:$0xff] }
 0x154   : > { %v2869_v44 = vsel %vm890_vm4, %v2853_v33, %v5108_v39  ;;  %v5122_v28 = vpop.permute.xlu1 %5121  ;;  %v2821_v62 = vsel %vm890_vm4, %v2805_v37, %v5109_v54  ;;  %v2327_v54 = vld [vmem:[#allocation2 + $0x129] sm:$0xff] }
 0x155   : > { %v5117_v29 = vpop.permute.xlu0 %5116  ;;  %3066 = vmatprep.mubr.f32.mxu1 %v2869_v44  ;;  %v5124_v51 = vunpack.i.h.bf16 %v5122_v28  ;;  %v5123_v30 = vunpack.i.l.bf16 %v5122_v28  ;;  %v2262_v39 = vld [vmem:[#allocation2 + $0x110] sm:$0xff] }
 0x156   : > { %v5119_v6 = vunpack.i.h.bf16 %v5117_v29  ;;  %v5118_v4 = vunpack.i.l.bf16 %v5117_v29  ;;  %3067 = vmatmul.mubr.f32.gmra.mrb[24].mxu1 %v2821_v62  ;;  %4649 = vmatmul.mubr.msk.f32.gmra.mrb[38].mxu0 %vm856_vm2, %v2392_v13 }
 0x157   : > { %4651 = vmatprep.mubr.msk.f32.mxu0 %vm856_vm2, %v2393_v0  ;;  %v3391_v0 = vld [vmem:[#allocation4 + $0xb0] sm:$0xff]  ;;  %3443 = vrot.lane.b32.xlu1 %v3398_v19, %s5572_s11 }
 0x158   : > { %v5132_v24 = vpop.permute.xlu1 %5131  ;;  %v2854_v32 = vsel %vm873_vm3, %v2838_v3, %v5118_v4  ;;  %v2806_v48 = vsel %vm873_vm3, %v2790_v14, %v5119_v6  ;;  %3429 = vrot.lane.b32.xlu0 %v3391_v0, %s5572_s11  ;;  %v2328_v14 = vld [vmem:[#allocation2 + $0x139] sm:$0xff] }
 0x159   : > { %v5127_v21 = vpop.permute.xlu0 %5126  ;;  %v2870_v17 = vsel %vm890_vm4, %v2854_v32, %v5123_v30  ;;  %v2822_v22 = vsel %vm890_vm4, %v2806_v48, %v5124_v51  ;;  %v5134_v53 = vunpack.i.h.bf16 %v5132_v24  ;;  %v5133_v26 = vunpack.i.l.bf16 %v5132_v24 }
 0x15a   : > { %v5129_v9 = vunpack.i.h.bf16 %v5127_v21  ;;  %v5128_v46 = vunpack.i.l.bf16 %v5127_v21  ;;  %3071 = vmatprep.mubr.f32.mxu1 %v2870_v17  ;;  %4652 = vmatmul.mubr.msk.f32.gmra.mrb[40].mxu0 %vm856_vm2, %v2394_v57  ;;  %v2263_v57 = vld [vmem:[#allocation2 + $0x120] sm:$0xff] }
 0x15b   : > { %3072 = vmatmul.mubr.f32.gmra.mrb[26].mxu1 %v2822_v22  ;;  %v3399_v17 = vld [vmem:[#allocation4 + $0xf0] sm:$0xff] }
 0x15c   : > { %v5142_v52 = vpop.permute.xlu1 %5141  ;;  %v2839_v61 = vsel %vm856_vm2, %v2326_v59, %v5128_v46  ;;  %v2791_v49 = vsel %vm856_vm2, %v2261_v35, %v5129_v9  ;;  %3445 = vrot.lane.b32.xlu1 %v3399_v17, %s5572_s11  ;;  %v3392_v9 = vld [vmem:[#allocation4 + $0xb8] sm:$0xff] }
 0x15d   : > { %v5137_v2 = vpop.permute.xlu0 %5136  ;;  %v5144_v23 = vunpack.i.h.bf16 %v5142_v52  ;;  %v5143_v56 = vunpack.i.l.bf16 %v5142_v52  ;;  %v2855_v43 = vsel %vm873_vm3, %v2839_v61, %v5133_v26  ;;  %v2807_v58 = vsel %vm873_vm3, %v2791_v49, %v5134_v53  ;;  %3431 = vrot.lane.b32.xlu0 %v3392_v9, %s5572_s11 }
 0x15e   : > { %v5139_v8 = vunpack.i.h.bf16 %v5137_v2  ;;  %v5138_v50 = vunpack.i.l.bf16 %v5137_v2 }
 0x15f   : > { %v2840_v28 = vsel %vm856_vm2, %v2327_v54, %v5143_v56  ;;  %v2792_v62 = vsel %vm856_vm2, %v2262_v39, %v5144_v23  ;;  %v3400_v23 = vld [vmem:[#allocation4 + $0xf8] sm:$0xff] }
 0x160   : > { %v2871_v41 = vsel %vm890_vm4, %v2855_v43, %v5138_v50  ;;  %v5152_v60 = vpop.permute.xlu1 %5151  ;;  %v2823_v42 = vsel %vm890_vm4, %v2807_v58, %v5139_v8  ;;  %3447 = vrot.lane.b32.xlu1 %v3400_v23, %s5572_s11 }
 0x161   : > { %v5147_v12 = vpop.permute.xlu0 %5146  ;;  %3076 = vmatprep.mubr.f32.mxu1 %v2871_v41  ;;  %v5154_v16 = vunpack.i.h.bf16 %v5152_v60  ;;  %v5153_v33 = vunpack.i.l.bf16 %v5152_v60  ;;  %v2264_v41 = vld [vmem:[#allocation2 + $0x128] sm:$0xff] }
 0x162   : > { %v5149_v37 = vunpack.i.h.bf16 %v5147_v12  ;;  %v5148_v13 = vunpack.i.l.bf16 %v5147_v12  ;;  %3077 = vmatmul.mubr.f32.gmra.mrb[28].mxu1 %v2823_v42  ;;  %v6695_v44 = vpop.f32.mrb[0].mxu1 }
 0x163   : > { %v6699_v31 = vpop.f32.mrb[1].mxu1 }
 0x164   : > { %v5162_v29 = vpop.permute.xlu1 %5161  ;;  %v2856_v51 = vsel %vm873_vm3, %v2840_v28, %v5148_v13  ;;  %v2808_v30 = vsel %vm873_vm3, %v2792_v62, %v5149_v37  ;;  %3904 = vrot.lane.b32.xlu1 %v6506_v38, %s5574_s13 }
 0x165   : > { %v5157_v6 = vpop.permute.xlu0 %5156  ;;  %v2872_v4 = vsel %vm890_vm4, %v2856_v51, %v5153_v33  ;;  %v2824_v3 = vsel %vm890_vm4, %v2808_v30, %v5154_v16  ;;  %v5164_v48 = vunpack.i.h.bf16 %v5162_v29  ;;  %v5163_v21 = vunpack.i.l.bf16 %v5162_v29  ;;  %v2330_v29 = vld [vmem:[#allocation2 + $0x151] sm:$0xff] }
 0x166   : > { %v5159_v24 = vunpack.i.h.bf16 %v5157_v6  ;;  %v5158_v32 = vunpack.i.l.bf16 %v5157_v6  ;;  %3081 = vmatprep.mubr.f32.mxu1 %v2872_v4  ;;  %v6710_v53 = vpop.f32.mrb[2].mxu1  ;;  %v2265_v51 = vld [vmem:[#allocation2 + $0x138] sm:$0xff] }
 0x167   : > { %3082 = vmatmul.mubr.f32.gmra.mrb[30].mxu1 %v2824_v3  ;;  %v6713_v61 = vpop.f32.mrb[3].mxu1 }
 0x168   : > { %v5172_v22 = vpop.permute.xlu1 %5171  ;;  %v2841_v59 = vsel %vm856_vm2, %v2328_v14, %v5158_v32  ;;  %v2793_v35 = vsel %vm856_vm2, %v2263_v57, %v5159_v24 }
 0x169   : > { %v5167_v46 = vpop.permute.xlu0 %5166  ;;  %v5174_v49 = vunpack.i.h.bf16 %v5172_v22  ;;  %v5173_v2 = vunpack.i.l.bf16 %v5172_v22  ;;  %v2857_v8 = vsel %vm873_vm3, %v2841_v59, %v5163_v21  ;;  %v2809_v50 = vsel %vm873_vm3, %v2793_v35, %v5164_v48 }
 0x16a   : > { %v5169_v26 = vunpack.i.h.bf16 %v5167_v46  ;;  %v5168_v52 = vunpack.i.l.bf16 %v5167_v46  ;;  %v6728_v30 = vpop.f32.mrb[4].mxu1 }
 0x16b   : > { %v2842_v16 = vsel %vm856_vm2, %v2329_v11, %v5173_v2  ;;  %v2794_v33 = vsel %vm856_vm2, %v2264_v41, %v5174_v49  ;;  %v6730_v3 = vpop.f32.mrb[5].mxu1  ;;  %v2331_v49 = vld [vmem:[#allocation2 + $0x159] sm:$0xff] }
 0x16c   : > { %v2873_v56 = vsel %vm890_vm4, %v2857_v8, %v5168_v52  ;;  %v5182_v43 = vpop.permute.xlu1 %5181  ;;  %v2825_v58 = vsel %vm890_vm4, %v2809_v50, %v5169_v26  ;;  %v2266_v2 = vld [vmem:[#allocation2 + $0x140] sm:$0xff] }
 0x16d   : > { %v5177_v60 = vpop.permute.xlu0 %5176  ;;  %3086 = vmatprep.mubr.f32.mxu1 %v2873_v56  ;;  %v5184_v42 = vunpack.i.h.bf16 %v5182_v43  ;;  %v5183_v54 = vunpack.i.l.bf16 %v5182_v43 }
 0x16e   : > { %v5179_v39 = vunpack.i.h.bf16 %v5177_v60  ;;  %v5178_v12 = vunpack.i.l.bf16 %v5177_v60  ;;  %3087 = vmatmul.mubr.f32.gmra.mrb[32].mxu1 %v2825_v58  ;;  %v6738_v56 = vpop.f32.mrb[6].mxu1 }
 0x16f   : > { %v6740_v11 = vpop.f32.mrb[7].mxu1 }
 0x170   : > { %v5192_v37 = vpop.permute.xlu1 %5191  ;;  %v2858_v13 = vsel %vm873_vm3, %v2842_v16, %v5178_v12  ;;  %v2810_v28 = vsel %vm873_vm3, %v2794_v33, %v5179_v39 }
 0x171   : > { %v5187_v62 = vpop.permute.xlu0 %5186  ;;  %v2874_v19 = vsel %vm890_vm4, %v2858_v13, %v5183_v54  ;;  %v2826_v0 = vsel %vm890_vm4, %v2810_v28, %v5184_v42  ;;  %v5194_v14 = vunpack.i.h.bf16 %v5192_v37  ;;  %v5193_v57 = vunpack.i.l.bf16 %v5192_v37  ;;  %v2332_v37 = vld [vmem:[#allocation2 + $0x169] sm:$0xff] }
 0x172   : > { %v5189_v6 = vunpack.i.h.bf16 %v5187_v62  ;;  %v5188_v4 = vunpack.i.l.bf16 %v5187_v62  ;;  %3091 = vmatprep.mubr.f32.mxu1 %v2874_v19  ;;  %v2267_v13 = vld [vmem:[#allocation2 + $0x150] sm:$0xff] }
 0x173   : > { %3092 = vmatmul.mubr.f32.gmra.mrb[34].mxu1 %v2826_v0 }
 0x174   : > { %v5202_v24 = vpop.permute.xlu1 %5201  ;;  %v2843_v38 = vsel %vm856_vm2, %v2330_v29, %v5188_v4  ;;  %v2795_v32 = vsel %vm856_vm2, %v2265_v51, %v5189_v6 }
 0x175   : > { %v5197_v48 = vpop.permute.xlu0 %5196  ;;  %v5204_v22 = vunpack.i.h.bf16 %v5202_v24  ;;  %v5203_v59 = vunpack.i.l.bf16 %v5202_v24  ;;  %v2859_v35 = vsel %vm873_vm3, %v2843_v38, %v5193_v57  ;;  %v2811_v9 = vsel %vm873_vm3, %v2795_v32, %v5194_v14  ;;  %v6750_v14 = vpop.f32.mrb[8].mxu1 }
 0x176   : > { %v5199_v21 = vunpack.i.h.bf16 %v5197_v48  ;;  %v5198_v17 = vunpack.i.l.bf16 %v5197_v48  ;;  %v6752_v38 = vpop.f32.mrb[9].mxu1 }
 0x177   : > { %v2844_v41 = vsel %vm856_vm2, %v2331_v49, %v5203_v59  ;;  %v2796_v60 = vsel %vm856_vm2, %v2266_v2, %v5204_v22 }
 0x178   : > { %v2875_v46 = vsel %vm890_vm4, %v2859_v35, %v5198_v17  ;;  %v5212_v26 = vpop.permute.xlu1 %5211  ;;  %v2827_v52 = vsel %vm890_vm4, %v2811_v9, %v5199_v21  ;;  %v2333_v9 = vld [vmem:[#allocation2 + $0x171] sm:$0xff] }
 0x179   : > { %v5207_v8 = vpop.permute.xlu0 %5206  ;;  %3096 = vmatprep.mubr.f32.mxu1 %v2875_v46  ;;  %v5214_v50 = vunpack.i.h.bf16 %v5212_v26  ;;  %v5213_v23 = vunpack.i.l.bf16 %v5212_v26  ;;  %v2268_v46 = vld [vmem:[#allocation2 + $0x158] sm:$0xff] }
 0x17a   : > { %v5209_v43 = vunpack.i.h.bf16 %v5207_v8  ;;  %v5208_v58 = vunpack.i.l.bf16 %v5207_v8  ;;  %3097 = vmatmul.mubr.f32.gmra.mrb[36].mxu1 %v2827_v52 }
 0x17c   : > { %v5222_v42 = vpop.permute.xlu1 %5221  ;;  %v2860_v54 = vsel %vm873_vm3, %v2844_v41, %v5208_v58  ;;  %v2812_v39 = vsel %vm873_vm3, %v2796_v60, %v5209_v43 }
 0x17d   : > { %v5217_v12 = vpop.permute.xlu0 %5216  ;;  %v2876_v16 = vsel %vm890_vm4, %v2860_v54, %v5213_v23  ;;  %v2828_v33 = vsel %vm890_vm4, %v2812_v39, %v5214_v50  ;;  %v5224_v19 = vunpack.i.h.bf16 %v5222_v42  ;;  %v5223_v0 = vunpack.i.l.bf16 %v5222_v42  ;;  %v2334_v39 = vld [vmem:[#allocation2 + $0x181] sm:$0xff] }
 0x17e   : > { %v5219_v28 = vunpack.i.h.bf16 %v5217_v12  ;;  %v5218_v62 = vunpack.i.l.bf16 %v5217_v12  ;;  %3101 = vmatprep.mubr.f32.mxu1 %v2876_v16  ;;  %v2269_v12 = vld [vmem:[#allocation2 + $0x168] sm:$0xff]  ;;  %v6764_v16 = vpop.f32.mrb[10].mxu1 }
 0x17f   : > { %3102 = vmatmul.mubr.f32.gmra.mrb[38].mxu1 %v2828_v33 }
 0x180   : > { %v5232_v29 = vpop.permute.xlu1 %5231  ;;  %v2845_v51 = vsel %vm856_vm2, %v2332_v37, %v5218_v62  ;;  %v2797_v6 = vsel %vm856_vm2, %v2267_v13, %v5219_v28  ;;  %v6766_v13 = vpop.f32.mrb[11].mxu1 }
 0x181   : > { %v5227_v4 = vpop.permute.xlu0 %5226  ;;  %v5234_v32 = vunpack.i.h.bf16 %v5232_v29  ;;  %v5233_v48 = vunpack.i.l.bf16 %v5232_v29  ;;  %v2861_v21 = vsel %vm873_vm3, %v2845_v51, %v5223_v0  ;;  %v2813_v17 = vsel %vm873_vm3, %v2797_v6, %v5224_v19  ;;  %v6770_v6 = vpop.f32.mrb[12].mxu1 }
 0x182   : > { %v5229_v57 = vunpack.i.h.bf16 %v5227_v4  ;;  %v5228_v24 = vunpack.i.l.bf16 %v5227_v4 }
 0x183   : > { %v2846_v50 = vsel %vm856_vm2, %v2333_v9, %v5233_v48  ;;  %v2798_v23 = vsel %vm856_vm2, %v2268_v46, %v5234_v32  ;;  %v2335_v46 = vld [vmem:[#allocation2 + $0x189] sm:$0xff] }
 0x184   : > { %v2877_v22 = vsel %vm890_vm4, %v2861_v21, %v5228_v24  ;;  %v5242_v59 = vpop.permute.xlu1 %5241  ;;  %v2829_v35 = vsel %vm890_vm4, %v2813_v17, %v5229_v57  ;;  %v6772_v24 = vpop.f32.mrb[13].mxu1 }
 0x185   : > { %v5237_v26 = vpop.permute.xlu0 %5236  ;;  %3106 = vmatprep.mubr.f32.mxu1 %v2877_v22  ;;  %v5244_v52 = vunpack.i.h.bf16 %v5242_v59  ;;  %v5243_v49 = vunpack.i.l.bf16 %v5242_v59  ;;  %v6776_v22 = vpop.f32.mrb[14].mxu1 }
 0x186   : > { %v5239_v2 = vunpack.i.h.bf16 %v5237_v26  ;;  %v5238_v8 = vunpack.i.l.bf16 %v5237_v26  ;;  %3107 = vmatmul.mubr.f32.gmra.mrb[40].mxu1 %v2829_v35  ;;  %v2270_v26 = vld [vmem:[#allocation2 + $0x170] sm:$0xff] }
 0x188   : > { %v5252_v43 = vpop.permute.xlu1 %5251  ;;  %v2862_v58 = vsel %vm873_vm3, %v2846_v50, %v5238_v8  ;;  %v2814_v41 = vsel %vm873_vm3, %v2798_v23, %v5239_v2 }
 0x189   : > { %v5247_v60 = vpop.permute.xlu0 %5246  ;;  %v2878_v42 = vsel %vm890_vm4, %v2862_v58, %v5243_v49  ;;  %v2830_v54 = vsel %vm890_vm4, %v2814_v41, %v5244_v52  ;;  %v5254_v28 = vunpack.i.h.bf16 %v5252_v43  ;;  %v5253_v62 = vunpack.i.l.bf16 %v5252_v43  ;;  %v6780_v52 = vpop.f32.mrb[15].mxu1 }
 0x18a   : > { %v5249_v33 = vunpack.i.h.bf16 %v5247_v60  ;;  %v5248_v37 = vunpack.i.l.bf16 %v5247_v60  ;;  %3111 = vmatprep.mubr.f32.mxu1 %v2878_v42 }
 0x18b   : > { %3112 = vmatmul.mubr.f32.gmra.mrb[42].mxu1 %v2830_v54 }
 0x18c   : > { %v5262_v19 = vpop.permute.xlu1 %5261  ;;  %v2847_v0 = vsel %vm856_vm2, %v2334_v39, %v5248_v37  ;;  %v2799_v29 = vsel %vm856_vm2, %v2269_v12, %v5249_v33  ;;  %v2395_v39 = vld [vmem:[#allocation2 + $0x16a] sm:$0xff]  ;;  %v2396_v12 = vld [vmem:[#allocation2 + $0x172] sm:$0xff]  ;;  %v2397_v33 = vld [vmem:[#allocation2 + $0x182] sm:$0xff] }
 0x18d   : > { %v5257_v51 = vpop.permute.xlu0 %5256  ;;  %v5264_v32 = vunpack.i.h.bf16 %v5262_v19  ;;  %v5263_v48 = vunpack.i.l.bf16 %v5262_v19  ;;  %v2863_v21 = vsel %vm873_vm3, %v2847_v0, %v5253_v62  ;;  %v2815_v17 = vsel %vm873_vm3, %v2799_v29, %v5254_v28  ;;  %v2398_v37 = vld [vmem:[#allocation2 + $0x18a] sm:$0xff]  ;;  %v2399_v28 = vld [vmem:[#allocation2 + $0x19a] sm:$0xff]  ;;  %v2400_v62 = vld [vmem:[#allocation2 + $0x1a2] sm:$0xff] }
 0x18e   : > { %v5259_v4 = vunpack.i.h.bf16 %v5257_v51  ;;  %v5258_v57 = vunpack.i.l.bf16 %v5257_v51  ;;  %v991_v29 = vld [vmem:[%s5645_s10] sm:$0xff] }
 0x18f   : > { %v2848_v43 = vsel %vm856_vm2, %v2335_v46, %v5263_v48  ;;  %v2800_v58 = vsel %vm856_vm2, %v2270_v26, %v5264_v32  ;;  %v992_v32 = vld [vmem:[%s5645_s10 + $0x8] sm:$0xff]  ;;  %v993_v46 = vld [vmem:[%s5645_s10 + $0x10] sm:$0xff] }
 0x190   : > { %v2879_v59 = vsel %vm890_vm4, %v2863_v21, %v5258_v57  ;;  %v5272_v35 = vpop.permute.xlu1 %5271  ;;  %v2831_v9 = vsel %vm890_vm4, %v2815_v17, %v5259_v4 }
 0x191   : > { %v5267_v49 = vpop.permute.xlu0 %5266  ;;  %3116 = vmatprep.mubr.f32.mxu1 %v2879_v59  ;;  %v5274_v2 = vunpack.i.h.bf16 %v5272_v35  ;;  %v5273_v8 = vunpack.i.l.bf16 %v5272_v35 }
 0x192   : > { %v5269_v50 = vunpack.i.h.bf16 %v5267_v49  ;;  %v5268_v23 = vunpack.i.l.bf16 %v5267_v49  ;;  %3117 = vmatmul.mubr.f32.gmra.mrb[44].mxu1 %v2831_v9 }
 0x194   : > { %v2864_v41 = vsel %vm873_vm3, %v2848_v43, %v5268_v23  ;;  %v2816_v60 = vsel %vm873_vm3, %v2800_v58, %v5269_v50  ;;  %v994_v50 = vld [vmem:[%s5645_s10 + $0x18] sm:$0xff]  ;;  %vm2243_vm3 = vcmask 982912  }
 0x195   : > { %v2880_v42 = vsel %vm890_vm4, %v2864_v41, %v5273_v8  ;;  %v2832_v54 = vsel %vm890_vm4, %v2816_v60, %v5274_v2  ;;  %vm2250_vm4 = vcmask 1048512  }
 0x196   : > { %3121 = vmatprep.mubr.f32.mxu1 %v2880_v42  ;;  %v995_v42 = vld [vmem:[%s5645_s10 + $0x20] sm:$0xff] }
 0x197   : > { %3122 = vmatmul.mubr.f32.gmra.mrb[46].mxu1 %v2832_v54 }
 0x198   : > { %4654 = vmatprep.mubr.msk.f32.mxu1 %vm856_vm2, %v2395_v39 }
 0x19b   : > { %4655 = vmatmul.mubr.msk.f32.vlgmr.msra.gmra.mrb[48].mxu1 %vm856_vm2, %v2396_v12 }
 0x19c   : > { %4657 = vmatprep.mubr.msk.f32.mxu1 %vm856_vm2, %v2397_v33 }
 0x19f   : > { %4658 = vmatmul.mubr.msk.f32.gmra.mrb[50].mxu1 %vm856_vm2, %v2398_v37 }
 0x1a0   : > { %4660 = vmatprep.mubr.msk.f32.mxu1 %vm856_vm2, %v2399_v28 }
 0x1a3   : > { %4661 = vmatmul.mubr.msk.f32.gmra.mrb[52].mxu1 %vm856_vm2, %v2400_v62 }
 0x1dd   : > { %v4431_v19 = vpop.f32.mrb[0].mxu0 }
 0x1de   : > { %v4432_v0 = vpop.f32.mrb[1].mxu0 }
 0x1df   : > { %v4433_v51 = vadd.f32 %v4432_v0, %v4431_v19 }
 0x1e1   : > { %v4434_v4 = vpop.f32.mrb[2].mxu0  ;;  %v1122_v57 = vadd.f32 %v4433_v51, %v991_v29  ;;  %v997_v51 = vld [vmem:[%s5645_s10 + $0x30] sm:$0xff] }
 0x1e2   : > { %v4435_v48 = vpop.f32.mrb[3].mxu0 }
 0x1e3   : > { %v4436_v21 = vadd.f32 %v4435_v48, %v4434_v4  ;;  %v6797_v17 = vadd.f32 %v6699_v31, %v1122_v57 }
 0x1e5   : > { %v1127_v59 = vadd.f32 %v4436_v21, %v992_v32  ;;  %5275 = vtanh.f32 %v6797_v17  ;;  %v4437_v35 = vpop.f32.mrb[4].mxu0  ;;  %v998_v21 = vld [vmem:[%s5645_s10 + $0x38] sm:$0xff] }
 0x1e6   : > { %v4438_v9 = vpop.f32.mrb[5].mxu0 }
 0x1e7   : > { %v6802_v26 = vadd.f32 %v6695_v44, %v1127_v59  ;;  %v4439_v49 = vadd.f32 %v4438_v9, %v4437_v35 }
 0x1e9   : > { %5277 = vtanh.f32 %v6802_v26  ;;  %v4440_v2 = vpop.f32.mrb[6].mxu0  ;;  %v1132_v8 = vadd.f32 %v4439_v49, %v993_v46 }
 0x1ea   : > { %v4441_v23 = vpop.f32.mrb[7].mxu0 }
 0x1eb   : > { %v4442_v31 = vadd.f32 %v4441_v23, %v4440_v2  ;;  %v6807_v43 = vadd.f32 %v6713_v61, %v1132_v8  ;;  %v996_v61 = vld [vmem:[%s5645_s10 + $0x28] sm:$0xff]  ;;  %v999_v8 = vld [vmem:[%s5645_s10 + $0x40] sm:$0xff] }
 0x1ed   : > { %v1137_v58 = vadd.f32 %v4442_v31, %v994_v50  ;;  %5279 = vtanh.f32 %v6807_v43  ;;  %v4443_v41 = vpop.f32.mrb[8].mxu0 }
 0x1ee   : > { %v4444_v60 = vpop.f32.mrb[9].mxu0 }
 0x1ef   : > { %v5276_v44 = vpop.eup %5275  ;;  %v6812_v54 = vadd.f32 %v6710_v53, %v1137_v58  ;;  %v4445_v39 = vadd.f32 %v4444_v60, %v4443_v41  ;;  %v1000_v41 = vld [vmem:[%s5645_s10 + $0x48] sm:$0xff] }
 0x1f0   : > { %1569 = vrot.lane.b32.xlu0 %v5276_v44, %s5573_s12 }
 0x1f1   : > { %5281 = vtanh.f32 %v6812_v54  ;;  %v4446_v12 = vpop.f32.mrb[10].mxu0  ;;  %v1142_v33 = vadd.f32 %v4445_v39, %v995_v42 }
 0x1f2   : > { %v4447_v37 = vpop.f32.mrb[11].mxu0 }
 0x1f3   : > { %v5278_v28 = vpop.eup %5277  ;;  %v4448_v62 = vadd.f32 %v4447_v37, %v4446_v12  ;;  %v6818_v19 = vadd.f32 %v6730_v3, %v1142_v33 }
 0x1f4   : > { %1571 = vrot.lane.b32.xlu1 %v5278_v28, %s5573_s12 }
 0x1f5   : > { %v1147_v53 = vadd.f32 %v4448_v62, %v996_v61  ;;  %5283 = vtanh.f32 %v6818_v19  ;;  %v4449_v0 = vpop.f32.mrb[12].mxu0  ;;  %v1001_v61 = vld [vmem:[%s5645_s10 + $0x50] sm:$0xff] }
 0x1f6   : > { %v4450_v29 = vpop.f32.mrb[13].mxu0 }
 0x1f7   : > { %v5280_v4 = vpop.eup %5279  ;;  %v6824_v57 = vadd.f32 %v6728_v30, %v1147_v53  ;;  %v4451_v32 = vadd.f32 %v4450_v29, %v4449_v0  ;;  %v1002_v0 = vld [vmem:[%s5645_s10 + $0x58] sm:$0xff] }
 0x1f8   : > { %1573 = vrot.lane.b32.xlu0 %v5280_v4, %s5573_s12 }
 0x1f9   : > { %5285 = vtanh.f32 %v6824_v57  ;;  %v4452_v3 = vpop.f32.mrb[14].mxu0  ;;  %v1152_v48 = vadd.f32 %v4451_v32, %v997_v51 }
 0x1fa   : > { %v4453_v59 = vpop.f32.mrb[15].mxu0 }
 0x1fb   : > { %v5282_v35 = vpop.eup %5281  ;;  %v4454_v9 = vadd.f32 %v4453_v59, %v4452_v3  ;;  %v6830_v46 = vadd.f32 %v6740_v11, %v1152_v48 }
 0x1fc   : > { %1575 = vrot.lane.b32.xlu1 %v5282_v35, %s5573_s12 }
 0x1fd   : > { %v1157_v30 = vadd.f32 %v4454_v9, %v998_v21  ;;  %5287 = vtanh.f32 %v6830_v46  ;;  %v4455_v49 = vpop.f32.mrb[16].mxu0  ;;  %v1003_v21 = vld [vmem:[%s5645_s10 + $0x60] sm:$0xff] }
 0x1fe   : > { %v4456_v2 = vpop.f32.mrb[17].mxu0 }
 0x1ff   : > { %v5284_v50 = vpop.eup %5283  ;;  %v6836_v23 = vadd.f32 %v6738_v56, %v1157_v30  ;;  %v4457_v31 = vadd.f32 %v4456_v2, %v4455_v49  ;;  %v1004_v2 = vld [vmem:[%s5645_s10 + $0x68] sm:$0xff] }
 0x200   : > { %1577 = vrot.lane.b32.xlu0 %v5284_v50, %s5573_s12 }
 0x201   : > { %5289 = vtanh.f32 %v6836_v23  ;;  %v4458_v11 = vpop.f32.mrb[18].mxu0  ;;  %v1162_v58 = vadd.f32 %v4457_v31, %v999_v8 }
 0x202   : > { %v4459_v60 = vpop.f32.mrb[19].mxu0 }
 0x203   : > { %v5286_v42 = vpop.eup %5285  ;;  %v4460_v44 = vadd.f32 %v4459_v60, %v4458_v11  ;;  %v6842_v39 = vadd.f32 %v6752_v38, %v1162_v58 }
 0x204   : > { %1579 = vrot.lane.b32.xlu1 %v5286_v42, %s5573_s12  ;;  %v1005_v42 = vld [vmem:[%s5645_s10 + $0x70] sm:$0xff] }
 0x205   : > { %v1167_v56 = vadd.f32 %v4460_v44, %v1000_v41  ;;  %5291 = vtanh.f32 %v6842_v39  ;;  %v4461_v12 = vpop.f32.mrb[20].mxu0 }
 0x206   : > { %v4462_v33 = vpop.f32.mrb[21].mxu0 }
 0x207   : > { %v5288_v37 = vpop.eup %5287  ;;  %v6848_v28 = vadd.f32 %v6750_v14, %v1167_v56  ;;  %v4463_v62 = vadd.f32 %v4462_v33, %v4461_v12 }
 0x208   : > { %1581 = vrot.lane.b32.xlu0 %v5288_v37, %s5573_s12 }
 0x209   : > { %5293 = vtanh.f32 %v6848_v28  ;;  %v4464_v38 = vpop.f32.mrb[22].mxu0  ;;  %v1172_v53 = vadd.f32 %v4463_v62, %v1001_v61 }
 0x20a   : > { %v4465_v29 = vpop.f32.mrb[23].mxu0 }
 0x20b   : > { %v5290_v51 = vpop.eup %5289  ;;  %v4466_v4 = vadd.f32 %v4465_v29, %v4464_v38  ;;  %v6854_v32 = vadd.f32 %v6766_v13, %v1172_v53  ;;  %v4349_v53 = vld [vmem:[%s5645_s10 + $0x88] sm:$0xff] }
 0x20c   : > { %1583 = vrot.lane.b32.xlu1 %v5290_v51, %s5573_s12  ;;  %v4348_v51 = vld [vmem:[%s5645_s10 + $0x80] sm:$0xff] }
 0x20d   : > { %v1177_v14 = vadd.f32 %v4466_v4, %v1002_v0  ;;  %5295 = vtanh.f32 %v6854_v32  ;;  %v4467_v3 = vpop.f32.mrb[24].mxu0  ;;  %v1006_v0 = vld [vmem:[%s5645_s10 + $0x78] sm:$0xff] }
 0x20e   : > { %v4468_v48 = vpop.f32.mrb[25].mxu0 }
 0x20f   : > { %v5292_v59 = vpop.eup %5291  ;;  %v6860_v35 = vadd.f32 %v6764_v16, %v1177_v14  ;;  %v4469_v9 = vadd.f32 %v4468_v48, %v4467_v3 }
 0x210   : > { %1585 = vrot.lane.b32.xlu0 %v5292_v59, %s5573_s12 }
 0x211   : > { %5297 = vtanh.f32 %v6860_v35  ;;  %v1182_v13 = vadd.f32 %v4469_v9, %v1003_v21  ;;  %v4470_v30 = vpop.f32.mrb[26].mxu0  ;;  %v4531_v49 = vpop.f32.mrb[16].mxu1 }
 0x212   : > { %v4471_v8 = vpop.f32.mrb[27].mxu0  ;;  %v4532_v50 = vpop.f32.mrb[17].mxu1 }
 0x213   : > { %v5294_v31 = vpop.eup %5293  ;;  %v6866_v11 = vadd.f32 %v6772_v24, %v1182_v13  ;;  %v4472_v58 = vadd.f32 %v4471_v8, %v4470_v30  ;;  %v4533_v41 = vadd.f32 %v4532_v50, %v4531_v49 }
 0x214   : > { %1587 = vrot.lane.b32.xlu1 %v5294_v31, %s5573_s12 }
 0x215   : > { %5299 = vtanh.f32 %v6866_v11  ;;  %v1187_v16 = vadd.f32 %v4472_v58, %v1004_v2  ;;  %v4473_v60 = vpop.f32.mrb[28].mxu0  ;;  %v3049_v9 = vadd.f32 %v4533_v41, %v4348_v51  ;;  %v4350_v2 = vld [vmem:[%s5645_s10 + $0x90] sm:$0xff]  ;;  %v4352_v51 = vld [vmem:[%s5645_s10 + $0xa0] sm:$0xff] }
 0x216   : > { %v4474_v44 = vpop.f32.mrb[29].mxu0  ;;  %v4534_v56 = vpop.f32.mrb[18].mxu1 }
 0x217   : > { %v5296_v12 = vpop.eup %5295  ;;  %v6872_v33 = vadd.f32 %v6770_v6, %v1187_v16  ;;  %v4475_v24 = vadd.f32 %v4474_v44, %v4473_v60  ;;  %v4535_v61 = vpop.f32.mrb[19].mxu1 }
 0x218   : > { %v4536_v37 = vadd.f32 %v4535_v61, %v4534_v56  ;;  %1589 = vrot.lane.b32.xlu0 %v5296_v12, %s5573_s12  ;;  %v4351_v56 = vld [vmem:[%s5645_s10 + $0x98] sm:$0xff] }
 0x219   : > { %5301 = vtanh.f32 %v6872_v33  ;;  %v1192_v62 = vadd.f32 %v4475_v24, %v1005_v42  ;;  %v4476_v38 = vpop.f32.mrb[30].mxu0 }
 0x21a   : > { %v4477_v29 = vpop.f32.mrb[31].mxu0  ;;  %v3054_v3 = vadd.f32 %v4536_v37, %v4349_v53 }
 0x21b   : > { %v5298_v4 = vpop.eup %5297  ;;  %v6880_v14 = vadd.f32 %v6780_v52, %v1192_v62  ;;  %v4478_v6 = vadd.f32 %v4477_v29, %v4476_v38 }
 0x21c   : > { %1591 = vrot.lane.b32.xlu1 %v5298_v4, %s5573_s12 }
 0x21d   : > { %5303 = vtanh.f32 %v6880_v14  ;;  %v1197_v48 = vadd.f32 %v4478_v6, %v1006_v0  ;;  %v4537_v21 = vpop.f32.mrb[20].mxu1  ;;  %v4641_v59 = vpop.f32.mrb[32].mxu0 }
 0x21e   : > { %v6884_v13 = vadd.f32 %v4641_v59, %v3054_v3  ;;  %v4538_v30 = vpop.f32.mrb[21].mxu1  ;;  %v3193_v49 = vpop.f32.mrb[33].mxu0 }
 0x21f   : > { %v5300_v8 = vpop.eup %5299  ;;  %v6888_v52 = vadd.f32 %v6776_v22, %v1197_v48  ;;  %v4539_v50 = vadd.f32 %v4538_v30, %v4537_v21  ;;  %v6890_v31 = vadd.f32 %v3193_v49, %v3049_v9 }
 0x220   : > { %1593 = vrot.lane.b32.xlu0 %v5300_v8, %s5573_s12 }
 0x221   : > { %5305 = vtanh.f32 %v6888_v52  ;;  %v4644_v58 = vpop.f32.mrb[34].mxu0  ;;  %v3059_v16 = vadd.f32 %v4539_v50, %v4350_v2  ;;  %v4353_v2 = vld [vmem:[%s5645_s10 + $0xa8] sm:$0xff] }
 0x222   : > { %v4540_v41 = vpop.f32.mrb[22].mxu1  ;;  %v3203_v60 = vpop.f32.mrb[35].mxu0  ;;  %5307 = vtanh.f32 %v6884_v13 }
 0x223   : > { %v5302_v42 = vpop.eup %5301  ;;  %v6894_v44 = vadd.f32 %v3203_v60, %v3059_v16  ;;  %v4541_v12 = vpop.f32.mrb[23].mxu1  ;;  %5309 = vtanh.f32 %v6890_v31 }
 0x224   : > { %v4542_v24 = vadd.f32 %v4541_v12, %v4540_v41  ;;  %1595 = vrot.lane.b32.xlu1 %v5302_v42, %s5573_s12 }
 0x225   : > { %v4647_v22 = vpop.f32.mrb[36].mxu0 }
 0x226   : > { %v3064_v61 = vadd.f32 %v4542_v24, %v4351_v56  ;;  %v3213_v37 = vpop.f32.mrb[37].mxu0  ;;  %v4354_v56 = vld [vmem:[%s5645_s10 + $0xb0] sm:$0xff] }
 0x227   : > { %v5304_v62 = vpop.eup %5303 }
 0x228   : > { %v6900_v38 = vadd.f32 %v4644_v58, %v3064_v61  ;;  %1597 = vrot.lane.b32.xlu0 %v5304_v62, %s5573_s12  ;;  %v4355_v62 = vld [vmem:[%s5645_s10 + $0xb8] sm:$0xff] }
 0x229   : > { %v4543_v53 = vpop.f32.mrb[24].mxu1  ;;  %v4650_v0 = vpop.f32.mrb[38].mxu0 }
 0x22a   : > { %v4544_v29 = vpop.f32.mrb[25].mxu1  ;;  %v3223_v4 = vpop.f32.mrb[39].mxu0 }
 0x22b   : > { %v5306_v6 = vpop.eup %5305  ;;  %v4545_v3 = vadd.f32 %v4544_v29, %v4543_v53 }
 0x22c   : > { %1599 = vrot.lane.b32.xlu1 %v5306_v6, %s5573_s12  ;;  %v5308_v30 = vpop.eup %5307 }
 0x22d   : > { %v3069_v48 = vadd.f32 %v4545_v3, %v4352_v51  ;;  %v4653_v21 = vpop.f32.mrb[40].mxu0  ;;  %3499 = vrot.lane.b32.xlu0 %v5308_v30, %s5573_s12  ;;  %v5310_v58 = vpop.eup %5309 }
 0x22e   : > { %v4546_v59 = vpop.f32.mrb[26].mxu1  ;;  %v3233_v9 = vpop.f32.mrb[41].mxu0 }
 0x22f   : > { %v6905_v49 = vadd.f32 %v3213_v37, %v3069_v48  ;;  %v4547_v8 = vpop.f32.mrb[27].mxu1 }
 0x230   : > { %v4548_v50 = vadd.f32 %v4547_v8, %v4546_v59  ;;  %3497 = vrot.lane.b32.xlu1 %v5310_v58, %s5573_s12  ;;  %v4356_v59 = vld [vmem:[%s5645_s10 + $0xc0] sm:$0xff] }
 0x232   : > { %v3074_v16 = vadd.f32 %v4548_v50, %v4353_v2  ;;  %v4357_v50 = vld [vmem:[%s5645_s10 + $0xc8] sm:$0xff] }
 0x234   : > { %v6910_v41 = vadd.f32 %v4647_v22, %v3074_v16 }
 0x235   : > { %v4549_v60 = vpop.f32.mrb[28].mxu1 }
 0x236   : > { %v4550_v42 = vpop.f32.mrb[29].mxu1 }
 0x237   : > { %v4551_v12 = vadd.f32 %v4550_v42, %v4549_v60 }
 0x239   : > { %v3079_v24 = vadd.f32 %v4551_v12, %v4354_v56 }
 0x23a   : > { %v4552_v61 = vpop.f32.mrb[30].mxu1 }
 0x23b   : > { %v6913_v37 = vadd.f32 %v3223_v4, %v3079_v24  ;;  %v4553_v53 = vpop.f32.mrb[31].mxu1 }
 0x23c   : > { %v4554_v29 = vadd.f32 %v4553_v53, %v4552_v61 }
 0x23e   : > { %v3084_v51 = vadd.f32 %v4554_v29, %v4355_v62 }
 0x240   : > { %v6916_v6 = vadd.f32 %v4650_v0, %v3084_v51  ;;  %v6924_v51 = vpop.permute.xlu1 %3433 }
 0x241   : > { %v4555_v3 = vpop.f32.mrb[32].mxu1  ;;  %7812 = vst [vmem:[#allocation6_spill] sm:$0xff] %v6924_v51 }
 0x242   : > { %v4556_v48 = vpop.f32.mrb[33].mxu1 }
 0x243   : > { %v4557_v22 = vadd.f32 %v4556_v48, %v4555_v3 }
 0x245   : > { %v3089_v30 = vadd.f32 %v4557_v22, %v4356_v59  ;;  %v6926_v59 = vpop.permute.xlu0 %1975 }
 0x246   : > { %v4558_v2 = vpop.f32.mrb[34].mxu1  ;;  %7813 = vst [vmem:[#allocation7_spill] sm:$0xff] %v6926_v59  ;;  %v4361_v59 = vld [vmem:[%s5645_s10 + $0xe8] sm:$0xff] }
 0x247   : > { %v6919_v8 = vadd.f32 %v3233_v9, %v3089_v30  ;;  %v4559_v58 = vpop.f32.mrb[35].mxu1 }
 0x248   : > { %v4560_v16 = vadd.f32 %v4559_v58, %v4558_v2  ;;  %v4331_v58 = vmul.f32 -1.442695, %v6797_v17  ;;  %v4360_v17 = vld [vmem:[%s5645_s10 + $0xe0] sm:$0xff] }
 0x249   : > { %v6930_v2 = vpop.permute.xlu0 %3417 }
 0x24a   : > { %v3094_v60 = vadd.f32 %v4560_v16, %v4357_v50  ;;  %5311 = vpow2.f32 %v4331_v58  ;;  %v4363_v58 = vld [vmem:[%s5645_s10 + $0xf8] sm:$0xff] }
 0x24c   : > { %v6922_v4 = vadd.f32 %v4653_v21, %v3094_v60  ;;  %v6928_v21 = vpop.permute.xlu1 %3435 }
 0x24d   : > { %v4561_v42 = vpop.f32.mrb[36].mxu1  ;;  %7814 = vst [vmem:[#allocation9_spill] sm:$0xff] %v6928_v21 }
 0x24e   : > { %v4562_v56 = vpop.f32.mrb[37].mxu1 }
 0x24f   : > { %v4563_v12 = vadd.f32 %v4562_v56, %v4561_v42  ;;  %v4359_v42 = vld [vmem:[%s5645_s10 + $0xd8] sm:$0xff] }
 0x250   : > { %v6933_v16 = vpop.permute.xlu1 %3437 }
 0x251   : > { %7815 = vst [vmem:[#allocation13_spill] sm:$0xff] %v6933_v16 }
 0x252   : > { %v4564_v24 = vpop.f32.mrb[38].mxu1 }
 0x253   : > { %v4565_v0 = vpop.f32.mrb[39].mxu1 }
 0x254   : > { %v4566_v61 = vadd.f32 %v4565_v0, %v4564_v24  ;;  %v4358_v24 = vld [vmem:[%s5645_s10 + $0xd0] sm:$0xff]  ;;  %v6943_v51 = vpop.permute.xlu1 %3439 }
 0x259   : > { %v4567_v62 = vpop.f32.mrb[40].mxu1 }
 0x25a   : > { %v4568_v53 = vpop.f32.mrb[41].mxu1 }
 0x25b   : > { %v4569_v29 = vadd.f32 %v4568_v53, %v4567_v62  ;;  %v6937_v62 = vpop.permute.xlu0 %3419  ;;  %v3104_v53 = vadd.f32 %v4566_v61, %v4359_v42 }
 0x25d   : > { %v3109_v61 = vadd.f32 %v4569_v29, %v4360_v17 }
 0x25e   : > { %v4570_v9 = vpop.f32.mrb[42].mxu1 }
 0x25f   : > { %v4571_v3 = vpop.f32.mrb[43].mxu1  ;;  %v6950_v42 = vpop.permute.xlu0 %3421 }
 0x260   : > { %v4572_v48 = vadd.f32 %v4571_v3, %v4570_v9  ;;  %v3099_v3 = vadd.f32 %v4563_v12, %v4358_v24 }
 0x265   : > { %v4573_v22 = vpop.f32.mrb[44].mxu1 }
 0x266   : > { %v4574_v30 = vpop.f32.mrb[45].mxu1 }
 0x267   : > { %v4575_v50 = vadd.f32 %v4574_v30, %v4573_v22 }
 0x26a   : > { %v4576_v60 = vpop.f32.mrb[46].mxu1 }
 0x26b   : > { %v4577_v56 = vpop.f32.mrb[47].mxu1 }
 0x26c   : > { %v4578_v0 = vadd.f32 %v4577_v56, %v4576_v60  ;;  %v3114_v60 = vadd.f32 %v4572_v48, %v4361_v59  ;;  %v6960_v48 = vpop.permute.xlu1 %3441 }
 0x26d   : > { %7816 = vst [vmem:[#allocation15_spill] sm:$0xff] %v6960_v48 }
 0x26e   : > { %v4656_v9 = vpop.f32.mrb[48].mxu1 }
 0x26f   : > { %v6940_v22 = vadd.f32 %v4656_v9, %v3104_v53  ;;  %v3243_v30 = vpop.f32.mrb[49].mxu1  ;;  %v4362_v53 = vld [vmem:[%s5645_s10 + $0xf0] sm:$0xff]  ;;  %v4332_v9 = vmul.f32 -1.442695, %v6802_v26  ;;  %v4334_v26 = vmul.f32 -1.442695, %v6812_v54 }
 0x270   : > { %v6945_v21 = vadd.f32 %v3243_v30, %v3099_v3  ;;  %v3124_v3 = vadd.f32 %v4578_v0, %v4363_v58  ;;  %v3119_v29 = vadd.f32 %v4575_v50, %v4362_v53  ;;  %v4333_v30 = vmul.f32 -1.442695, %v6807_v43  ;;  %v6973_v53 = vpop.permute.xlu1 %3443 }
 0x271   : > { %5313 = vtanh.f32 %v6940_v22  ;;  %v4335_v43 = vmul.f32 -1.442695, %v6818_v19  ;;  %v4337_v19 = vmul.f32 -1.442695, %v6830_v46  ;;  %v4339_v46 = vmul.f32 -1.442695, %v6842_v39 }
 0x272   : > { %5315 = vtanh.f32 %v6945_v21  ;;  %v4659_v56 = vpop.f32.mrb[50].mxu1 }
 0x273   : > { %v6952_v12 = vadd.f32 %v4659_v56, %v3114_v60  ;;  %v3253_v24 = vpop.f32.mrb[51].mxu1  ;;  %5317 = vtanh.f32 %v6900_v38  ;;  %v5312_v56 = vpop.eup %5311 }
 0x274   : > { %v6956_v16 = vadd.f32 %v3253_v24, %v3109_v61  ;;  %5319 = vtanh.f32 %v6894_v44  ;;  %v6968_v24 = vpop.permute.xlu0 %3423  ;;  %v1393_v58 = vadd.f32 1.0, %v5312_v56  ;;  %v4338_v56 = vmul.f32 -1.442695, %v6836_v23 }
 0x275   : > { %5321 = vpow2.f32 %v4332_v9  ;;  %v4340_v23 = vmul.f32 -1.442695, %v6848_v28 }
 0x276   : > { %v4662_v59 = vpop.f32.mrb[52].mxu1  ;;  %5323 = vtanh.f32 %v6952_v12 }
 0x277   : > { %v6963_v17 = vadd.f32 %v4662_v59, %v3124_v3  ;;  %v3263_v60 = vpop.f32.mrb[53].mxu1  ;;  %5325 = vtanh.f32 %v6956_v16  ;;  %v4336_v3 = vmul.f32 -1.442695, %v6824_v57 }
 0x278   : > { %v6966_v61 = vadd.f32 %v3263_v60, %v3119_v29  ;;  %5327 = vpow2.f32 %v4333_v30  ;;  %v6977_v54 = vpop.permute.xlu0 %3425  ;;  %v6986_v30 = vpop.permute.xlu1 %3445 }
 0x279   : > { %5329 = vpow2.f32 %v4334_v26  ;;  %7817 = vst [vmem:[#allocation8_spill] sm:$0xff] %v6977_v54  ;;  %7818 = vst [vmem:[#allocation11_spill] sm:$0xff] %v6986_v30 }
 0x27a   : > { %5331 = vtanh.f32 %v6910_v41 }
 0x27b   : > { %v5314_v0 = vpop.eup %5313  ;;  %5333 = vtanh.f32 %v6905_v49 }
 0x27c   : > { %v5316_v50 = vpop.eup %5315  ;;  %3519 = vrot.lane.b32.xlu0 %v5314_v0, %s5573_s12  ;;  %5335 = vrcp.f32 %v1393_v58  ;;  %v6990_v57 = vpop.permute.xlu0 %3427 }
 0x27d   : > { %3517 = vrot.lane.b32.xlu1 %v5316_v50, %s5573_s12  ;;  %v5318_v9 = vpop.eup %5317  ;;  %5337 = vpow2.f32 %v4335_v43  ;;  %7819 = vst [vmem:[#allocation10_spill] sm:$0xff] %v6990_v57  ;;  %v7000_v39 = vpop.permute.xlu1 %3447 }
 0x27e   : > { %v5320_v59 = vpop.eup %5319  ;;  %5339 = vtanh.f32 %v6963_v17  ;;  %7821 = vst [vmem:[#allocation14_spill] sm:$0xff] %v7000_v39 }
 0x27f   : > { %v5322_v29 = vpop.eup %5321  ;;  %5341 = vtanh.f32 %v6966_v61 }
 0x280   : > { %3503 = vrot.lane.b32.xlu0 %v5318_v9, %s5573_s12  ;;  %v5324_v60 = vpop.eup %5323  ;;  %5343 = vpow2.f32 %v4336_v3  ;;  %v6998_v43 = vpop.permute.xlu0 %3429  ;;  %v1394_v3 = vadd.f32 1.0, %v5322_v29  ;;  %v4342_v29 = vmul.f32 -1.442695, %v6860_v35  ;;  %v4344_v35 = vmul.f32 -1.442695, %v6872_v33 }
 0x281   : > { %3501 = vrot.lane.b32.xlu1 %v5320_v59, %s5573_s12  ;;  %v5326_v26 = vpop.eup %5325  ;;  %5345 = vpow2.f32 %v4337_v19  ;;  %7820 = vst [vmem:[#allocation12_spill] sm:$0xff] %v6998_v43  ;;  %v7015_v43 = vpop.permute.xlu1 %3904 }
 0x282   : > { %v5328_v0 = vpop.eup %5327  ;;  %5347 = vtanh.f32 %v6916_v6  ;;  %7823 = vst [vmem:[#allocation17_spill] sm:$0xff] %v7015_v43 }
 0x283   : > { %v5330_v58 = vpop.eup %5329  ;;  %5349 = vtanh.f32 %v6913_v37  ;;  %v1395_v19 = vadd.f32 1.0, %v5328_v0 }
 0x284   : > { %3523 = vrot.lane.b32.xlu0 %v5324_v60, %s5573_s12  ;;  %v5332_v50 = vpop.eup %5331  ;;  %5351 = vpow2.f32 %v4338_v56  ;;  %v4341_v56 = vmul.f32 -1.442695, %v6854_v32  ;;  %v7011_v39 = vpop.permute.xlu0 %3431  ;;  %v4343_v32 = vmul.f32 -1.442695, %v6866_v11  ;;  %v4345_v11 = vmul.f32 -1.442695, %v6880_v14 }
 0x285   : > { %3521 = vrot.lane.b32.xlu1 %v5326_v26, %s5573_s12  ;;  %v5334_v9 = vpop.eup %5333  ;;  %5353 = vpow2.f32 %v4339_v46  ;;  %v1396_v46 = vadd.f32 1.0, %v5330_v58  ;;  %7822 = vst [vmem:[#allocation16_spill] sm:$0xff] %v7011_v39  ;;  %v4381_v14 = vmul.f32 -1.442695, %v6884_v13 }
 0x286   : > { %v7003_v59 = vpop.eup %5335  ;;  %5355 = vtanh.f32 %v6922_v4 }
 0x287   : > { %v5338_v60 = vpop.eup %5337  ;;  %5357 = vtanh.f32 %v6919_v8 }
 0x288   : > { %3507 = vrot.lane.b32.xlu0 %v5332_v50, %s5573_s12  ;;  %v5340_v28 = vpop.eup %5339  ;;  %5359 = vpow2.f32 %v4340_v23  ;;  %v1397_v0 = vadd.f32 1.0, %v5338_v60 }
 0x289   : > { %3505 = vrot.lane.b32.xlu1 %v5334_v9, %s5573_s12  ;;  %v5342_v26 = vpop.eup %5341  ;;  %5361 = vrcp.f32 %v1394_v3 }
 0x28a   : > { %v5344_v50 = vpop.eup %5343  ;;  %5363 = vrcp.f32 %v1395_v19 }
 0x28b   : > { %v5346_v9 = vpop.eup %5345  ;;  %5365 = vpow2.f32 %v4341_v56  ;;  %v1398_v3 = vadd.f32 1.0, %v5344_v50  ;;  %v1572_v50 = vpop.permute.xlu1 %1571 }
 0x28c   : > { %3527 = vrot.lane.b32.xlu0 %v5340_v28, %s5573_s12  ;;  %v5348_v23 = vpop.eup %5347  ;;  %5367 = vpow2.f32 %v4342_v29  ;;  %v1399_v60 = vadd.f32 1.0, %v5346_v9  ;;  %v1570_v28 = vpop.permute.xlu0 %1569  ;;  %v4346_v29 = vmul.f32 -1.442695, %v6888_v52 }
 0x28d   : > { %3525 = vrot.lane.b32.xlu1 %v5342_v26, %s5573_s12  ;;  %v5350_v58 = vpop.eup %5349  ;;  %5369 = vrcp.f32 %v1396_v46 }
 0x28e   : > { %v5352_v19 = vpop.eup %5351  ;;  %5371 = vrcp.f32 %v1397_v0 }
 0x28f   : > { %v5354_v56 = vpop.eup %5353  ;;  %5373 = vpow2.f32 %v4343_v32  ;;  %v1400_v46 = vadd.f32 1.0, %v5352_v19  ;;  %v1617_v32 = vmul.f32 %v7003_v59, %v1570_v28 }
 0x290   : > { %3511 = vrot.lane.b32.xlu0 %v5348_v23, %s5573_s12  ;;  %v5356_v26 = vpop.eup %5355  ;;  %5375 = vpow2.f32 %v4344_v35  ;;  %v1574_v0 = vpop.permute.xlu0 %1573  ;;  %v1401_v52 = vadd.f32 1.0, %v5354_v56 }
 0x291   : > { %3509 = vrot.lane.b32.xlu1 %v5350_v58, %s5573_s12  ;;  %v5358_v33 = vpop.eup %5357  ;;  %5377 = vrcp.f32 %v1398_v3 }
 0x292   : > { %v5360_v23 = vpop.eup %5359  ;;  %5379 = vrcp.f32 %v1399_v60  ;;  %v1576_v60 = vpop.permute.xlu1 %1575 }
 0x293   : > { %v7024_v9 = vpop.eup %5361  ;;  %5381 = vpow2.f32 %v4345_v11  ;;  %v1402_v19 = vadd.f32 1.0, %v5360_v23 }
 0x294   : > { %3515 = vrot.lane.b32.xlu0 %v5356_v26, %s5573_s12  ;;  %v7028_v35 = vpop.eup %5363  ;;  %5383 = vpow2.f32 %v4346_v29  ;;  %v1618_v58 = vmul.f32 %v7024_v9, %v1572_v50 }
 0x295   : > { %3513 = vrot.lane.b32.xlu1 %v5358_v33, %s5573_s12  ;;  %v5366_v3 = vpop.eup %5365  ;;  %5385 = vrcp.f32 %v1400_v46  ;;  %v1578_v33 = vpop.permute.xlu0 %1577  ;;  %v1619_v13 = vmul.f32 %v7028_v35, %v1574_v0 }
 0x296   : > { %v5368_v26 = vpop.eup %5367  ;;  %5387 = vpow2.f32 %v4381_v14  ;;  %v1403_v56 = vadd.f32 1.0, %v5366_v3  ;;  %v1580_v23 = vpop.permute.xlu1 %1579 }
 0x297   : > { %v7033_v11 = vpop.eup %5369  ;;  %5389 = vrcp.f32 %v1401_v52  ;;  %v1404_v50 = vadd.f32 1.0, %v5368_v26 }
 0x298   : > { %1649 = vrot.lane.b32.xlu0 %v1617_v32, %s5572_s11  ;;  %v7036_v28 = vpop.eup %5371  ;;  %v1620_v29 = vmul.f32 %v7033_v11, %v1576_v60  ;;  %5391 = vrcp.f32 %v1402_v19 }
 0x299   : > { %1651 = vrot.lane.b32.xlu1 %v1618_v58, %s5572_s11  ;;  %v5374_v46 = vpop.eup %5373  ;;  %v1582_v43 = vpop.permute.xlu0 %1581  ;;  %v1621_v0 = vmul.f32 %v7036_v28, %v1578_v33  ;;  %5393 = vrcp.f32 %v1403_v56 }
 0x29a   : > { %v5376_v32 = vpop.eup %5375  ;;  %v1405_v52 = vadd.f32 1.0, %v5374_v46  ;;  %5395 = vrcp.f32 %v1404_v50  ;;  %v1584_v26 = vpop.permute.xlu1 %1583 }
 0x29b   : > { %v7041_v58 = vpop.eup %5377  ;;  %v1406_v19 = vadd.f32 1.0, %v5376_v32 }
 0x29c   : > { %1653 = vrot.lane.b32.xlu0 %v1619_v13, %s5572_s11  ;;  %v7044_v14 = vpop.eup %5379  ;;  %v1622_v3 = vmul.f32 %v7041_v58, %v1580_v23  ;;  %5397 = vrcp.f32 %v1405_v52 }
 0x29d   : > { %1655 = vrot.lane.b32.xlu1 %v1620_v29, %s5572_s11  ;;  %v5382_v60 = vpop.eup %5381  ;;  %v1586_v30 = vpop.permute.xlu0 %1585  ;;  %v1623_v33 = vmul.f32 %v7044_v14, %v1582_v43  ;;  %5399 = vrcp.f32 %v1406_v19 }
 0x29e   : > { %v5384_v13 = vpop.eup %5383  ;;  %v1407_v39 = vadd.f32 1.0, %v5382_v60  ;;  %v1588_v50 = vpop.permute.xlu1 %1587 }
 0x29f   : > { %v7049_v29 = vpop.eup %5385  ;;  %v1408_v23 = vadd.f32 1.0, %v5384_v13 }
 0x2a0   : > { %1657 = vrot.lane.b32.xlu0 %v1621_v0, %s5572_s11  ;;  %v1624_v56 = vmul.f32 %v7049_v29, %v1584_v26  ;;  %v5388_v46 = vpop.eup %5387  ;;  %5401 = vrcp.f32 %v1407_v39 }
 0x2a1   : > { %1659 = vrot.lane.b32.xlu1 %v1622_v3, %s5572_s11  ;;  %v7054_v32 = vpop.eup %5389  ;;  %v1590_v0 = vpop.permute.xlu0 %1589  ;;  %v3321_v43 = vadd.f32 1.0, %v5388_v46  ;;  %5403 = vrcp.f32 %v1408_v23 }
 0x2a2   : > { %v7057_v3 = vpop.eup %5391  ;;  %v1625_v54 = vmul.f32 %v7054_v32, %v1586_v30  ;;  %v1592_v60 = vpop.permute.xlu1 %1591 }
 0x2a3   : > { %v1626_v52 = vmul.f32 %v7057_v3, %v1588_v50  ;;  %v7062_v19 = vpop.eup %5393  ;;  %5405 = vrcp.f32 %v3321_v43 }
 0x2a4   : > { %1661 = vrot.lane.b32.xlu0 %v1623_v33, %s5572_s11  ;;  %v7065_v13 = vpop.eup %5395  ;;  %v1627_v33 = vmul.f32 %v7062_v19, %v1590_v0 }
 0x2a5   : > { %1663 = vrot.lane.b32.xlu1 %v1624_v56, %s5572_s11  ;;  %v1594_v26 = vpop.permute.xlu0 %1593  ;;  %v1628_v30 = vmul.f32 %v7065_v13, %v1592_v60 }
 0x2a6   : > { %v1596_v39 = vpop.permute.xlu1 %1595  ;;  %v7070_v56 = vpop.eup %5397 }
 0x2a7   : > { %v1629_v23 = vmul.f32 %v7070_v56, %v1594_v26 }
 0x2a8   : > { %1665 = vrot.lane.b32.xlu0 %v1625_v54, %s5572_s11  ;;  %v7073_v54 = vpop.eup %5399 }
 0x2a9   : > { %1667 = vrot.lane.b32.xlu1 %v1626_v52, %s5572_s11  ;;  %v1598_v46 = vpop.permute.xlu0 %1597  ;;  %v1630_v50 = vmul.f32 %v7073_v54, %v1596_v39  ;;  %v4391_v39 = vmul.f32 -1.442695, %v6940_v22 }
 0x2aa   : > { %v1600_v52 = vpop.permute.xlu1 %1599  ;;  %v7078_v0 = vpop.eup %5401 }
 0x2ab   : > { %v7081_v43 = vpop.eup %5403  ;;  %v1631_v60 = vmul.f32 %v7078_v0, %v1598_v46  ;;  %5407 = vpow2.f32 %v4391_v39  ;;  %v4390_v46 = vmul.f32 -1.442695, %v6945_v21 }
 0x2ac   : > { %1669 = vrot.lane.b32.xlu0 %v1627_v33, %s5572_s11  ;;  %v1632_v33 = vmul.f32 %v7081_v43, %v1600_v52  ;;  %v4393_v52 = vmul.f32 -1.442695, %v6952_v12  ;;  %v4385_v12 = vmul.f32 -1.442695, %v6910_v41 }
 0x2ad   : > { %1671 = vrot.lane.b32.xlu1 %v1628_v30, %s5572_s11  ;;  %v3500_v30 = vpop.permute.xlu0 %3499  ;;  %v7086_v57 = vpop.eup %5405 }
 0x2ae   : > { %v3546_v26 = vmul.f32 %v7086_v57, %v3500_v30 }
 0x2b0   : > { %1673 = vrot.lane.b32.xlu0 %v1629_v23, %s5572_s11  ;;  %v4380_v23 = vmul.f32 -1.442695, %v6890_v31 }
 0x2b1   : > { %1675 = vrot.lane.b32.xlu1 %v1630_v50, %s5572_s11  ;;  %v4383_v50 = vmul.f32 -1.442695, %v6900_v38  ;;  %v4392_v38 = vmul.f32 -1.442695, %v6956_v16 }
 0x2b2   : > { %5409 = vpow2.f32 %v4380_v23 }
 0x2b3   : > { %5411 = vpow2.f32 %v4383_v50  ;;  %v3498_v50 = vpop.permute.xlu1 %3497 }
 0x2b4   : > { %1677 = vrot.lane.b32.xlu0 %v1631_v60, %s5572_s11  ;;  %5413 = vpow2.f32 %v4390_v46 }
 0x2b5   : > { %1679 = vrot.lane.b32.xlu1 %v1632_v33, %s5572_s11  ;;  %v5408_v60 = vpop.eup %5407  ;;  %v4382_v33 = vmul.f32 -1.442695, %v6894_v44  ;;  %5415 = vpow2.f32 %v4393_v52 }
 0x2b6   : > { %v3331_v22 = vadd.f32 1.0, %v5408_v60 }
 0x2b7   : > { %5417 = vpow2.f32 %v4382_v33  ;;  %v4384_v33 = vmul.f32 -1.442695, %v6905_v49 }
 0x2b8   : > { %3579 = vrot.lane.b32.xlu0 %v3546_v26, %s5572_s11  ;;  %v4394_v26 = vmul.f32 -1.442695, %v6966_v61  ;;  %v4395_v61 = vmul.f32 -1.442695, %v6963_v17 }
 0x2ba   : > { %5419 = vpow2.f32 %v4394_v26 }
 0x2bb   : > { %5421 = vrcp.f32 %v3331_v22 }
 0x2bc   : > { %v5410_v30 = vpop.eup %5409 }
 0x2bd   : > { %v5412_v48 = vpop.eup %5411  ;;  %v3320_v31 = vadd.f32 1.0, %v5410_v30 }
 0x2be   : > { %v3323_v39 = vadd.f32 1.0, %v5412_v48  ;;  %v5414_v21 = vpop.eup %5413 }
 0x2bf   : > { %5423 = vrcp.f32 %v3320_v31  ;;  %v3330_v44 = vadd.f32 1.0, %v5414_v21  ;;  %v5416_v23 = vpop.eup %5415  ;;  %v4387_v21 = vmul.f32 -1.442695, %v6916_v6 }
 0x2c0   : > { %5425 = vpow2.f32 %v4392_v38  ;;  %v3333_v52 = vadd.f32 1.0, %v5416_v23 }
 0x2c1   : > { %5427 = vrcp.f32 %v3323_v39  ;;  %v5418_v46 = vpop.eup %5417 }
 0x2c2   : > { %5429 = vpow2.f32 %v4385_v12  ;;  %v3322_v22 = vadd.f32 1.0, %v5418_v46 }
 0x2c3   : > { %5431 = vrcp.f32 %v3330_v44 }
 0x2c4   : > { %v5420_v60 = vpop.eup %5419  ;;  %5433 = vpow2.f32 %v4395_v61 }
 0x2c5   : > { %v7101_v16 = vpop.eup %5421  ;;  %5435 = vrcp.f32 %v3333_v52  ;;  %v3334_v17 = vadd.f32 1.0, %v5420_v60  ;;  %v4386_v52 = vmul.f32 -1.442695, %v6913_v37 }
 0x2c6   : > { %5437 = vpow2.f32 %v4384_v33 }
 0x2c7   : > { %5439 = vrcp.f32 %v3322_v22  ;;  %v4389_v22 = vmul.f32 -1.442695, %v6922_v4 }
 0x2c8   : > { %5441 = vrcp.f32 %v3334_v17 }
 0x2c9   : > { %v7105_v26 = vpop.eup %5423  ;;  %5443 = vpow2.f32 %v4387_v21 }
 0x2ca   : > { %v5426_v31 = vpop.eup %5425  ;;  %v3545_v49 = vmul.f32 %v7105_v26, %v3498_v50 }
 0x2cb   : > { %v7108_v38 = vpop.eup %5427  ;;  %v3332_v23 = vadd.f32 1.0, %v5426_v31 }
 0x2cc   : > { %v5430_v61 = vpop.eup %5429 }
 0x2cd   : > { %v7115_v46 = vpop.eup %5431  ;;  %v3325_v50 = vadd.f32 1.0, %v5430_v61  ;;  %5445 = vrcp.f32 %v3332_v23 }
 0x2ce   : > { %v5434_v33 = vpop.eup %5433  ;;  %5447 = vpow2.f32 %v4386_v52 }
 0x2cf   : > { %5449 = vrcp.f32 %v3325_v50  ;;  %v3335_v37 = vadd.f32 1.0, %v5434_v33 }
 0x2d0   : > { %5451 = vpow2.f32 %v4389_v22 }
 0x2d1   : > { %5453 = vrcp.f32 %v3335_v37 }
 0x2ee   : > { %v3520_v48 = vpop.permute.xlu0 %3519 }
 0x2ef   : > { %v3556_v41 = vmul.f32 %v7101_v16, %v3520_v48  ;;  %v3518_v30 = vpop.permute.xlu1 %3517 }
 0x2f0   : > { %v3555_v6 = vmul.f32 %v7115_v46, %v3518_v30 }
 0x2f1   : > { %3599 = vrot.lane.b32.xlu0 %v3556_v41, %s5572_s11  ;;  %v7120_v41 = vpop.eup %5435 }
 0x2f2   : > { %v3504_v39 = vpop.permute.xlu0 %3503 }
 0x2f3   : > { %v3548_v12 = vmul.f32 %v7108_v38, %v3504_v39  ;;  %v3502_v44 = vpop.permute.xlu1 %3501  ;;  %v5438_v39 = vpop.eup %5437 }
 0x2f4   : > { %v7125_v30 = vpop.eup %5439  ;;  %v3324_v61 = vadd.f32 1.0, %v5438_v39 }
 0x2f5   : > { %3583 = vrot.lane.b32.xlu1 %v3548_v12, %s5572_s11  ;;  %3577 = vrot.lane.b32.xlu0 %v3545_v49, %s5572_s11  ;;  %v7127_v21 = vpop.eup %5441  ;;  %v4388_v49 = vmul.f32 -1.442695, %v6919_v8  ;;  %v3547_v12 = vmul.f32 %v7125_v30, %v3502_v44 }
 0x2f6   : > { %v3524_v48 = vpop.permute.xlu0 %3523  ;;  %7824 = vst [vmem:[#allocation18_spill] sm:$0xff] %v7127_v21  ;;  %v5444_v52 = vpop.eup %5443 }
 0x2f7   : > { %v3522_v60 = vpop.permute.xlu1 %3521  ;;  %v3558_v31 = vmul.f32 %v7120_v41, %v3524_v48  ;;  %5455 = vpow2.f32 %v4388_v49  ;;  %v3327_v33 = vadd.f32 1.0, %v5444_v52 }
 0x2f8   : > { %5457 = vrcp.f32 %v3324_v61 }
 0x2f9   : > { %3597 = vrot.lane.b32.xlu0 %v3555_v6, %s5572_s11  ;;  %v7133_v6 = vpop.eup %5445  ;;  %5459 = vrcp.f32 %v3327_v33  ;;  %v1540_v33 = vmul.f32 %v7033_v11, %v6451_v55 }
 0x2fa   : > { %v3508_v50 = vpop.permute.xlu0 %3507  ;;  %v3557_v48 = vmul.f32 %v7133_v6, %v3522_v60  ;;  %v5448_v44 = vpop.eup %5447  ;;  %v1538_v60 = vmul.f32 %v7024_v9, %v6431_v36 }
 0x2fb   : > { %v3506_v17 = vpop.permute.xlu1 %3505  ;;  %v7138_v22 = vpop.eup %5449  ;;  %v3326_v39 = vadd.f32 1.0, %v5448_v44 }
 0x2fd   : > { %3603 = vrot.lane.b32.xlu0 %v3558_v31, %s5572_s11  ;;  %v3550_v31 = vmul.f32 %v7138_v22, %v3508_v50  ;;  %5461 = vrcp.f32 %v3326_v39 }
 0x2ff   : > { %v3526_v23 = vpop.permute.xlu1 %3525 }
 0x300   : > { %v3559_v4 = vmul.f32 %v7127_v21, %v3526_v23  ;;  %v5452_v23 = vpop.eup %5451 }
 0x301   : > { %3581 = vrot.lane.b32.xlu0 %v3547_v12, %s5572_s11  ;;  %v3528_v12 = vpop.permute.xlu0 %3527  ;;  %v7142_v49 = vpop.eup %5453  ;;  %v3329_v52 = vadd.f32 1.0, %v5452_v23 }
 0x302   : > { %3605 = vrot.lane.b32.xlu1 %v3559_v4, %s5572_s11  ;;  %v3560_v61 = vmul.f32 %v7142_v49, %v3528_v12  ;;  %v5456_v21 = vpop.eup %5455 }
 0x303   : > { %v3510_v8 = vpop.permute.xlu1 %3509  ;;  %v7148_v50 = vpop.eup %5457  ;;  %v3328_v12 = vadd.f32 1.0, %v5456_v21 }
 0x304   : > { %v3549_v44 = vmul.f32 %v7148_v50, %v3506_v17  ;;  %v7155_v23 = vpop.eup %5459 }
 0x305   : > { %3601 = vrot.lane.b32.xlu0 %v3557_v48, %s5572_s11  ;;  %v3512_v36 = vpop.permute.xlu0 %3511 }
 0x307   : > { %v3514_v37 = vpop.permute.xlu1 %3513  ;;  %v7160_v55 = vpop.eup %5461 }
 0x308   : > { %v3551_v17 = vmul.f32 %v7160_v55, %v3510_v8 }
 0x309   : > { %3587 = vrot.lane.b32.xlu0 %v3550_v31, %s5572_s11 }
 0x30b   : > { %v1652_v4 = vpop.permute.xlu1 %1651 }
 0x30c   : > { %v1698_v48 = vadd.f32 %v1652_v4, %v1538_v60  ;;  %v3552_v60 = vmul.f32 %v7155_v23, %v3512_v36 }
 0x30d   : > { %3607 = vrot.lane.b32.xlu0 %v3560_v61, %s5572_s11  ;;  %v3516_v61 = vpop.permute.xlu0 %3515 }
 0x30e   : > { %5463 = vtanh.f32 %v1698_v48  ;;  %1827 = vrot.lane.b32.xlu1 %v1698_v48, %s5574_s13 }
 0x30f   : > { %v1656_v31 = vpop.permute.xlu1 %1655  ;;  %5465 = vrcp.f32 %v3329_v52  ;;  %v1542_v52 = vmul.f32 %v7041_v58, %v6471_v47 }
 0x310   : > { %v1700_v39 = vadd.f32 %v1656_v31, %v1540_v33  ;;  %5467 = vrcp.f32 %v3328_v12  ;;  %v1537_v31 = vmul.f32 %v7003_v59, %v6437_v34 }
 0x311   : > { %3585 = vrot.lane.b32.xlu0 %v3549_v44, %s5572_s11  ;;  %v1650_v36 = vpop.permute.xlu0 %1649 }
 0x312   : > { %1831 = vrot.lane.b32.xlu1 %v1700_v39, %s5574_s13  ;;  %5469 = vtanh.f32 %v1700_v39  ;;  %v1697_v47 = vadd.f32 %v1650_v36, %v1537_v31 }
 0x313   : > { %v1660_v21 = vpop.permute.xlu1 %1659 }
 0x314   : > { %v1702_v33 = vadd.f32 %v1660_v21, %v1542_v52  ;;  %v1539_v21 = vmul.f32 %v7028_v35, %v6457_v25  ;;  %v1541_v25 = vmul.f32 %v7036_v28, %v6477_v27  ;;  %v1543_v27 = vmul.f32 %v7044_v14, %v6495_v1 }
 0x315   : > { %3591 = vrot.lane.b32.xlu0 %v3552_v60, %s5572_s11  ;;  %v1545_v1 = vmul.f32 %v7054_v32, %v6518_v18  ;;  %v1547_v18 = vmul.f32 %v7062_v19, %v6537_v45 }
 0x316   : > { %5471 = vtanh.f32 %v1702_v33 }
 0x317   : > { %v1664_v39 = vpop.permute.xlu1 %1663  ;;  %5473 = vtanh.f32 %v1697_v47 }
 0x318   : > { %v5464_v4 = vpop.eup %5463 }
 0x319   : > { %1747 = vrot.lane.b32.xlu1 %v5464_v4, %s5573_s12  ;;  %3589 = vrot.lane.b32.xlu0 %v3551_v17, %s5572_s11  ;;  %v7167_v48 = vpop.eup %5465  ;;  %v1544_v17 = vmul.f32 %v7049_v29, %v6489_v7  ;;  %v1546_v7 = vmul.f32 %v7057_v3, %v6510_v40  ;;  %v1548_v40 = vmul.f32 %v7065_v13, %v6530_v63 }
 0x31a   : > { %v3554_v44 = vmul.f32 %v7167_v48, %v3516_v61  ;;  %v7174_v8 = vpop.eup %5467  ;;  %v1654_v61 = vpop.permute.xlu0 %1653  ;;  %v1550_v63 = vmul.f32 %v7073_v54, %v6548_v15  ;;  %v1552_v15 = vmul.f32 %v7081_v43, %v6572_v20 }
 0x31b   : > { %v3553_v12 = vmul.f32 %v7174_v8, %v3514_v37  ;;  %v1704_v34 = vadd.f32 %v1664_v39, %v1544_v17  ;;  %v1699_v37 = vadd.f32 %v1654_v61, %v1539_v21  ;;  %v1668_v4 = vpop.permute.xlu1 %1667 }
 0x31c   : > { %v5470_v60 = vpop.eup %5469 }
 0x31d   : > { %1835 = vrot.lane.b32.xlu1 %v1702_v33, %s5574_s13  ;;  %3595 = vrot.lane.b32.xlu0 %v3554_v44, %s5572_s11  ;;  %5475 = vtanh.f32 %v1704_v34  ;;  %v1706_v33 = vadd.f32 %v1668_v4, %v1546_v7 }
 0x31e   : > { %5477 = vtanh.f32 %v1699_v37  ;;  %v1658_v44 = vpop.permute.xlu0 %1657 }
 0x31f   : > { %v1701_v31 = vadd.f32 %v1658_v44, %v1541_v25  ;;  %5479 = vtanh.f32 %v1706_v33 }
 0x320   : > { %v5472_v52 = vpop.eup %5471 }
 0x321   : > { %1751 = vrot.lane.b32.xlu1 %v5470_v60, %s5573_s12  ;;  %3593 = vrot.lane.b32.xlu0 %v3553_v12, %s5572_s11  ;;  %v5474_v36 = vpop.eup %5473  ;;  %5481 = vtanh.f32 %v1701_v31 }
 0x322   : > { %v1662_v60 = vpop.permute.xlu0 %1661 }
 0x325   : > { %1839 = vrot.lane.b32.xlu1 %v1704_v34, %s5574_s13  ;;  %1825 = vrot.lane.b32.xlu0 %v1697_v47, %s5574_s13  ;;  %v1672_v47 = vpop.permute.xlu1 %1671  ;;  %v1703_v34 = vadd.f32 %v1662_v60, %v1543_v27 }
 0x326   : > { %v1708_v39 = vadd.f32 %v1672_v47, %v1548_v40  ;;  %v1549_v40 = vmul.f32 %v7070_v56, %v6556_v5  ;;  %v3466_v5 = vmul.f32 %v7086_v57, %v6937_v62 }
 0x327   : > { %v5476_v12 = vpop.eup %5475 }
 0x328   : > { %v5478_v17 = vpop.eup %5477  ;;  %5483 = vtanh.f32 %v1708_v39 }
 0x329   : > { %1755 = vrot.lane.b32.xlu1 %v5472_v52, %s5573_s12  ;;  %1829 = vrot.lane.b32.xlu0 %v1699_v37, %s5574_s13  ;;  %v5480_v61 = vpop.eup %5479  ;;  %v1676_v21 = vpop.permute.xlu1 %1675  ;;  %5485 = vtanh.f32 %v1703_v34 }
 0x32a   : > { %v1666_v37 = vpop.permute.xlu0 %1665  ;;  %v1710_v4 = vadd.f32 %v1676_v21, %v1550_v63  ;;  %v3476_v63 = vmul.f32 %v7101_v16, %v6943_v51  ;;  %v7825_v51 = vld [vmem:[#allocation13_spill] sm:$0xff] }
 0x32b   : > { %v5482_v52 = vpop.eup %5481  ;;  %v1705_v7 = vadd.f32 %v1666_v37, %v1545_v1  ;;  %v3468_v1 = vmul.f32 %v7108_v38, %v6968_v24  ;;  %v3478_v24 = vmul.f32 %v7120_v41, %v6973_v53 }
 0x32d   : > { %1843 = vrot.lane.b32.xlu1 %v1706_v33, %s5574_s13  ;;  %1745 = vrot.lane.b32.xlu0 %v5474_v36, %s5573_s12  ;;  %v1680_v44 = vpop.permute.xlu1 %1679  ;;  %5487 = vtanh.f32 %v1705_v7 }
 0x32e   : > { %v1670_v36 = vpop.permute.xlu0 %1669  ;;  %v7213_v25 = vadd.f32 %v1680_v44, %v1552_v15  ;;  %v3475_v15 = vmul.f32 %v7115_v46, %v7825_v51 }
 0x32f   : > { %v1707_v47 = vadd.f32 %v1670_v36, %v1547_v18 }
 0x331   : > { %1759 = vrot.lane.b32.xlu1 %v5476_v12, %s5573_s12  ;;  %1833 = vrot.lane.b32.xlu0 %v1701_v31, %s5574_s13  ;;  %5489 = vtanh.f32 %v1707_v47 }
 0x332   : > { %v5484_v33 = vpop.eup %5483  ;;  %v1674_v20 = vpop.permute.xlu0 %1673 }
 0x333   : > { %v5486_v31 = vpop.eup %5485 }
 0x335   : > { %1847 = vrot.lane.b32.xlu1 %v1708_v39, %s5574_s13  ;;  %1749 = vrot.lane.b32.xlu0 %v5478_v17, %s5573_s12  ;;  %v1709_v39 = vadd.f32 %v1674_v20, %v1549_v40  ;;  %v1551_v17 = vmul.f32 %v7078_v0, %v6578_v10 }
 0x336   : > { %v1678_v60 = vpop.permute.xlu0 %1677 }
 0x337   : > { %v5488_v12 = vpop.eup %5487  ;;  %5491 = vtanh.f32 %v1709_v39  ;;  %v1711_v27 = vadd.f32 %v1678_v60, %v1551_v17  ;;  %v7827_v17 = vld [vmem:[#allocation10_spill] sm:$0xff] }
 0x338   : > { %5493 = vtanh.f32 %v1710_v4 }
 0x339   : > { %1763 = vrot.lane.b32.xlu1 %v5480_v61, %s5573_s12  ;;  %1837 = vrot.lane.b32.xlu0 %v1703_v34, %s5574_s13  ;;  %5495 = vtanh.f32 %v1711_v27 }
 0x33a   : > { %v3580_v61 = vpop.permute.xlu0 %3579 }
 0x33b   : > { %v5490_v45 = vpop.eup %5489  ;;  %v3626_v21 = vadd.f32 %v3580_v61, %v3466_v5 }
 0x33d   : > { %1851 = vrot.lane.b32.xlu1 %v1710_v4, %s5574_s13  ;;  %1753 = vrot.lane.b32.xlu0 %v5482_v52, %s5573_s12  ;;  %v3465_v52 = vmul.f32 %v7105_v26, %v6930_v2  ;;  %5497 = vtanh.f32 %v3626_v21 }
 0x341   : > { %1767 = vrot.lane.b32.xlu1 %v5484_v33, %s5573_s12  ;;  %1841 = vrot.lane.b32.xlu0 %v1705_v7, %s5574_s13  ;;  %v5492_v34 = vpop.eup %5491 }
 0x342   : > { %v5494_v18 = vpop.eup %5493 }
 0x343   : > { %v5496_v40 = vpop.eup %5495 }
 0x345   : > { %1855 = vrot.lane.b32.xlu1 %v7213_v25, %s5574_s13  ;;  %1757 = vrot.lane.b32.xlu0 %v5486_v31, %s5573_s12 }
 0x349   : > { %1845 = vrot.lane.b32.xlu0 %v1707_v47, %s5574_s13  ;;  %v3467_v47 = vmul.f32 %v7125_v30, %v6950_v42  ;;  %v3470_v42 = vmul.f32 %v7138_v22, %v7827_v17  ;;  %v7832_v17 = vld [vmem:[#allocation12_spill] sm:$0xff] }
 0x34d   : > { %1761 = vrot.lane.b32.xlu0 %v5488_v12, %s5573_s12 }
 0x351   : > { %1849 = vrot.lane.b32.xlu0 %v1709_v39, %s5574_s13  ;;  %v7826_v39 = vld [vmem:[#allocation15_spill] sm:$0xff] }
 0x352   : > { %v3477_v53 = vmul.f32 %v7133_v6, %v7826_v39 }
 0x355   : > { %1765 = vrot.lane.b32.xlu0 %v5490_v45, %s5573_s12 }
 0x359   : > { %1853 = vrot.lane.b32.xlu0 %v1711_v27, %s5574_s13 }
 0x35d   : > { %1769 = vrot.lane.b32.xlu0 %v5492_v34, %s5573_s12 }
 0x361   : > { %3755 = vrot.lane.b32.xlu0 %v3626_v21, %s5574_s13  ;;  %v5498_v21 = vpop.eup %5497 }
 0x363   : > { %v3600_v37 = vpop.permute.xlu0 %3599 }
 0x364   : > { %v3636_v10 = vadd.f32 %v3600_v37, %v3476_v63  ;;  %v7828_v37 = vld [vmem:[#allocation8_spill] sm:$0xff] }
 0x366   : > { %3775 = vrot.lane.b32.xlu0 %v3636_v10, %s5574_s13 }
 0x367   : > { %v3584_v62 = vpop.permute.xlu1 %3583  ;;  %v3578_v7 = vpop.permute.xlu0 %3577 }
 0x368   : > { %v3628_v33 = vadd.f32 %v3584_v62, %v3468_v1  ;;  %v3625_v44 = vadd.f32 %v3578_v7, %v3465_v52  ;;  %v3469_v52 = vmul.f32 %v7148_v50, %v7828_v37 }
 0x36a   : > { %3753 = vrot.lane.b32.xlu1 %v3625_v44, %s5574_s13  ;;  %3759 = vrot.lane.b32.xlu0 %v3628_v33, %s5574_s13 }
 0x36b   : > { %v3598_v36 = vpop.permute.xlu0 %3597 }
 0x36c   : > { %v3635_v2 = vadd.f32 %v3598_v36, %v3475_v15 }
 0x36e   : > { %3773 = vrot.lane.b32.xlu1 %v3635_v2, %s5574_s13  ;;  %5499 = vtanh.f32 %v3635_v2 }
 0x36f   : > { %v3604_v4 = vpop.permute.xlu0 %3603  ;;  %5501 = vtanh.f32 %v3636_v10  ;;  %v7829_v10 = vld [vmem:[#allocation16_spill] sm:$0xff] }
 0x370   : > { %v3638_v31 = vadd.f32 %v3604_v4, %v3478_v24  ;;  %5503 = vtanh.f32 %v7213_v25  ;;  %v3472_v15 = vmul.f32 %v7155_v23, %v7829_v10 }
 0x371   : > { %5505 = vtanh.f32 %v3628_v33 }
 0x372   : > { %1771 = vrot.lane.b32.xlu1 %v5494_v18, %s5573_s12  ;;  %3779 = vrot.lane.b32.xlu0 %v3638_v31, %s5574_s13  ;;  %5507 = vtanh.f32 %v3625_v44 }
 0x373   : > { %v3582_v20 = vpop.permute.xlu0 %3581 }
 0x374   : > { %v3627_v12 = vadd.f32 %v3582_v20, %v3467_v47  ;;  %v3606_v34 = vpop.permute.xlu1 %3605  ;;  %v7830_v47 = vld [vmem:[#allocation11_spill] sm:$0xff]  ;;  %v7831_v20 = vld [vmem:[#allocation18_spill] sm:$0xff] }
 0x375   : > { %v3479_v44 = vmul.f32 %v7831_v20, %v7830_v47 }
 0x376   : > { %3757 = vrot.lane.b32.xlu1 %v3627_v12, %s5574_s13  ;;  %1773 = vrot.lane.b32.xlu0 %v5496_v40, %s5573_s12 }
 0x377   : > { %v3602_v45 = vpop.permute.xlu0 %3601  ;;  %v7282_v40 = vadd.f32 %v3606_v34, %v3479_v44 }
 0x378   : > { %v3637_v60 = vadd.f32 %v3602_v45, %v3477_v53  ;;  %v5500_v51 = vpop.eup %5499 }
 0x379   : > { %v5502_v2 = vpop.eup %5501 }
 0x37a   : > { %3777 = vrot.lane.b32.xlu1 %v3637_v60, %s5574_s13  ;;  %5509 = vtanh.f32 %v3637_v60  ;;  %v5504_v4 = vpop.eup %5503 }
 0x37b   : > { %v3588_v27 = vpop.permute.xlu0 %3587  ;;  %v5506_v18 = vpop.eup %5505  ;;  %5511 = vtanh.f32 %v3638_v31 }
 0x37c   : > { %v7258_v61 = vadd.f32 %v3588_v27, %v3470_v42  ;;  %v5508_v45 = vpop.eup %5507  ;;  %v3471_v42 = vmul.f32 %v7160_v55, %v7832_v17  ;;  %v7833_v27 = vld [vmem:[#allocation9_spill] sm:$0xff] }
 0x37d   : > { %v3474_v31 = vmul.f32 %v7167_v48, %v7833_v27 }
 0x37e   : > { %3763 = vrot.lane.b32.xlu0 %v7258_v61, %s5574_s13 }
 0x37f   : > { %v7262_v5 = vpop.permute.xlu0 %3607 }
 0x380   : > { %v1828_v63 = vpop.permute.xlu1 %1827 }
 0x381   : > { %1874 = vst.msk [vmem:[#allocation4 + $0x8] sm:$0xff] %vm856_vm2, %v1828_v63 }
 0x382   : > { %3675 = vrot.lane.b32.xlu0 %v5498_v21, %s5573_s12 }
 0x383   : > { %v3586_v1 = vpop.permute.xlu0 %3585 }
 0x384   : > { %v3629_v62 = vadd.f32 %v3586_v1, %v3469_v52  ;;  %v1832_v7 = vpop.permute.xlu1 %1831  ;;  %v5510_v60 = vpop.eup %5509  ;;  %v7834_v52 = vld [vmem:[#allocation6_spill] sm:$0xff] }
 0x385   : > { %1876 = vst.msk [vmem:[#allocation4 + $0x18] sm:$0xff] %vm856_vm2, %v1832_v7  ;;  %v3473_v1 = vmul.f32 %v7174_v8, %v7834_v52  ;;  %v7836_v52 = vld [vmem:[#allocation7_spill] sm:$0xff] }
 0x386   : > { %3761 = vrot.lane.b32.xlu1 %v3629_v62, %s5574_s13  ;;  %3693 = vrot.lane.b32.xlu0 %v5500_v51, %s5573_s12  ;;  %5513 = vtanh.f32 %v3629_v62  ;;  %v5512_v51 = vpop.eup %5511 }
 0x387   : > { %v3592_v36 = vpop.permute.xlu0 %3591  ;;  %5515 = vtanh.f32 %v3627_v12 }
 0x388   : > { %v3632_v25 = vadd.f32 %v3592_v36, %v3472_v15  ;;  %5517 = vtanh.f32 %v7282_v40  ;;  %v7835_v15 = vld [vmem:[#allocation14_spill] sm:$0xff] }
 0x389   : > { %v3480_v36 = vmul.f32 %v7142_v49, %v7835_v15 }
 0x38a   : > { %3695 = vrot.lane.b32.xlu1 %v5502_v2, %s5573_s12  ;;  %3767 = vrot.lane.b32.xlu0 %v3632_v25, %s5574_s13 }
 0x38b   : > { %v7276_v33 = vpop.permute.xlu1 %1747  ;;  %v3590_v24 = vpop.permute.xlu0 %3589  ;;  %v7304_v2 = vadd.f32 %v7262_v5, %v3480_v36 }
 0x38c   : > { %v3631_v34 = vadd.f32 %v3590_v24, %v3471_v42  ;;  %v1794_v27 = vmul.f32 %v7024_v9, %v7276_v33 }
 0x38e   : > { %1775 = vrot.lane.b32.xlu1 %v5504_v4, %s5573_s12  ;;  %3679 = vrot.lane.b32.xlu0 %v5506_v18, %s5573_s12  ;;  %5519 = vtanh.f32 %v3631_v34 }
 0x38f   : > { %v1836_v39 = vpop.permute.xlu1 %1835  ;;  %v3596_v53 = vpop.permute.xlu0 %3595  ;;  %5521 = vtanh.f32 %v7258_v61 }
 0x390   : > { %1878 = vst.msk [vmem:[#allocation4 + $0x28] sm:$0xff] %vm856_vm2, %v1836_v39  ;;  %v3634_v37 = vadd.f32 %v3596_v53, %v3474_v31  ;;  %v5514_v10 = vpop.eup %5513 }
 0x391   : > { %v5516_v18 = vpop.eup %5515 }
 0x392   : > { %3673 = vrot.lane.b32.xlu1 %v5508_v45, %s5573_s12  ;;  %3697 = vrot.lane.b32.xlu0 %v5510_v60, %s5573_s12  ;;  %v5518_v47 = vpop.eup %5517 }
 0x393   : > { %v1752_v63 = vpop.permute.xlu1 %1751  ;;  %v3594_v21 = vpop.permute.xlu0 %3593 }
 0x394   : > { %v3633_v12 = vadd.f32 %v3594_v21, %v3473_v1  ;;  %v1979_v1 = vmul.f32 %v7836_v52, %v1794_v27  ;;  %v1796_v33 = vmul.f32 %v7033_v11, %v1752_v63 }
 0x396   : > { %3765 = vrot.lane.b32.xlu1 %v3631_v34, %s5574_s13  ;;  %3771 = vrot.lane.b32.xlu0 %v3634_v37, %s5574_s13  ;;  %5523 = vtanh.f32 %v3633_v12 }
 0x397   : > { %v1840_v62 = vpop.permute.xlu1 %1839  ;;  %v1826_v7 = vpop.permute.xlu0 %1825  ;;  %5525 = vtanh.f32 %v7304_v2 }
 0x398   : > { %1880 = vst.msk [vmem:[#allocation4 + $0x38] sm:$0xff] %vm856_vm2, %v1840_v62  ;;  %1873 = vst.msk [vmem:[#allocation4] sm:$0xff] %vm856_vm2, %v1826_v7  ;;  %v5520_v39 = vpop.eup %5519  ;;  %5527 = vtanh.f32 %v3632_v25 }
 0x399   : > { %v5522_v45 = vpop.eup %5521  ;;  %5529 = vtanh.f32 %v3634_v37 }
 0x39a   : > { %3699 = vrot.lane.b32.xlu1 %v5512_v51, %s5573_s12  ;;  %3681 = vrot.lane.b32.xlu0 %v5514_v10, %s5573_s12  ;;  %v1981_v10 = vmul.f32 %v7836_v52, %v1796_v33 }
 0x39b   : > { %v1756_v24 = vpop.permute.xlu1 %1755  ;;  %v1830_v4 = vpop.permute.xlu0 %1829 }
 0x39c   : > { %1875 = vst.msk [vmem:[#allocation4 + $0x10] sm:$0xff] %vm856_vm2, %v1830_v4  ;;  %v1798_v63 = vmul.f32 %v7041_v58, %v1756_v24 }
 0x39e   : > { %3677 = vrot.lane.b32.xlu1 %v5516_v18, %s5573_s12  ;;  %3701 = vrot.lane.b32.xlu0 %v5518_v47, %s5573_s12  ;;  %v1983_v18 = vmul.f32 %v7836_v52, %v1798_v63 }
 0x39f   : > { %v1844_v61 = vpop.permute.xlu1 %1843  ;;  %v1746_v44 = vpop.permute.xlu0 %1745 }
 0x3a0   : > { %1882 = vst.msk [vmem:[#allocation4 + $0x48] sm:$0xff] %vm856_vm2, %v1844_v61  ;;  %v5524_v60 = vpop.eup %5523  ;;  %v1793_v31 = vmul.f32 %v7003_v59, %v1746_v44 }
 0x3a1   : > { %v5526_v25 = vpop.eup %5525 }
 0x3a2   : > { %3769 = vrot.lane.b32.xlu1 %v3633_v12, %s5574_s13  ;;  %3685 = vrot.lane.b32.xlu0 %v5520_v39, %s5573_s12  ;;  %v5528_v37 = vpop.eup %5527  ;;  %v1978_v15 = vmul.f32 %v7836_v52, %v1793_v31 }
 0x3a3   : > { %v1760_v5 = vpop.permute.xlu1 %1759  ;;  %v1834_v53 = vpop.permute.xlu0 %1833 }
 0x3a4   : > { %1877 = vst.msk [vmem:[#allocation4 + $0x20] sm:$0xff] %vm856_vm2, %v1834_v53  ;;  %v5530_v62 = vpop.eup %5529 }
 0x3a6   : > { %3683 = vrot.lane.b32.xlu1 %v5522_v45, %s5573_s12  ;;  %3689 = vrot.lane.b32.xlu0 %v5524_v60, %s5573_s12 }
 0x3a7   : > { %v1848_v17 = vpop.permute.xlu1 %1847  ;;  %v1750_v42 = vpop.permute.xlu0 %1749 }
 0x3a8   : > { %1884 = vst.msk [vmem:[#allocation4 + $0x58] sm:$0xff] %vm856_vm2, %v1848_v17  ;;  %v1795_v12 = vmul.f32 %v7028_v35, %v1750_v42 }
 0x3aa   : > { %3703 = vrot.lane.b32.xlu1 %v5526_v25, %s5573_s12  ;;  %1905 = vrot.lane.b32.xlu0 %v1793_v31, %s5572_s11  ;;  %v1980_v47 = vmul.f32 %v7836_v52, %v1795_v12 }
 0x3ab   : > { %v1764_v34 = vpop.permute.xlu1 %1763  ;;  %v1838_v21 = vpop.permute.xlu0 %1837 }
 0x3ac   : > { %1879 = vst.msk [vmem:[#allocation4 + $0x30] sm:$0xff] %vm856_vm2, %v1838_v21 }
 0x3ae   : > { %3687 = vrot.lane.b32.xlu1 %v5528_v37, %s5573_s12  ;;  %2012 = vrot.lane.b32.xlu0 %v1979_v1, %s5572_s11 }
 0x3af   : > { %v1852_v9 = vpop.permute.xlu1 %1851  ;;  %v1754_v59 = vpop.permute.xlu0 %1753 }
 0x3b0   : > { %1886 = vst.msk [vmem:[#allocation4 + $0x68] sm:$0xff] %vm856_vm2, %v1852_v9  ;;  %v1797_v36 = vmul.f32 %v7036_v28, %v1754_v59  ;;  %v1800_v28 = vmul.f32 %v7049_v29, %v1760_v5  ;;  %v1802_v29 = vmul.f32 %v7057_v3, %v1764_v34 }
 0x3b2   : > { %3691 = vrot.lane.b32.xlu1 %v5530_v62, %s5573_s12  ;;  %1909 = vrot.lane.b32.xlu0 %v1795_v12, %s5572_s11  ;;  %v1985_v44 = vmul.f32 %v7836_v52, %v1800_v28  ;;  %v1982_v39 = vmul.f32 %v7836_v52, %v1797_v36  ;;  %v1987_v45 = vmul.f32 %v7836_v52, %v1802_v29 }
 0x3b3   : > { %v1768_v7 = vpop.permute.xlu1 %1767  ;;  %v1842_v51 = vpop.permute.xlu0 %1841 }
 0x3b4   : > { %1881 = vst.msk [vmem:[#allocation4 + $0x40] sm:$0xff] %vm856_vm2, %v1842_v51  ;;  %v1804_v3 = vmul.f32 %v7065_v13, %v1768_v7 }
 0x3b6   : > { %2010 = vrot.lane.b32.xlu1 %v1978_v15, %s5572_s11  ;;  %2016 = vrot.lane.b32.xlu0 %v1981_v10, %s5572_s11 }
 0x3b7   : > { %v1856_v35 = vpop.permute.xlu1 %1855  ;;  %v1758_v11 = vpop.permute.xlu0 %1757 }
 0x3b8   : > { %1888 = vst.msk [vmem:[#allocation4 + $0x78] sm:$0xff] %vm856_vm2, %v1856_v35  ;;  %v1799_v24 = vmul.f32 %v7044_v14, %v1758_v11 }
 0x3ba   : > { %1907 = vrot.lane.b32.xlu1 %v1794_v27, %s5572_s11  ;;  %1913 = vrot.lane.b32.xlu0 %v1797_v36, %s5572_s11  ;;  %v1984_v60 = vmul.f32 %v7836_v52, %v1799_v24  ;;  %v1989_v27 = vmul.f32 %v7836_v52, %v1804_v3 }
 0x3bb   : > { %v1846_v4 = vpop.permute.xlu0 %1845 }
 0x3bc   : > { %1883 = vst.msk [vmem:[#allocation4 + $0x50] sm:$0xff] %vm856_vm2, %v1846_v4 }
 0x3be   : > { %2014 = vrot.lane.b32.xlu1 %v1980_v47, %s5572_s11  ;;  %2020 = vrot.lane.b32.xlu0 %v1983_v18, %s5572_s11 }
 0x3bf   : > { %v1762_v58 = vpop.permute.xlu0 %1761 }
 0x3c0   : > { %v1801_v14 = vmul.f32 %v7054_v32, %v1762_v58 }
 0x3c2   : > { %1911 = vrot.lane.b32.xlu1 %v1796_v33, %s5572_s11  ;;  %1917 = vrot.lane.b32.xlu0 %v1799_v24, %s5572_s11  ;;  %v1986_v31 = vmul.f32 %v7836_v52, %v1801_v14 }
 0x3c3   : > { %v1850_v61 = vpop.permute.xlu0 %1849 }
 0x3c4   : > { %1885 = vst.msk [vmem:[#allocation4 + $0x60] sm:$0xff] %vm856_vm2, %v1850_v61 }
 0x3c6   : > { %2018 = vrot.lane.b32.xlu1 %v1982_v39, %s5572_s11  ;;  %2024 = vrot.lane.b32.xlu0 %v1985_v44, %s5572_s11  ;;  %v7837_v39 = vld [vmem:[#allocation17_spill] sm:$0xff] }
 0x3c7   : > { %v1766_v53 = vpop.permute.xlu0 %1765 }
 0x3c8   : > { %v1803_v32 = vmul.f32 %v7062_v19, %v1766_v53 }
 0x3ca   : > { %1915 = vrot.lane.b32.xlu1 %v1798_v63, %s5572_s11  ;;  %1921 = vrot.lane.b32.xlu0 %v1801_v14, %s5572_s11  ;;  %v1988_v19 = vmul.f32 %v7836_v52, %v1803_v32 }
 0x3cb   : > { %v1854_v5 = vpop.permute.xlu0 %1853 }
 0x3cc   : > { %1887 = vst.msk [vmem:[#allocation4 + $0x70] sm:$0xff] %vm856_vm2, %v1854_v5 }
 0x3ce   : > { %2022 = vrot.lane.b32.xlu1 %v1984_v60, %s5572_s11  ;;  %2028 = vrot.lane.b32.xlu0 %v1987_v45, %s5572_s11 }
 0x3cf   : > { %v1770_v17 = vpop.permute.xlu0 %1769 }
 0x3d0   : > { %v1805_v25 = vmul.f32 %v7070_v56, %v1770_v17 }
 0x3d2   : > { %1919 = vrot.lane.b32.xlu1 %v1800_v28, %s5572_s11  ;;  %1925 = vrot.lane.b32.xlu0 %v1803_v32, %s5572_s11  ;;  %v1990_v56 = vmul.f32 %v7836_v52, %v1805_v25 }
 0x3d3   : > { %v3756_v42 = vpop.permute.xlu0 %3755 }
 0x3d4   : > { %3802 = vst.msk [vmem:[#allocation4 + $0x88] sm:$0xff] %vm856_vm2, %v3756_v42 }
 0x3d6   : > { %2026 = vrot.lane.b32.xlu1 %v1986_v31, %s5572_s11  ;;  %2032 = vrot.lane.b32.xlu0 %v1989_v27, %s5572_s11 }
 0x3d8   : > { %v3776_v13 = vpop.permute.xlu0 %3775 }
 0x3d9   : > { %3812 = vst.msk [vmem:[#allocation4 + $0xd8] sm:$0xff] %vm856_vm2, %v3776_v13 }
 0x3da   : > { %1923 = vrot.lane.b32.xlu1 %v1802_v29, %s5572_s11  ;;  %1929 = vrot.lane.b32.xlu0 %v1805_v25, %s5572_s11 }
 0x3dc   : > { %v3754_v34 = vpop.permute.xlu1 %3753  ;;  %v3760_v21 = vpop.permute.xlu0 %3759 }
 0x3dd   : > { %3801 = vst.msk [vmem:[#allocation4 + $0x80] sm:$0xff] %vm856_vm2, %v3754_v34  ;;  %3804 = vst.msk [vmem:[#allocation4 + $0x98] sm:$0xff] %vm856_vm2, %v3760_v21 }
 0x3de   : > { %2030 = vrot.lane.b32.xlu1 %v1988_v19, %s5572_s11 }
 0x3e0   : > { %v3774_v1 = vpop.permute.xlu1 %3773 }
 0x3e1   : > { %3811 = vst.msk [vmem:[#allocation4 + $0xd0] sm:$0xff] %vm856_vm2, %v3774_v1 }
 0x3e2   : > { %1927 = vrot.lane.b32.xlu1 %v1804_v3, %s5572_s11 }
 0x3e4   : > { %v1772_v37 = vpop.permute.xlu1 %1771  ;;  %v3780_v9 = vpop.permute.xlu0 %3779 }
 0x3e5   : > { %v1806_v59 = vmul.f32 %v7073_v54, %v1772_v37  ;;  %3814 = vst.msk [vmem:[#allocation4 + $0xe8] sm:$0xff] %vm856_vm2, %v3780_v9 }
 0x3e6   : > { %2034 = vrot.lane.b32.xlu1 %v1990_v56, %s5572_s11 }
 0x3e7   : > { %v1991_v33 = vmul.f32 %v7836_v52, %v1806_v59 }
 0x3e8   : > { %v3758_v12 = vpop.permute.xlu1 %3757  ;;  %v1774_v62 = vpop.permute.xlu0 %1773 }
 0x3e9   : > { %3803 = vst.msk [vmem:[#allocation4 + $0x90] sm:$0xff] %vm856_vm2, %v3758_v12  ;;  %v1807_v7 = vmul.f32 %v7078_v0, %v1774_v62  ;;  %2036 = vrot.lane.b32.xlu0 %v1991_v33, %s5572_s11 }
 0x3ea   : > { %1931 = vrot.lane.b32.xlu1 %v1806_v59, %s5572_s11 }
 0x3eb   : > { %v1992_v51 = vmul.f32 %v7836_v52, %v1807_v7 }
 0x3ec   : > { %v3778_v10 = vpop.permute.xlu1 %3777 }
 0x3ed   : > { %3813 = vst.msk [vmem:[#allocation4 + $0xe0] sm:$0xff] %vm856_vm2, %v3778_v10  ;;  %1933 = vrot.lane.b32.xlu0 %v1807_v7, %s5572_s11 }
 0x3ee   : > { %2038 = vrot.lane.b32.xlu1 %v1992_v51, %s5572_s11 }
 0x3f0   : > { %v3764_v54 = vpop.permute.xlu0 %3763 }
 0x3f1   : > { %3806 = vst.msk [vmem:[#allocation4 + $0xa8] sm:$0xff] %vm856_vm2, %v3764_v54 }
 0x3f4   : > { %v3676_v15 = vpop.permute.xlu0 %3675 }
 0x3f5   : > { %v3722_v35 = vmul.f32 %v7086_v57, %v3676_v15 }
 0x3f7   : > { %3835 = vrot.lane.b32.xlu1 %v3722_v35, %s5572_s11  ;;  %v3908_v53 = vmul.f32 %v7837_v39, %v3722_v35 }
 0x3f8   : > { %v3762_v0 = vpop.permute.xlu1 %3761  ;;  %v3694_v11 = vpop.permute.xlu0 %3693 }
 0x3f9   : > { %3805 = vst.msk [vmem:[#allocation4 + $0xa0] sm:$0xff] %vm856_vm2, %v3762_v0  ;;  %v3731_v24 = vmul.f32 %v7115_v46, %v3694_v11 }
 0x3fb   : > { %v3917_v60 = vmul.f32 %v7837_v39, %v3731_v24 }
 0x3fc   : > { %v3696_v63 = vpop.permute.xlu1 %3695  ;;  %v3768_v36 = vpop.permute.xlu0 %3767 }
 0x3fd   : > { %v3732_v4 = vmul.f32 %v7101_v16, %v3696_v63  ;;  %3808 = vst.msk [vmem:[#allocation4 + $0xb8] sm:$0xff] %vm856_vm2, %v3768_v36 }
 0x3ff   : > { %3855 = vrot.lane.b32.xlu0 %v3732_v4, %s5572_s11  ;;  %v3918_v29 = vmul.f32 %v7837_v39, %v3732_v4 }
 0x400   : > { %v1776_v18 = vpop.permute.xlu1 %1775  ;;  %v3680_v47 = vpop.permute.xlu0 %3679 }
 0x401   : > { %v1808_v58 = vmul.f32 %v7081_v43, %v1776_v18 }
 0x403   : > { %1935 = vrot.lane.b32.xlu1 %v1808_v58, %s5572_s11  ;;  %v1993_v46 = vmul.f32 %v7836_v52, %v1808_v58  ;;  %v3724_v52 = vmul.f32 %v7108_v38, %v3680_v47 }
 0x404   : > { %v3674_v57 = vpop.permute.xlu1 %3673  ;;  %v3698_v28 = vpop.permute.xlu0 %3697 }
 0x405   : > { %v3721_v61 = vmul.f32 %v7105_v26, %v3674_v57  ;;  %v3733_v42 = vmul.f32 %v7133_v6, %v3698_v28 }
 0x407   : > { %3833 = vrot.lane.b32.xlu0 %v3721_v61, %s5572_s11  ;;  %3853 = vrot.lane.b32.xlu1 %v3731_v24, %s5572_s11  ;;  %v3907_v14 = vmul.f32 %v7837_v39, %v3721_v61  ;;  %v3919_v6 = vmul.f32 %v7837_v39, %v3733_v42  ;;  %v2106_v24 = vld [vmem:[#allocation5] sm:$0x1] }
 0x408   : > { %v3766_v16 = vpop.permute.xlu1 %3765  ;;  %v3772_v44 = vpop.permute.xlu0 %3771  ;;  %4747 = vpush %v2106_v24 }
 0x409   : > { %3807 = vst.msk [vmem:[#allocation4 + $0xb0] sm:$0xff] %vm856_vm2, %v3766_v16  ;;  %3810 = vst.msk [vmem:[#allocation4 + $0xc8] sm:$0xff] %vm856_vm2, %v3772_v44 }
 0x40b   : > { %3941 = vrot.lane.b32.xlu0 %v3908_v53, %s5572_s11  ;;  %3961 = vrot.lane.b32.xlu1 %v3918_v29, %s5572_s11 }
 0x40c   : > { %v3700_v43 = vpop.permute.xlu1 %3699  ;;  %v3682_v26 = vpop.permute.xlu0 %3681 }
 0x40d   : > { %v3734_v25 = vmul.f32 %v7120_v41, %v3700_v43  ;;  %v3725_v59 = vmul.f32 %v7148_v50, %v3682_v26 }
 0x40f   : > { %2040 = vrot.lane.b32.xlu0 %v1993_v46, %s5572_s11  ;;  %3939 = vrot.lane.b32.xlu1 %v3907_v14, %s5572_s11  ;;  %v3920_v19 = vmul.f32 %v7837_v39, %v3734_v25  ;;  %v3911_v62 = vmul.f32 %v7837_v39, %v3725_v59 }
 0x410   : > { %v3678_v5 = vpop.permute.xlu1 %3677  ;;  %v3702_v45 = vpop.permute.xlu0 %3701 }
 0x411   : > { %v3723_v17 = vmul.f32 %v7125_v30, %v3678_v5  ;;  %v3910_v30 = vmul.f32 %v7837_v39, %v3724_v52  ;;  %v3735_v7 = vmul.f32 %v7831_v20, %v3702_v45 }
 0x413   : > { %3837 = vrot.lane.b32.xlu1 %v3723_v17, %s5572_s11  ;;  %3959 = vrot.lane.b32.xlu0 %v3917_v60, %s5572_s11  ;;  %v3909_v41 = vmul.f32 %v7837_v39, %v3723_v17  ;;  %v3921_v10 = vmul.f32 %v7837_v39, %v3735_v7 }
 0x414   : > { %v3770_v3 = vpop.permute.xlu1 %3769  ;;  %v3686_v32 = vpop.permute.xlu0 %3685 }
 0x415   : > { %3809 = vst.msk [vmem:[#allocation4 + $0xc0] sm:$0xff] %vm856_vm2, %v3770_v3  ;;  %v3727_v35 = vmul.f32 %v7160_v55, %v3686_v32 }
 0x417   : > { %3839 = vrot.lane.b32.xlu0 %v3724_v52, %s5572_s11  ;;  %3857 = vrot.lane.b32.xlu1 %v3733_v42, %s5572_s11  ;;  %v3913_v47 = vmul.f32 %v7837_v39, %v3727_v35  ;;  %v4035_v42 = vld [vmem:[#allocation5] sm:$0x1] }
 0x418   : > { %v3684_v27 = vpop.permute.xlu1 %3683  ;;  %v7428_v31 = vpop.permute.xlu0 %3689  ;;  %4749 = vpush %v4035_v42 }
 0x419   : > { %v3726_v1 = vmul.f32 %v7138_v22, %v3684_v27  ;;  %v3729_v58 = vmul.f32 %v7174_v8, %v7428_v31 }
 0x41b   : > { %3859 = vrot.lane.b32.xlu0 %v3734_v25, %s5572_s11  ;;  %3945 = vrot.lane.b32.xlu1 %v3910_v30, %s5572_s11  ;;  %v3912_v54 = vmul.f32 %v7837_v39, %v3726_v1  ;;  %v3915_v29 = vmul.f32 %v7837_v39, %v3729_v58 }
 0x41c   : > { %v3704_v38 = vpop.permute.xlu1 %3703  ;;  %v1906_v13 = vpop.permute.xlu0 %1905 }
 0x41d   : > { %1953 = vst.msk [vmem:[#allocation3] sm:$0xff] %vm856_vm2, %v1906_v13  ;;  %v3736_v33 = vmul.f32 %v7142_v49, %v3704_v38 }
 0x41f   : > { %3965 = vrot.lane.b32.xlu1 %v3920_v19, %s5572_s11  ;;  %3963 = vrot.lane.b32.xlu0 %v3919_v6, %s5572_s11  ;;  %v3922_v0 = vmul.f32 %v7837_v39, %v3736_v33 }
 0x420   : > { %v3688_v34 = vpop.permute.xlu1 %3687  ;;  %v7439_v21 = vpop.permute.xlu0 %2012 }
 0x421   : > { %v3728_v11 = vmul.f32 %v7155_v23, %v3688_v34  ;;  %v2061_v19 = vsel %vm856_vm2, %v7439_v21, 0.0 }
 0x423   : > { %3943 = vrot.lane.b32.xlu1 %v3909_v41, %s5572_s11  ;;  %3843 = vrot.lane.b32.xlu0 %v3726_v1, %s5572_s11  ;;  %v3914_v57 = vmul.f32 %v7837_v39, %v3728_v11 }
 0x424   : > { %v4151_v56 = vld [vmem:[#allocation3] sm:$0xff]  ;;  %v3692_v37 = vpop.permute.xlu1 %3691  ;;  %v1910_v9 = vpop.permute.xlu0 %1909 }
 0x425   : > { %4183 = vst.msk [vmem:[#allocation2 + $0x19] sm:$0xff] %vm856_vm2, %v4151_v56  ;;  %1955 = vst.msk [vmem:[#allocation3 + $0x10] sm:$0xff] %vm856_vm2, %v1910_v9  ;;  %v3730_v28 = vmul.f32 %v7167_v48, %v3692_v37 }
 0x427   : > { %3863 = vrot.lane.b32.xlu0 %v3736_v33, %s5572_s11  ;;  %3841 = vrot.lane.b32.xlu1 %v3725_v59, %s5572_s11  ;;  %v3916_v43 = vmul.f32 %v7837_v39, %v3730_v28 }
 0x428   : > { %v7451_v22 = vpop.permute.xlu1 %2010  ;;  %v7453_v12 = vpop.permute.xlu0 %2016 }
 0x429   : > { %v2067_v41 = vsel %vm856_vm2, %v7453_v12, 0.0  ;;  %v2058_v21 = vsel %vm856_vm2, %v7451_v22, 0.0 }
 0x42b   : > { %3947 = vrot.lane.b32.xlu0 %v3911_v62, %s5572_s11  ;;  %3861 = vrot.lane.b32.xlu1 %v3735_v7, %s5572_s11 }
 0x42c   : > { %v4153_v49 = vld [vmem:[#allocation3 + $0x10] sm:$0xff]  ;;  %v1908_v50 = vpop.permute.xlu1 %1907  ;;  %v1914_v51 = vpop.permute.xlu0 %1913 }
 0x42d   : > { %4185 = vst.msk [vmem:[#allocation2 + $0x31] sm:$0xff] %vm856_vm2, %v4153_v49  ;;  %1954 = vst.msk [vmem:[#allocation3 + $0x8] sm:$0xff] %vm856_vm2, %v1908_v50 }
 0x42e   : > { %1957 = vst.msk [vmem:[#allocation3 + $0x20] sm:$0xff] %vm856_vm2, %v1914_v51 }
 0x42f   : > { %3949 = vrot.lane.b32.xlu1 %v3912_v54, %s5572_s11  ;;  %3967 = vrot.lane.b32.xlu0 %v3921_v10, %s5572_s11 }
 0x430   : > { %v7466_v20 = vpop.permute.xlu1 %2014  ;;  %v7468_v15 = vpop.permute.xlu0 %2020 }
 0x431   : > { %v2073_v59 = vsel %vm856_vm2, %v7468_v15, 0.0  ;;  %v2064_v12 = vsel %vm856_vm2, %v7466_v20, 0.0 }
 0x433   : > { %3969 = vrot.lane.b32.xlu1 %v3922_v0, %s5572_s11  ;;  %3847 = vrot.lane.b32.xlu0 %v3728_v11, %s5572_s11 }
 0x434   : > { %v4152_v63 = vld [vmem:[#allocation3 + $0x8] sm:$0xff]  ;;  %v1912_v4 = vpop.permute.xlu1 %1911  ;;  %v1918_v18 = vpop.permute.xlu0 %1917 }
 0x435   : > { %v4155_v36 = vld [vmem:[#allocation3 + $0x20] sm:$0xff]  ;;  %4184 = vst.msk [vmem:[#allocation2 + $0x21] sm:$0xff] %vm856_vm2, %v4152_v63  ;;  %1956 = vst.msk [vmem:[#allocation3 + $0x18] sm:$0xff] %vm856_vm2, %v1912_v4 }
 0x436   : > { %4187 = vst.msk [vmem:[#allocation2 + $0x49] sm:$0xff] %vm856_vm2, %v4155_v36  ;;  %1959 = vst.msk [vmem:[#allocation3 + $0x30] sm:$0xff] %vm856_vm2, %v1918_v18 }
 0x437   : > { %3845 = vrot.lane.b32.xlu1 %v3727_v35, %s5572_s11  ;;  %3951 = vrot.lane.b32.xlu0 %v3913_v47, %s5572_s11 }
 0x438   : > { %v7482_v23 = vpop.permute.xlu1 %2018  ;;  %v7484_v55 = vpop.permute.xlu0 %2024 }
 0x439   : > { %v2070_v56 = vsel %vm856_vm2, %v7482_v23, 0.0  ;;  %v2079_v62 = vsel %vm856_vm2, %v7484_v55, 0.0  ;;  %s4748_s10 = spop %4747 }
 0x43b   : > { %3953 = vrot.lane.b32.xlu1 %v3914_v57, %s5572_s11  ;;  %3851 = vrot.lane.b32.xlu0 %v3730_v28, %s5572_s11 }
 0x43c   : > { %v4154_v61 = vld [vmem:[#allocation3 + $0x18] sm:$0xff]  ;;  %v1916_v44 = vpop.permute.xlu1 %1915  ;;  %v1922_v53 = vpop.permute.xlu0 %1921 }
 0x43d   : > { %v4157_v16 = vld [vmem:[#allocation3 + $0x30] sm:$0xff]  ;;  %4186 = vst.msk [vmem:[#allocation2 + $0x39] sm:$0xff] %vm856_vm2, %v4154_v61  ;;  %1958 = vst.msk [vmem:[#allocation3 + $0x28] sm:$0xff] %vm856_vm2, %v1916_v44 }
 0x43e   : > { %4189 = vst.msk [vmem:[#allocation2 + $0x61] sm:$0xff] %vm856_vm2, %v4157_v16  ;;  %1961 = vst.msk [vmem:[#allocation3 + $0x40] sm:$0xff] %vm856_vm2, %v1922_v53 }
 0x43f   : > { %3849 = vrot.lane.b32.xlu1 %v3729_v58, %s5572_s11  ;;  %3955 = vrot.lane.b32.xlu0 %v3915_v29, %s5572_s11 }
 0x440   : > { %v2023_v48 = vpop.permute.xlu1 %2022  ;;  %v7499_v8 = vpop.permute.xlu0 %2028 }
 0x441   : > { %v2076_v22 = vsel %vm856_vm2, %v2023_v48, 0.0  ;;  %v2085_v51 = vsel %vm856_vm2, %v7499_v8, 0.0 }
 0x443   : > { %3957 = vrot.lane.b32.xlu1 %v3916_v43, %s5572_s11 }
 0x444   : > { %v4156_v26 = vld [vmem:[#allocation3 + $0x28] sm:$0xff]  ;;  %v1920_v14 = vpop.permute.xlu1 %1919  ;;  %v1926_v5 = vpop.permute.xlu0 %1925 }
 0x445   : > { %v4159_v46 = vld [vmem:[#allocation3 + $0x40] sm:$0xff]  ;;  %4188 = vst.msk [vmem:[#allocation2 + $0x51] sm:$0xff] %vm856_vm2, %v4156_v26  ;;  %1960 = vst.msk [vmem:[#allocation3 + $0x38] sm:$0xff] %vm856_vm2, %v1920_v14 }
 0x446   : > { %4191 = vst.msk [vmem:[#allocation2 + $0x79] sm:$0xff] %vm856_vm2, %v4159_v46  ;;  %1963 = vst.msk [vmem:[#allocation3 + $0x50] sm:$0xff] %vm856_vm2, %v1926_v5 }
 0x448   : > { %v2027_v45 = vpop.permute.xlu1 %2026  ;;  %v7507_v60 = vpop.permute.xlu0 %2032 }
 0x449   : > { %v2082_v7 = vsel %vm856_vm2, %v2027_v45, 0.0  ;;  %v2091_v0 = vsel %vm856_vm2, %v7507_v60, 0.0  ;;  %s4750_s11 = spop %4749 }
 0x44c   : > { %v4158_v17 = vld [vmem:[#allocation3 + $0x38] sm:$0xff]  ;;  %v1924_v39 = vpop.permute.xlu1 %1923  ;;  %v1930_v32 = vpop.permute.xlu0 %1929 }
 0x44d   : > { %v4161_v3 = vld [vmem:[#allocation3 + $0x50] sm:$0xff]  ;;  %4190 = vst.msk [vmem:[#allocation2 + $0x69] sm:$0xff] %vm856_vm2, %v4158_v17  ;;  %1962 = vst.msk [vmem:[#allocation3 + $0x48] sm:$0xff] %vm856_vm2, %v1924_v39 }
 0x44e   : > { %4193 = vst.msk [vmem:[#allocation2 + $0x91] sm:$0xff] %vm856_vm2, %v4161_v3  ;;  %1965 = vst.msk [vmem:[#allocation3 + $0x60] sm:$0xff] %vm856_vm2, %v1930_v32 }
 0x450   : > { %v2031_v52 = vpop.permute.xlu1 %2030 }
 0x451   : > { %v2088_v54 = vsel %vm856_vm2, %v2031_v52, 0.0 }
 0x454   : > { %v4160_v27 = vld [vmem:[#allocation3 + $0x48] sm:$0xff]  ;;  %v1928_v30 = vpop.permute.xlu1 %1927 }
 0x455   : > { %v4163_v31 = vld [vmem:[#allocation3 + $0x60] sm:$0xff]  ;;  %4192 = vst.msk [vmem:[#allocation2 + $0x81] sm:$0xff] %vm856_vm2, %v4160_v27  ;;  %1964 = vst.msk [vmem:[#allocation3 + $0x58] sm:$0xff] %vm856_vm2, %v1928_v30 }
 0x456   : > { %4195 = vst.msk [vmem:[#allocation2 + $0xa9] sm:$0xff] %vm856_vm2, %v4163_v31 }
 0x458   : > { %v2035_v25 = vpop.permute.xlu1 %2034 }
 0x459   : > { %v2094_v18 = vsel %vm856_vm2, %v2035_v25, 0.0 }
 0x45b   : > { %v7516_v38 = vpop.permute.xlu0 %2036 }
 0x45c   : > { %v4162_v13 = vld [vmem:[#allocation3 + $0x58] sm:$0xff]  ;;  %v1932_v6 = vpop.permute.xlu1 %1931  ;;  %v2097_v57 = vsel %vm856_vm2, %v7516_v38, 0.0 }
 0x45d   : > { %4194 = vst.msk [vmem:[#allocation2 + $0x99] sm:$0xff] %vm856_vm2, %v4162_v13  ;;  %1966 = vst.msk [vmem:[#allocation3 + $0x68] sm:$0xff] %vm856_vm2, %v1932_v6 }
 0x45e   : > { %2062 = vadd.xlane.f32.xlu0 %v2061_v19 }
 0x45f   : > { %v1934_v34 = vpop.permute.xlu0 %1933 }
 0x460   : > { %1967 = vst.msk [vmem:[#allocation3 + $0x70] sm:$0xff] %vm856_vm2, %v1934_v34  ;;  %v2039_v37 = vpop.permute.xlu1 %2038 }
 0x461   : > { %v2100_v16 = vsel %vm856_vm2, %v2039_v37, 0.0 }
 0x462   : > { %2068 = vadd.xlane.f32.xlu0 %v2067_v41 }
 0x464   : > { %v4164_v1 = vld [vmem:[#allocation3 + $0x68] sm:$0xff] }
 0x465   : > { %4196 = vst.msk [vmem:[#allocation2 + $0xb1] sm:$0xff] %vm856_vm2, %v4164_v1 }
 0x466   : > { %2071 = vadd.xlane.f32.xlu0 %v2070_v56 }
 0x467   : > { %v4165_v9 = vld [vmem:[#allocation3 + $0x70] sm:$0xff]  ;;  %2059 = vadd.xlane.f32.xlu1 %v2058_v21 }
 0x468   : > { %4197 = vst.msk [vmem:[#allocation2 + $0xc1] sm:$0xff] %vm856_vm2, %v4165_v9 }
 0x469   : > { %v3836_v33 = vpop.permute.xlu1 %3835 }
 0x46a   : > { %3883 = vst.msk [vmem:[#allocation3 + $0x88] sm:$0xff] %vm856_vm2, %v3836_v33  ;;  %2074 = vadd.xlane.f32.xlu0 %v2073_v59 }
 0x46b   : > { %2065 = vadd.xlane.f32.xlu1 %v2064_v12 }
 0x46e   : > { %2080 = vadd.xlane.f32.xlu0 %v2079_v62 }
 0x46f   : > { %2077 = vadd.xlane.f32.xlu1 %v2076_v22 }
 0x471   : > { %v4168_v49 = vld [vmem:[#allocation3 + $0x88] sm:$0xff]  ;;  %v3856_v50 = vpop.permute.xlu0 %3855 }
 0x472   : > { %4200 = vst.msk [vmem:[#allocation2 + $0xe1] sm:$0xff] %vm856_vm2, %v4168_v49  ;;  %3893 = vst.msk [vmem:[#allocation3 + $0xd8] sm:$0xff] %vm856_vm2, %v3856_v50  ;;  %2083 = vadd.xlane.f32.xlu0 %v2082_v7 }
 0x475   : > { %v1936_v10 = vpop.permute.xlu1 %1935 }
 0x476   : > { %1968 = vst.msk [vmem:[#allocation3 + $0x78] sm:$0xff] %vm856_vm2, %v1936_v10  ;;  %2086 = vadd.xlane.f32.xlu0 %v2085_v51 }
 0x479   : > { %v4178_v20 = vld [vmem:[#allocation3 + $0xd8] sm:$0xff]  ;;  %v3854_v15 = vpop.permute.xlu1 %3853  ;;  %v3834_v35 = vpop.permute.xlu0 %3833 }
 0x47a   : > { %4210 = vst.msk [vmem:[#allocation2 + $0x159] sm:$0xff] %vm856_vm2, %v4178_v20  ;;  %3892 = vst.msk [vmem:[#allocation3 + $0xd0] sm:$0xff] %vm856_vm2, %v3854_v15  ;;  %2089 = vadd.xlane.f32.xlu0 %v2088_v54 }
 0x47b   : > { %3882 = vst.msk [vmem:[#allocation3 + $0x80] sm:$0xff] %vm856_vm2, %v3834_v35 }
 0x47d   : > { %v4166_v11 = vld [vmem:[#allocation3 + $0x78] sm:$0xff]  ;;  %v3962_v63 = vpop.permute.xlu1 %3961  ;;  %v3942_v36 = vpop.permute.xlu0 %3941 }
 0x47e   : > { %4198 = vst.msk [vmem:[#allocation2 + $0xc9] sm:$0xff] %vm856_vm2, %v4166_v11  ;;  %v4020_v4 = vsel %vm856_vm2, %v3962_v63, 0.0  ;;  %2092 = vadd.xlane.f32.xlu0 %v2091_v0  ;;  %v3990_v29 = vsel %vm856_vm2, %v3942_v36, 0.0 }
 0x47f   : > { %4021 = vadd.xlane.f32.xlu1 %v4020_v4 }
 0x481   : > { %v4177_v47 = vld [vmem:[#allocation3 + $0xd0] sm:$0xff]  ;;  %v3940_v55 = vpop.permute.xlu1 %3939  ;;  %v2041_v58 = vpop.permute.xlu0 %2040 }
 0x482   : > { %v4167_v23 = vld [vmem:[#allocation3 + $0x80] sm:$0xff]  ;;  %4209 = vst.msk [vmem:[#allocation2 + $0x151] sm:$0xff] %vm856_vm2, %v4177_v47  ;;  %2095 = vadd.xlane.f32.xlu0 %v2094_v18  ;;  %v3987_v26 = vsel %vm856_vm2, %v3940_v55, 0.0  ;;  %v2103_v17 = vsel %vm856_vm2, %v2041_v58, 0.0  ;;  %v2141_v55 = vlaneseq }
 0x483   : > { %4199 = vst.msk [vmem:[#allocation2 + $0xd9] sm:$0xff] %vm856_vm2, %v4167_v23 }
 0x485   : > { %v3838_v28 = vpop.permute.xlu1 %3837  ;;  %v3960_v24 = vpop.permute.xlu0 %3959 }
 0x486   : > { %3884 = vst.msk [vmem:[#allocation3 + $0x90] sm:$0xff] %vm856_vm2, %v3838_v28  ;;  %v4017_v61 = vsel %vm856_vm2, %v3960_v24, 0.0  ;;  %2098 = vadd.xlane.f32.xlu0 %v2097_v57  ;;  %v7603_v57 = vand.u32 127, %v2141_v55 }
 0x487   : > { %4018 = vadd.xlane.f32.xlu1 %v4017_v61  ;;  %v7606_v61 = vshrl.u32 %v2141_v55, 7 }
 0x488   : > { %v2154_v28 = vadd.s32 4294967280, %v7603_v57 }
 0x489   : > { %v3858_v44 = vpop.permute.xlu1 %3857  ;;  %v3840_v53 = vpop.permute.xlu0 %3839 }
 0x48a   : > { %3894 = vst.msk [vmem:[#allocation3 + $0xe0] sm:$0xff] %vm856_vm2, %v3858_v44  ;;  %3885 = vst.msk [vmem:[#allocation3 + $0x98] sm:$0xff] %vm856_vm2, %v3840_v53  ;;  %2101 = vadd.xlane.f32.xlu0 %v2100_v16  ;;  %v2147_v16 = vadd.s32 4294967288, %v7603_v57  ;;  %v7613_v53 = vsub.s32 %v7603_v57, %v7606_v61 }
 0x48d   : > { %v4169_v48 = vld [vmem:[#allocation3 + $0x90] sm:$0xff]  ;;  %v3946_v8 = vpop.permute.xlu1 %3945  ;;  %v3860_v43 = vpop.permute.xlu0 %3859 }
 0x48e   : > { %4201 = vst.msk [vmem:[#allocation2 + $0xf1] sm:$0xff] %vm856_vm2, %v4169_v48  ;;  %3895 = vst.msk [vmem:[#allocation3 + $0xe8] sm:$0xff] %vm856_vm2, %v3860_v43  ;;  %3991 = vadd.xlane.f32.xlu0 %v3990_v29  ;;  %v3996_v42 = vsel %vm856_vm2, %v3946_v8, 0.0  ;;  %v7617_v48 = vsub.s32 %v2154_v28, %v7606_v61 }
 0x491   : > { %v4179_v46 = vld [vmem:[#allocation3 + $0xe0] sm:$0xff]  ;;  %v4170_v14 = vld [vmem:[#allocation3 + $0x98] sm:$0xff]  ;;  %v3966_v5 = vpop.permute.xlu1 %3965  ;;  %v3964_v45 = vpop.permute.xlu0 %3963 }
 0x492   : > { %4211 = vst.msk [vmem:[#allocation2 + $0x169] sm:$0xff] %vm856_vm2, %v4179_v46  ;;  %4202 = vst.msk [vmem:[#allocation2 + $0xf9] sm:$0xff] %vm856_vm2, %v4170_v14  ;;  %v4026_v60 = vsel %vm856_vm2, %v3966_v5, 0.0  ;;  %3988 = vadd.xlane.f32.xlu0 %v3987_v26  ;;  %v4023_v30 = vsel %vm856_vm2, %v3964_v45, 0.0  ;;  %v7621_v26 = vsub.s32 %v2147_v16, %v7606_v61  ;;  %v2161_v14 = vadd.s32 4294967272, %v7603_v57 }
 0x493   : > { %4027 = vadd.xlane.f32.xlu1 %v4026_v60  ;;  %v2168_v5 = vadd.s32 4294967264, %v7603_v57 }
 0x495   : > { %v4180_v3 = vld [vmem:[#allocation3 + $0xe8] sm:$0xff]  ;;  %v3944_v39 = vpop.permute.xlu1 %3943  ;;  %v3844_v32 = vpop.permute.xlu0 %3843 }
 0x496   : > { %4212 = vst.msk [vmem:[#allocation2 + $0x171] sm:$0xff] %vm856_vm2, %v4180_v3  ;;  %v3993_v52 = vsel %vm856_vm2, %v3944_v39, 0.0  ;;  %3887 = vst.msk [vmem:[#allocation3 + $0xa8] sm:$0xff] %vm856_vm2, %v3844_v32  ;;  %2104 = vadd.xlane.f32.xlu0 %v2103_v17  ;;  %v7630_v39 = vsub.s32 %v2161_v14, %v7606_v61  ;;  %v2245_v14 = vadd.s32 4294967176, %v7603_v57 }
 0x497   : > { %3994 = vadd.xlane.f32.xlu1 %v3993_v52  ;;  %v7634_v52 = vsub.s32 %v2168_v5, %v7606_v61 }
 0x499   : > { %v3842_v27 = vpop.permute.xlu1 %3841  ;;  %v3864_v31 = vpop.permute.xlu0 %3863 }
 0x49a   : > { %3886 = vst.msk [vmem:[#allocation3 + $0xa0] sm:$0xff] %vm856_vm2, %v3842_v27  ;;  %3897 = vst.msk [vmem:[#allocation3 + $0xf8] sm:$0xff] %vm856_vm2, %v3864_v31  ;;  %3997 = vadd.xlane.f32.xlu0 %v3996_v42  ;;  %v2175_v27 = vadd.s32 4294967256, %v7603_v57 }
 0x49b   : > { %4024 = vadd.xlane.f32.xlu1 %v4023_v30 }
 0x49d   : > { %v4172_v25 = vld [vmem:[#allocation3 + $0xa8] sm:$0xff]  ;;  %v3862_v38 = vpop.permute.xlu1 %3861  ;;  %v3948_v13 = vpop.permute.xlu0 %3947 }
 0x49e   : > { %4204 = vst.msk [vmem:[#allocation2 + $0x111] sm:$0xff] %vm856_vm2, %v4172_v25  ;;  %3896 = vst.msk [vmem:[#allocation3 + $0xf0] sm:$0xff] %vm856_vm2, %v3862_v38  ;;  %v3999_v12 = vsel %vm856_vm2, %v3948_v13, 0.0  ;;  %v2182_v25 = vadd.s32 4294967248, %v7603_v57 }
 0x4a1   : > { %v4171_v6 = vld [vmem:[#allocation3 + $0xa0] sm:$0xff]  ;;  %v4182_v19 = vld [vmem:[#allocation3 + $0xf8] sm:$0xff]  ;;  %v3950_v34 = vpop.permute.xlu1 %3949  ;;  %v3968_v41 = vpop.permute.xlu0 %3967 }
 0x4a2   : > { %4203 = vst.msk [vmem:[#allocation2 + $0x109] sm:$0xff] %vm856_vm2, %v4171_v6  ;;  %4214 = vst.msk [vmem:[#allocation2 + $0x189] sm:$0xff] %vm856_vm2, %v4182_v19  ;;  %v4002_v1 = vsel %vm856_vm2, %v3950_v34, 0.0  ;;  %v4029_v49 = vsel %vm856_vm2, %v3968_v41, 0.0  ;;  %v7643_v19 = vsub.s32 %v2175_v27, %v7606_v61 }
 0x4a3   : > { %4003 = vadd.xlane.f32.xlu0 %v4002_v1 }
 0x4a5   : > { %v4181_v56 = vld [vmem:[#allocation3 + $0xf0] sm:$0xff]  ;;  %v3970_v37 = vpop.permute.xlu1 %3969  ;;  %v3848_v21 = vpop.permute.xlu0 %3847 }
 0x4a6   : > { %4213 = vst.msk [vmem:[#allocation2 + $0x181] sm:$0xff] %vm856_vm2, %v4181_v56  ;;  %v4032_v9 = vsel %vm856_vm2, %v3970_v37, 0.0  ;;  %3889 = vst.msk [vmem:[#allocation3 + $0xb8] sm:$0xff] %vm856_vm2, %v3848_v21  ;;  %v7649_v56 = vsub.s32 %v2182_v25, %v7606_v61 }
 0x4a7   : > { %4033 = vadd.xlane.f32.xlu1 %v4032_v9  ;;  %v2189_v9 = vadd.s32 4294967240, %v7603_v57 }
 0x4a9   : > { %v3846_v59 = vpop.permute.xlu1 %3845  ;;  %v3952_v33 = vpop.permute.xlu0 %3951 }
 0x4aa   : > { %3888 = vst.msk [vmem:[#allocation3 + $0xb0] sm:$0xff] %vm856_vm2, %v3846_v59  ;;  %v4005_v20 = vsel %vm856_vm2, %v3952_v33, 0.0  ;;  %v2196_v33 = vadd.s32 4294967232, %v7603_v57 }
 0x4ab   : > { %4000 = vadd.xlane.f32.xlu1 %v3999_v12 }
 0x4ad   : > { %v4174_v62 = vld [vmem:[#allocation3 + $0xb8] sm:$0xff]  ;;  %v3954_v22 = vpop.permute.xlu1 %3953  ;;  %v3852_v7 = vpop.permute.xlu0 %3851 }
 0x4ae   : > { %4206 = vst.msk [vmem:[#allocation2 + $0x129] sm:$0xff] %vm856_vm2, %v4174_v62  ;;  %3891 = vst.msk [vmem:[#allocation3 + $0xc8] sm:$0xff] %vm856_vm2, %v3852_v7  ;;  %v4008_v10 = vsel %vm856_vm2, %v3954_v22, 0.0  ;;  %v2203_v62 = vadd.s32 4294967224, %v7603_v57  ;;  %v2210_v7 = vadd.s32 4294967216, %v7603_v57 }
 0x4af   : > { %4030 = vadd.xlane.f32.xlu1 %v4029_v49 }
 0x4b1   : > { %v4173_v50 = vld [vmem:[#allocation3 + $0xb0] sm:$0xff]  ;;  %v3850_v51 = vpop.permute.xlu1 %3849  ;;  %v3956_v11 = vpop.permute.xlu0 %3955 }
 0x4b2   : > { %4205 = vst.msk [vmem:[#allocation2 + $0x121] sm:$0xff] %vm856_vm2, %v4173_v50  ;;  %3890 = vst.msk [vmem:[#allocation3 + $0xc0] sm:$0xff] %vm856_vm2, %v3850_v51  ;;  %v4011_v63 = vsel %vm856_vm2, %v3956_v11, 0.0  ;;  %v7660_v50 = vsub.s32 %v2189_v9, %v7606_v61  ;;  %v7672_v11 = vsub.s32 %v2203_v62, %v7606_v61 }
 0x4b3   : > { %4009 = vadd.xlane.f32.xlu1 %v4008_v10 }
 0x4b5   : > { %v4176_v54 = vld [vmem:[#allocation3 + $0xc8] sm:$0xff]  ;;  %v3958_v15 = vpop.permute.xlu1 %3957 }
 0x4b6   : > { %4208 = vst.msk [vmem:[#allocation2 + $0x141] sm:$0xff] %vm856_vm2, %v4176_v54  ;;  %v4014_v0 = vsel %vm856_vm2, %v3958_v15, 0.0  ;;  %v2217_v54 = vadd.s32 4294967208, %v7603_v57 }
 0x4b7   : > { %4006 = vadd.xlane.f32.xlu1 %v4005_v20  ;;  %v7666_v20 = vsub.s32 %v2196_v33, %v7606_v61 }
 0x4b9   : > { %v4175_v35 = vld [vmem:[#allocation3 + $0xc0] sm:$0xff]  ;;  %3783 = vrot.lane.b32.xlu0 %v7304_v2, %s5574_s13 }
 0x4ba   : > { %4207 = vst.msk [vmem:[#allocation2 + $0x139] sm:$0xff] %vm856_vm2, %v4175_v35  ;;  %v2224_v35 = vadd.s32 4294967200, %v7603_v57 }
 0x4bb   : > { %4015 = vadd.xlane.f32.xlu1 %v4014_v0  ;;  %v2231_v0 = vadd.s32 4294967192, %v7603_v57 }
 0x4bc   : > { %v7690_v16 = vsub.s32 %v2224_v35, %v7606_v61 }
 0x4bf   : > { %4012 = vadd.xlane.f32.xlu1 %v4011_v63 }
 0x4d0   : > { %3781 = vrot.lane.b32.xlu1 %v7282_v40, %s5574_s13  ;;  %v7609_v40 = vstv %s4748_s10 }
 0x4eb   : > { %v2063_v36 = vpop.xlane.xlu0 %2062 }
 0x4ec   : > { %v2110_v46 = vadd.f32 %v7609_v40, %v2063_v36 }
 0x4ee   : > { %v2151_v3 = vrot.slane %v2110_v46, %v7621_v26 }
 0x4ef   : > { %v2069_v4 = vpop.xlane.xlu0 %2068 }
 0x4f0   : > { %v2112_v32 = vadd.f32 %v7609_v40, %v2069_v4  ;;  %v7677_v4 = vsub.s32 %v2210_v7, %v7606_v61 }
 0x4f2   : > { %v2165_v13 = vrot.slane %v2112_v32, %v7630_v39 }
 0x4f3   : > { %v2072_v18 = vpop.xlane.xlu0 %2071 }
 0x4f4   : > { %v2060_v58 = vpop.xlane.xlu1 %2059  ;;  %v2113_v31 = vadd.f32 %v7609_v40, %v2072_v18 }
 0x4f5   : > { %v2109_v29 = vadd.f32 %v7609_v40, %v2060_v58  ;;  %v7683_v58 = vsub.s32 %v2217_v54, %v7606_v61 }
 0x4f6   : > { %v2172_v1 = vrot.slane %v2113_v31, %v7634_v52 }
 0x4f7   : > { %v2075_v47 = vpop.xlane.xlu0 %2074  ;;  %v2146_v45 = vrot.slane %v2109_v29, %v7613_v53  ;;  %v7694_v29 = vsub.s32 %v2231_v0, %v7606_v61 }
 0x4f8   : > { %v2066_v44 = vpop.xlane.xlu1 %2065  ;;  %v2114_v34 = vadd.f32 %v7609_v40, %v2075_v47  ;;  %v2238_v47 = vadd.s32 4294967184, %v7603_v57 }
 0x4f9   : > { %v2111_v8 = vadd.f32 %v7609_v40, %v2066_v44  ;;  %v2153_v42 = vsel %vm2152_vm5, %v2151_v3, %v2146_v45 }
 0x4fa   : > { %v2179_v12 = vrot.slane %v2114_v34, %v7643_v19  ;;  %v7702_v45 = vsub.s32 %v2238_v47, %v7606_v61 }
 0x4fb   : > { %v2081_v23 = vpop.xlane.xlu0 %2080  ;;  %v2158_v60 = vrot.slane %v2111_v8, %v7617_v48 }
 0x4fc   : > { %v2078_v6 = vpop.xlane.xlu1 %2077  ;;  %v2116_v51 = vadd.f32 %v7609_v40, %v2081_v23 }
 0x4fd   : > { %v2160_v30 = vsel %vm2159_vm6, %v2158_v60, %v2153_v42  ;;  %v2115_v37 = vadd.f32 %v7609_v40, %v2078_v6 }
 0x4fe   : > { %v2167_v41 = vsel %vm2166_vm7, %v2165_v13, %v2160_v30  ;;  %v2193_v55 = vrot.slane %v2116_v51, %v7660_v50  ;;  %v7711_v30 = vsub.s32 %v2245_v14, %v7606_v61  ;;  %v4037_v51 = vstv %s4750_s11 }
 0x4ff   : > { %v2084_v2 = vpop.xlane.xlu0 %2083  ;;  %v2174_v59 = vsel %vm2173_vm8, %v2172_v1, %v2167_v41  ;;  %v2186_v22 = vrot.slane %v2115_v37, %v7649_v56 }
 0x500   : > { %v2181_v10 = vsel %vm2180_vm9, %v2179_v12, %v2174_v59  ;;  %v2117_v15 = vadd.f32 %v7609_v40, %v2084_v2 }
 0x501   : > { %v2188_v36 = vsel %vm2187_vm10, %v2186_v22, %v2181_v10 }
 0x502   : > { %v2195_v8 = vsel %vm2194_vm11, %v2193_v55, %v2188_v36 }
 0x503   : > { %v2087_v24 = vpop.xlane.xlu0 %2086 }
 0x504   : > { %v2118_v63 = vadd.f32 %v7609_v40, %v2087_v24  ;;  %v2200_v24 = vrot.slane %v2117_v15, %v7666_v20 }
 0x506   : > { %v2202_v42 = vsel %vm2201_vm12, %v2200_v24, %v2195_v8 }
 0x507   : > { %v2090_v43 = vpop.xlane.xlu0 %2089 }
 0x508   : > { %v2119_v18 = vadd.f32 %v7609_v40, %v2090_v43  ;;  %v2207_v43 = vrot.slane %v2118_v63, %v7672_v11 }
 0x50a   : > { %v2214_v5 = vrot.slane %v2119_v18, %v7677_v4  ;;  %v2209_v57 = vsel %vm2208_vm13, %v2207_v43, %v2202_v42 }
 0x50b   : > { %v2093_v17 = vpop.xlane.xlu0 %2092 }
 0x50c   : > { %v2120_v2 = vadd.f32 %v7609_v40, %v2093_v17  ;;  %v7686_v28 = vpop.xlane.xlu1 %4021  ;;  %v2216_v25 = vsel %vm2215_vm14, %v2214_v5, %v2209_v57 }
 0x50e   : > { %v2221_v3 = vrot.slane %v2120_v2, %v7683_v58 }
 0x50f   : > { %v2096_v38 = vpop.xlane.xlu0 %2095 }
 0x510   : > { %v2121_v44 = vadd.f32 %v7609_v40, %v2096_v38  ;;  %v2223_v6 = vsel %vm2222_vm15, %v2221_v3, %v2216_v25 }
 0x512   : > { %v2228_v27 = vrot.slane %v2121_v44, %v7690_v16 }
 0x513   : > { %v2099_v21 = vpop.xlane.xlu0 %2098 }
 0x514   : > { %v2122_v46 = vadd.f32 %v7609_v40, %v2099_v21  ;;  %v4019_v32 = vpop.xlane.xlu1 %4018  ;;  %v2230_v1 = vsel %vm2229_vm0, %v2228_v27, %v2223_v6  ;;  %v4049_v27 = vadd.f32 %v4037_v51, %v7686_v28 }
 0x516   : > { %v2235_v31 = vrot.slane %v2122_v46, %v7694_v29  ;;  %v4127_v28 = vrot.slane %v4049_v27, %v7683_v58 }
 0x517   : > { %v2102_v49 = vpop.xlane.xlu0 %2101 }
 0x518   : > { %v2123_v60 = vadd.f32 %v7609_v40, %v2102_v49  ;;  %v2237_v37 = vsel %vm2236_vm1, %v2235_v31, %v2230_v1 }
 0x51a   : > { %v2242_v38 = vrot.slane %v2123_v60, %v7702_v45 }
 0x51b   : > { %v3992_v23 = vpop.xlane.xlu0 %3991 }
 0x51c   : > { %v2244_v21 = vsel %vm2243_vm3, %v2242_v38, %v2237_v37  ;;  %v4039_v15 = vadd.f32 %v4037_v51, %v3992_v23 }
 0x51e   : > { %v4077_v47 = vrot.slane %v4039_v15, %v7621_v26 }
 0x51f   : > { %v3989_v17 = vpop.xlane.xlu0 %3988 }
 0x520   : > { %v4028_v34 = vpop.xlane.xlu1 %4027  ;;  %v4038_v10 = vadd.f32 %v4037_v51, %v3989_v17  ;;  %v4048_v17 = vadd.f32 %v4037_v51, %v4019_v32 }
 0x521   : > { %v4051_v38 = vadd.f32 %v4037_v51, %v4028_v34 }
 0x522   : > { %v4073_v36 = vrot.slane %v4038_v10, %v7613_v53  ;;  %v4122_v6 = vrot.slane %v4048_v17, %v7677_v4 }
 0x523   : > { %v2105_v13 = vpop.xlane.xlu0 %2104  ;;  %v4137_v34 = vrot.slane %v4051_v38, %v7694_v29 }
 0x524   : > { %v2124_v41 = vadd.f32 %v7609_v40, %v2105_v13  ;;  %v3995_v59 = vpop.xlane.xlu1 %3994  ;;  %v4078_v8 = vsel %vm2152_vm5, %v4077_v47, %v4073_v36 }
 0x525   : > { %v4040_v54 = vadd.f32 %v4037_v51, %v3995_v59 }
 0x526   : > { %v2249_v61 = vrot.slane %v2124_v41, %v7711_v30 }
 0x527   : > { %v3998_v33 = vpop.xlane.xlu0 %3997  ;;  %v4082_v18 = vrot.slane %v4040_v54, %v7617_v48 }
 0x528   : > { %v2251_v9 = vsel %vm2250_vm4, %v2249_v61, %v2244_v21  ;;  %v4025_v12 = vpop.xlane.xlu1 %4024  ;;  %v4041_v35 = vadd.f32 %v4037_v51, %v3998_v33 }
 0x529   : > { %2253 = vst [vmem:[%s5640_s7] sm:$0x1] %v2251_v9  ;;  %v4083_v23 = vsel %vm2159_vm6, %v4082_v18, %v4078_v8  ;;  %v4050_v31 = vadd.f32 %v4037_v51, %v4025_v12 }
 0x52a   : > { %v4087_v55 = vrot.slane %v4041_v35, %v7630_v39 }
 0x52c   : > { %v4088_v46 = vsel %vm2166_vm7, %v4087_v55, %v4083_v23 }
 0x530   : > { %v4004_v62 = vpop.xlane.xlu0 %4003 }
 0x531   : > { %v4043_v43 = vadd.f32 %v4037_v51, %v4004_v62 }
 0x533   : > { %v4097_v26 = vrot.slane %v4043_v43, %v7643_v19 }
 0x534   : > { %v4034_v22 = vpop.xlane.xlu1 %4033  ;;  %v3784_v7 = vpop.permute.xlu0 %3783 }
 0x535   : > { %3816 = vst.msk [vmem:[#allocation4 + $0xf8] sm:$0xff] %vm856_vm2, %v3784_v7 }
 0x538   : > { %v4001_v40 = vpop.xlane.xlu1 %4000 }
 0x539   : > { %v4042_v63 = vadd.f32 %v4037_v51, %v4001_v40 }
 0x53b   : > { %v4092_v24 = vrot.slane %v4042_v63, %v7634_v52 }
 0x53c   : > { %v4031_v49 = vpop.xlane.xlu1 %4030 }
 0x53d   : > { %v4093_v53 = vsel %vm2173_vm8, %v4092_v24, %v4088_v46  ;;  %v4052_v41 = vadd.f32 %v4037_v51, %v4031_v49 }
 0x53e   : > { %v4098_v39 = vsel %vm2180_vm9, %v4097_v26, %v4093_v53 }
 0x53f   : > { %v4142_v4 = vrot.slane %v4052_v41, %v7702_v45 }
 0x540   : > { %v4010_v0 = vpop.xlane.xlu1 %4009 }
 0x541   : > { %v4045_v5 = vadd.f32 %v4037_v51, %v4010_v0 }
 0x543   : > { %v4107_v57 = vrot.slane %v4045_v5, %v7660_v50  ;;  %v4053_v50 = vadd.f32 %v4037_v51, %v4034_v22 }
 0x544   : > { %v4007_v2 = vpop.xlane.xlu1 %4006 }
 0x545   : > { %v4044_v44 = vadd.f32 %v4037_v51, %v4007_v2  ;;  %v4147_v21 = vrot.slane %v4053_v50, %v7711_v30 }
 0x547   : > { %v4102_v48 = vrot.slane %v4044_v44, %v7649_v56 }
 0x548   : > { %v4016_v14 = vpop.xlane.xlu1 %4015 }
 0x549   : > { %v4047_v60 = vadd.f32 %v4037_v51, %v4016_v14  ;;  %v4103_v3 = vsel %vm2187_vm10, %v4102_v48, %v4098_v39 }
 0x54a   : > { %v4108_v19 = vsel %vm2194_vm11, %v4107_v57, %v4103_v3 }
 0x54b   : > { %v4117_v56 = vrot.slane %v4047_v60, %v7672_v11 }
 0x54c   : > { %v4013_v52 = vpop.xlane.xlu1 %4012 }
 0x54d   : > { %v4046_v42 = vadd.f32 %v4037_v51, %v4013_v52 }
 0x54f   : > { %v4112_v25 = vrot.slane %v4046_v42, %v7666_v20  ;;  %v4132_v20 = vrot.slane %v4050_v31, %v7690_v16 }
 0x550   : > { %v3782_v13 = vpop.permute.xlu1 %3781 }
 0x551   : > { %v4113_v32 = vsel %vm2201_vm12, %v4112_v25, %v4108_v19  ;;  %3815 = vst.msk [vmem:[#allocation4 + $0xf0] sm:$0xff] %vm856_vm2, %v3782_v13 }
 0x552   : > { %v4118_v1 = vsel %vm2208_vm13, %v4117_v56, %v4113_v32 }
 0x553   : > { %v4123_v11 = vsel %vm2215_vm14, %v4122_v6, %v4118_v1 }
 0x554   : > { %v4128_v37 = vsel %vm2222_vm15, %v4127_v28, %v4123_v11 }
 0x555   : > { %v4133_v61 = vsel %vm2229_vm0, %v4132_v20, %v4128_v37 }
 0x556   : > { %v4138_v9 = vsel %vm2236_vm1, %v4137_v34, %v4133_v61 }
 0x557   : > { %v4143_v58 = vsel %vm2243_vm3, %v4142_v4, %v4138_v9 }
 0x558   : > { %v4148_v59 = vsel %vm2250_vm4, %v4147_v21, %v4143_v58 }
 0x559   : > { %4150 = vst [vmem:[%s5640_s7 + $0x1] sm:$0x1] %v4148_v59 }
 0x55a PF: > { %s16_s21 = sadd.s32 1, %s5569_s21   ;;  %s7838_s17 = smov %s5561_s19 }
 0x55b   : > { %p13_p8 = scmp.ge.s32.totalorder %s16_s21, 18   ;;  %s7839_s18 = smov %s5565_s20 }
 0x55c   : > { %s7840_s19 = smov %s7843_s3  ;;  %s7841_s20 = smov %s7847_s22 }
 0x55d   :  { %15 = sbr.rel (!%p13_p8) target bundleno = 3 (0x3), region = 78 }

</bundles_post_ra>
